<compile_context>
chip_gen: v5e
topology: v5e:2x2
jax: 0.10.0
libtpu: 0.0.40
codegen_flags: <defaults>
</compile_context>

<pallas_src>
import functools
import math

import jax
import jax.numpy as jnp
from jax import lax
from jax.experimental import pallas as pl
from jax.experimental.pallas import tpu as pltpu  # noqa: F401  (TPU backend)

D_MODEL = 32
NHEAD = 4
HEAD_DIM = D_MODEL // NHEAD
NUM_LAYERS = 4
LN_EPS = 1e-5


def _layernorm(y, w, b):
    mu = jnp.mean(y, axis=-1, keepdims=True)
    var = jnp.mean((y - mu) ** 2, axis=-1, keepdims=True)
    return (y - mu) * lax.rsqrt(var + LN_EPS) * w + b


# ---------------------------------------------------------------------------
# Single fused kernel: all layers, whole batch, one invocation (no grid).
# ---------------------------------------------------------------------------
def fused_encoder_kernel(
    src_ref,                                   # (B*S, E)
    in_w_ref, in_b_ref,                        # (L, E, 3E), (L, 1, 3E)  -- pre-transposed
    out_w_ref, out_b_ref,                      # (L, E, E),  (L, 1, E)
    lin1_w_ref, lin1_b_ref,                    # (L, E, E),  (L, 1, E)
    lin2_w_ref, lin2_b_ref,                    # (L, E, E),  (L, 1, E)
    n1_w_ref, n1_b_ref,                        # (L, 1, E),  (L, 1, E)
    n2_w_ref, n2_b_ref,                        # (L, 1, E),  (L, 1, E)
    out_ref,                                   # (B*S, E)
    attn_ref,                                  # (L, B, S, S)
    *, batch, seq,
):
    E = D_MODEL
    B, S = batch, seq
    x = src_ref[...]                           # (B*S, E) f32
    scale = jnp.float32(1.0 / math.sqrt(HEAD_DIM))
    inv_nhead = jnp.float32(1.0 / NHEAD)

    for l in range(NUM_LAYERS):                # static layer loop (fused layers)
        # ---- fused QKV projection: one matmul for the whole batch ----
        qkv = (jnp.dot(x, in_w_ref[l], preferred_element_type=jnp.float32)
               + in_b_ref[l])                  # (B*S, 3E)
        qkv3 = qkv.reshape(B, S, 3 * E)        # sublane-only split (16 -> 2x8), cheap

        # ---- multi-head self-attention: heads are lane-column slices ----
        attn_sum = jnp.zeros((B, S, S), jnp.float32)
        head_outs = []
        for h in range(NHEAD):                 # static head loop, batched over B
            lo = h * HEAD_DIM
            qh = qkv3[:, :, lo:lo + HEAD_DIM]                      # (B, S, HD)
            kh = qkv3[:, :, E + lo:E + lo + HEAD_DIM]
            vh = qkv3[:, :, 2 * E + lo:2 * E + lo + HEAD_DIM]
            s = jnp.einsum('bqd,bkd->bqk', qh, kh,
                           preferred_element_type=jnp.float32) * scale   # (B, S, S)
            s = s - jnp.max(s, axis=-1, keepdims=True)
            p = jnp.exp(s)
            p = p * pl.reciprocal(jnp.sum(p, axis=-1, keepdims=True), approx=True)
            attn_sum = attn_sum + p
            head_outs.append(jnp.einsum('bqk,bkd->bqd', p, vh,
                                        preferred_element_type=jnp.float32))
        attn_ref[l] = attn_sum * inv_nhead     # head-averaged attention weights

        attn_out = jnp.concatenate(head_outs, axis=-1).reshape(B * S, E)
        src2 = (jnp.dot(attn_out, out_w_ref[l],
                        preferred_element_type=jnp.float32) + out_b_ref[l])

        # residual + norm1
        x = _layernorm(x + src2, n1_w_ref[l], n1_b_ref[l])

        # feed-forward: linear2(relu(linear1(x)))  (dropout = identity in eval)
        h1 = jnp.maximum(
            jnp.dot(x, lin1_w_ref[l], preferred_element_type=jnp.float32)
            + lin1_b_ref[l], 0.0)
        src2 = (jnp.dot(h1, lin2_w_ref[l],
                        preferred_element_type=jnp.float32) + lin2_b_ref[l])

        # residual + norm2
        x = _layernorm(x + src2, n2_w_ref[l], n2_b_ref[l])

    out_ref[...] = x


# ---------------------------------------------------------------------------
# Wrapper: stack + pre-transpose weights on the host, one pallas_call total.
# ---------------------------------------------------------------------------
def custom_transformer_encoder(src, layer_params_list):
    B, S, E = src.shape
    L = len(layer_params_list)
    assert E == D_MODEL and L == NUM_LAYERS

    stack = lambda i: jnp.stack([p[i] for p in layer_params_list])
    stack_t = lambda i: jnp.stack([p[i].T for p in layer_params_list])   # pre-transpose

    in_w = stack_t(0);  in_b = stack(1)      # (L, E, 3E), (L, 1, 3E)
    out_w = stack_t(2); out_b = stack(3)     # (L, E, E),  (L, 1, E)
    lin1_w = stack_t(4); lin1_b = stack(5)
    lin2_w = stack_t(6); lin2_b = stack(7)
    n1_w = stack(8); n1_b = stack(9)
    n2_w = stack(10); n2_b = stack(11)

    flops = NUM_LAYERS * (2 * B * S * E * (3 * E + E + 2 * E)
                          + 2 * 2 * B * NHEAD * S * S * HEAD_DIM)
    transcendentals = NUM_LAYERS * (B * NHEAD * S * S + NHEAD * B * S + 2 * B * S)
    weight_bytes = 4 * sum(int(w.size) for w in
                           (in_w, in_b, out_w, out_b, lin1_w, lin1_b,
                            lin2_w, lin2_b, n1_w, n1_b, n2_w, n2_b))
    bytes_accessed = weight_bytes + 2 * B * S * E * 4 + L * B * S * S * 4

    kernel = functools.partial(fused_encoder_kernel, batch=B, seq=S)
    out_flat, attn_all = pl.pallas_call(
        kernel,
        out_shape=(jax.ShapeDtypeStruct((B * S, E), jnp.float32),
                   jax.ShapeDtypeStruct((L, B, S, S), jnp.float32)),
        cost_estimate=pl.CostEstimate(flops=flops,
                                      transcendentals=transcendentals,
                                      bytes_accessed=bytes_accessed),
    )(src.reshape(B * S, E), in_w, in_b, out_w, out_b,
      lin1_w, lin1_b, lin2_w, lin2_b, n1_w, n1_b, n2_w, n2_b)

    output = out_flat.reshape(B, S, E)
    attn_weights_list = [attn_all[l] for l in range(L)]
    return output, attn_weights_list


# ---------------------------------------------------------------------------
# Deterministic parameter initialization (shapes from nn.MultiheadAttention /
# nn.Linear / nn.LayerNorm with d_model=32)
# ---------------------------------------------------------------------------
def init_layer_params(key, E):
    ks = jax.random.split(key, 8)
    scale = 0.05
    in_w = scale * jax.random.normal(ks[0], (3 * E, E), jnp.float32)
    in_b = scale * jax.random.normal(ks[1], (1, 3 * E), jnp.float32)
    out_w = scale * jax.random.normal(ks[2], (E, E), jnp.float32)
    out_b = scale * jax.random.normal(ks[3], (1, E), jnp.float32)
    lin1_w = scale * jax.random.normal(ks[4], (E, E), jnp.float32)
    lin1_b = scale * jax.random.normal(ks[5], (1, E), jnp.float32)
    lin2_w = scale * jax.random.normal(ks[6], (E, E), jnp.float32)
    lin2_b = scale * jax.random.normal(ks[7], (1, E), jnp.float32)
    n1_w = jnp.ones((1, E), jnp.float32)
    n1_b = jnp.zeros((1, E), jnp.float32)
    n2_w = jnp.ones((1, E), jnp.float32)
    n2_b = jnp.zeros((1, E), jnp.float32)
    return (in_w, in_b, out_w, out_b, lin1_w, lin1_b, lin2_w, lin2_b,
            n1_w, n1_b, n2_w, n2_b)


# ---------------------------------------------------------------------------
# Pure-JAX reference (correctness check)
# ---------------------------------------------------------------------------
def ref_layer(src, params):
    (in_w, in_b, out_w, out_b, lin1_w, lin1_b, lin2_w, lin2_b,
     n1_w, n1_b, n2_w, n2_b) = params
    B, S, E = src.shape
    hp = jax.lax.Precision.HIGHEST

    qkv = jnp.einsum("bse,fe->bsf", src, in_w, precision=hp) + in_b[0]
    q, k, v = qkv[..., :E], qkv[..., E:2 * E], qkv[..., 2 * E:]
    q = q.reshape(B, S, NHEAD, HEAD_DIM)
    k = k.reshape(B, S, NHEAD, HEAD_DIM)
    v = v.reshape(B, S, NHEAD, HEAD_DIM)
    s = jnp.einsum("bqhd,bkhd->bhqk", q, k, precision=hp) / (HEAD_DIM ** 0.5)
    p = jax.nn.softmax(s, axis=-1)
    attn_avg = jnp.mean(p, axis=1)                                   # (B, S, S)
    o = jnp.einsum("bhqk,bkhd->bqhd", p, v, precision=hp).reshape(B, S, E)
    src2 = jnp.einsum("bse,fe->bsf", o, out_w, precision=hp) + out_b[0]

    def layernorm(y, w, b):
        mu = jnp.mean(y, axis=-1, keepdims=True)
        var = jnp.mean((y - mu) ** 2, axis=-1, keepdims=True)
        return (y - mu) / jnp.sqrt(var + LN_EPS) * w[0] + b[0]

    x = layernorm(src + src2, n1_w, n1_b)
    h1 = jax.nn.relu(jnp.einsum("bse,fe->bsf", x, lin1_w, precision=hp) + lin1_b[0])
    src2 = jnp.einsum("bse,fe->bsf", h1, lin2_w, precision=hp) + lin2_b[0]
    x = layernorm(x + src2, n2_w, n2_b)
    return x, attn_avg


def ref_encoder(src, layer_params_list):
    attns = []
    out = src
    for params in layer_params_list:
        out, a = ref_layer(out, params)
        attns.append(a)
    return out, attns


# ---------------------------------------------------------------------------
if __name__ == "__main__":
    B, S, E = 2, 8, D_MODEL
    key = jax.random.PRNGKey(0)
    key, xk = jax.random.split(key)
    src = jax.random.normal(xk, (B, S, E), jnp.float32)

    layer_keys = jax.random.split(key, NUM_LAYERS)
    layer_params_list = [init_layer_params(k, E) for k in layer_keys]

    out, attn_list = custom_transformer_encoder(src, layer_params_list)
    out = jax.block_until_ready(out)
    attn_list = [jax.block_until_ready(a) for a in attn_list]

    # sanity check against pure-JAX reference
    ref_out, ref_attns = ref_encoder(src, layer_params_list)
    assert out.shape == (B, S, E)
    assert len(attn_list) == NUM_LAYERS and attn_list[0].shape == (B, S, S)
    assert jnp.allclose(out, ref_out, atol=1e-2, rtol=1e-2)
    for a, ra in zip(attn_list, ref_attns):
        assert jnp.allclose(a, ra, atol=1e-2, rtol=1e-2)

    print("KERNEL_OK")
</pallas_src>

<mosaic_0001>
module attributes {stable_mosaic.version = 11 : i64} {
  func.func @fused_encoder_kernel(%arg0: memref<16x32xf32, #tpu.memory_space<vmem>>, %arg1: memref<4x32x96xf32, #tpu.memory_space<vmem>>, %arg2: memref<4x1x96xf32, #tpu.memory_space<vmem>>, %arg3: memref<4x32x32xf32, #tpu.memory_space<vmem>>, %arg4: memref<4x1x32xf32, #tpu.memory_space<vmem>>, %arg5: memref<4x32x32xf32, #tpu.memory_space<vmem>>, %arg6: memref<4x1x32xf32, #tpu.memory_space<vmem>>, %arg7: memref<4x32x32xf32, #tpu.memory_space<vmem>>, %arg8: memref<4x1x32xf32, #tpu.memory_space<vmem>>, %arg9: memref<4x1x32xf32, #tpu.memory_space<vmem>>, %arg10: memref<4x1x32xf32, #tpu.memory_space<vmem>>, %arg11: memref<4x1x32xf32, #tpu.memory_space<vmem>>, %arg12: memref<4x1x32xf32, #tpu.memory_space<vmem>>, %arg13: memref<16x32xf32, #tpu.memory_space<vmem>>, %arg14: memref<4x2x8x8xf32, #tpu.memory_space<vmem>>) attributes {dimension_semantics = [], scalar_prefetch = 0 : i64, scratch_operands = 0 : i64, tpu.core_type = #tpu.core_type<tc>} {
    %c0 = arith.constant 0 : index
    %c0_0 = arith.constant 0 : index
    %0 = vector.load %arg0[%c0, %c0_0] : memref<16x32xf32, #tpu.memory_space<vmem>>, vector<16x32xf32>
    %c0_1 = arith.constant 0 : index
    %c0_2 = arith.constant 0 : index
    %c0_3 = arith.constant 0 : index
    %1 = vector.load %arg1[%c0_1, %c0_2, %c0_3] : memref<4x32x96xf32, #tpu.memory_space<vmem>>, vector<1x32x96xf32>
    %2 = vector.shape_cast %1 : vector<1x32x96xf32> to vector<32x96xf32>
    %cst = arith.constant dense<0.000000e+00> : vector<16x96xf32>
    %3 = tpu.matmul %0, %2, %cst {dimension_numbers = #tpu.dot_dimension_numbers<[1], [0], [0], [1], [0, 0, 1, 1], [], []>} : vector<16x32xf32>, vector<32x96xf32>, vector<16x96xf32> -> vector<16x96xf32>
    %c0_4 = arith.constant 0 : index
    %c0_5 = arith.constant 0 : index
    %c0_6 = arith.constant 0 : index
    %4 = vector.load %arg2[%c0_4, %c0_5, %c0_6] : memref<4x1x96xf32, #tpu.memory_space<vmem>>, vector<1x1x96xf32>
    %5 = vector.shape_cast %4 : vector<1x1x96xf32> to vector<1x96xf32>
    %6 = vector.broadcast %5 : vector<1x96xf32> to vector<16x96xf32>
    %7 = arith.addf %3, %6 : vector<16x96xf32>
    %8 = vector.shape_cast %7 : vector<16x96xf32> to vector<2x8x96xf32>
    %cst_7 = arith.constant 0.000000e+00 : f32
    %9 = vector.broadcast %cst_7 : f32 to vector<2x8x8xf32>
    %10 = vector.extract_strided_slice %8 {offsets = [0, 0, 0], sizes = [2, 8, 8], strides = [1, 1, 1]} : vector<2x8x96xf32> to vector<2x8x8xf32>
    %11 = vector.extract_strided_slice %8 {offsets = [0, 0, 32], sizes = [2, 8, 8], strides = [1, 1, 1]} : vector<2x8x96xf32> to vector<2x8x8xf32>
    %12 = vector.extract_strided_slice %8 {offsets = [0, 0, 64], sizes = [2, 8, 8], strides = [1, 1, 1]} : vector<2x8x96xf32> to vector<2x8x8xf32>
    "tpu.trace_start"() <{level = 10 : i32, message = "bqd,bkd->bqk"}> : () -> ()
    %cst_8 = arith.constant dense<0.000000e+00> : vector<2x8x8xf32>
    %13 = tpu.matmul %10, %11, %cst_8 {dimension_numbers = #tpu.dot_dimension_numbers<[2], [2], [1], [1], [0, 0, 0, 1, 1, 1], [0], [0]>} : vector<2x8x8xf32>, vector<2x8x8xf32>, vector<2x8x8xf32> -> vector<2x8x8xf32>
    "tpu.trace_stop"() : () -> ()
    %cst_9 = arith.constant 0.353553385 : f32
    %14 = vector.broadcast %cst_9 : f32 to vector<2x8x8xf32>
    %15 = arith.mulf %13, %14 : vector<2x8x8xf32>
    %cst_10 = arith.constant dense<0xFF800000> : vector<2x8xf32>
    %16 = vector.multi_reduction <maximumf>, %15, %cst_10 [2] : vector<2x8x8xf32> to vector<2x8xf32>
    %17 = vector.shape_cast %16 : vector<2x8xf32> to vector<2x8x1xf32>
    %18 = vector.broadcast %17 : vector<2x8x1xf32> to vector<2x8x8xf32>
    %19 = arith.subf %15, %18 : vector<2x8x8xf32>
    %20 = math.exp %19 : vector<2x8x8xf32>
    %cst_11 = arith.constant dense<0.000000e+00> : vector<2x8xf32>
    %21 = vector.multi_reduction <add>, %20, %cst_11 [2] : vector<2x8x8xf32> to vector<2x8xf32>
    %22 = vector.shape_cast %21 : vector<2x8xf32> to vector<2x8x1xf32>
    %23 = tpu.reciprocal %22 {approx = true} : vector<2x8x1xf32> -> vector<2x8x1xf32>
    %24 = vector.broadcast %23 : vector<2x8x1xf32> to vector<2x8x8xf32>
    %25 = arith.mulf %20, %24 : vector<2x8x8xf32>
    %26 = arith.addf %9, %25 : vector<2x8x8xf32>
    "tpu.trace_start"() <{level = 10 : i32, message = "bqk,bkd->bqd"}> : () -> ()
    %cst_12 = arith.constant dense<0.000000e+00> : vector<2x8x8xf32>
    %27 = tpu.matmul %25, %12, %cst_12 {dimension_numbers = #tpu.dot_dimension_numbers<[2], [1], [1], [2], [0, 0, 0, 1, 1, 2], [0], [0]>} : vector<2x8x8xf32>, vector<2x8x8xf32>, vector<2x8x8xf32> -> vector<2x8x8xf32>
    "tpu.trace_stop"() : () -> ()
    %28 = vector.extract_strided_slice %8 {offsets = [0, 0, 8], sizes = [2, 8, 8], strides = [1, 1, 1]} : vector<2x8x96xf32> to vector<2x8x8xf32>
    %29 = vector.extract_strided_slice %8 {offsets = [0, 0, 40], sizes = [2, 8, 8], strides = [1, 1, 1]} : vector<2x8x96xf32> to vector<2x8x8xf32>
    %30 = vector.extract_strided_slice %8 {offsets = [0, 0, 72], sizes = [2, 8, 8], strides = [1, 1, 1]} : vector<2x8x96xf32> to vector<2x8x8xf32>
    "tpu.trace_start"() <{level = 10 : i32, message = "bqd,bkd->bqk"}> : () -> ()
    %cst_13 = arith.constant dense<0.000000e+00> : vector<2x8x8xf32>
    %31 = tpu.matmul %28, %29, %cst_13 {dimension_numbers = #tpu.dot_dimension_numbers<[2], [2], [1], [1], [0, 0, 0, 1, 1, 1], [0], [0]>} : vector<2x8x8xf32>, vector<2x8x8xf32>, vector<2x8x8xf32> -> vector<2x8x8xf32>
    "tpu.trace_stop"() : () -> ()
    %cst_14 = arith.constant 0.353553385 : f32
    %32 = vector.broadcast %cst_14 : f32 to vector<2x8x8xf32>
    %33 = arith.mulf %31, %32 : vector<2x8x8xf32>
    %cst_15 = arith.constant dense<0xFF800000> : vector<2x8xf32>
    %34 = vector.multi_reduction <maximumf>, %33, %cst_15 [2] : vector<2x8x8xf32> to vector<2x8xf32>
    %35 = vector.shape_cast %34 : vector<2x8xf32> to vector<2x8x1xf32>
    %36 = vector.broadcast %35 : vector<2x8x1xf32> to vector<2x8x8xf32>
    %37 = arith.subf %33, %36 : vector<2x8x8xf32>
    %38 = math.exp %37 : vector<2x8x8xf32>
    %cst_16 = arith.constant dense<0.000000e+00> : vector<2x8xf32>
    %39 = vector.multi_reduction <add>, %38, %cst_16 [2] : vector<2x8x8xf32> to vector<2x8xf32>
    %40 = vector.shape_cast %39 : vector<2x8xf32> to vector<2x8x1xf32>
    %41 = tpu.reciprocal %40 {approx = true} : vector<2x8x1xf32> -> vector<2x8x1xf32>
    %42 = vector.broadcast %41 : vector<2x8x1xf32> to vector<2x8x8xf32>
    %43 = arith.mulf %38, %42 : vector<2x8x8xf32>
    %44 = arith.addf %26, %43 : vector<2x8x8xf32>
    "tpu.trace_start"() <{level = 10 : i32, message = "bqk,bkd->bqd"}> : () -> ()
    %cst_17 = arith.constant dense<0.000000e+00> : vector<2x8x8xf32>
    %45 = tpu.matmul %43, %30, %cst_17 {dimension_numbers = #tpu.dot_dimension_numbers<[2], [1], [1], [2], [0, 0, 0, 1, 1, 2], [0], [0]>} : vector<2x8x8xf32>, vector<2x8x8xf32>, vector<2x8x8xf32> -> vector<2x8x8xf32>
    "tpu.trace_stop"() : () -> ()
    %46 = vector.extract_strided_slice %8 {offsets = [0, 0, 16], sizes = [2, 8, 8], strides = [1, 1, 1]} : vector<2x8x96xf32> to vector<2x8x8xf32>
    %47 = vector.extract_strided_slice %8 {offsets = [0, 0, 48], sizes = [2, 8, 8], strides = [1, 1, 1]} : vector<2x8x96xf32> to vector<2x8x8xf32>
    %48 = vector.extract_strided_slice %8 {offsets = [0, 0, 80], sizes = [2, 8, 8], strides = [1, 1, 1]} : vector<2x8x96xf32> to vector<2x8x8xf32>
    "tpu.trace_start"() <{level = 10 : i32, message = "bqd,bkd->bqk"}> : () -> ()
    %cst_18 = arith.constant dense<0.000000e+00> : vector<2x8x8xf32>
    %49 = tpu.matmul %46, %47, %cst_18 {dimension_numbers = #tpu.dot_dimension_numbers<[2], [2], [1], [1], [0, 0, 0, 1, 1, 1], [0], [0]>} : vector<2x8x8xf32>, vector<2x8x8xf32>, vector<2x8x8xf32> -> vector<2x8x8xf32>
    "tpu.trace_stop"() : () -> ()
    %cst_19 = arith.constant 0.353553385 : f32
    %50 = vector.broadcast %cst_19 : f32 to vector<2x8x8xf32>
    %51 = arith.mulf %49, %50 : vector<2x8x8xf32>
    %cst_20 = arith.constant dense<0xFF800000> : vector<2x8xf32>
    %52 = vector.multi_reduction <maximumf>, %51, %cst_20 [2] : vector<2x8x8xf32> to vector<2x8xf32>
    %53 = vector.shape_cast %52 : vector<2x8xf32> to vector<2x8x1xf32>
    %54 = vector.broadcast %53 : vector<2x8x1xf32> to vector<2x8x8xf32>
    %55 = arith.subf %51, %54 : vector<2x8x8xf32>
    %56 = math.exp %55 : vector<2x8x8xf32>
    %cst_21 = arith.constant dense<0.000000e+00> : vector<2x8xf32>
    %57 = vector.multi_reduction <add>, %56, %cst_21 [2] : vector<2x8x8xf32> to vector<2x8xf32>
    %58 = vector.shape_cast %57 : vector<2x8xf32> to vector<2x8x1xf32>
    %59 = tpu.reciprocal %58 {approx = true} : vector<2x8x1xf32> -> vector<2x8x1xf32>
    %60 = vector.broadcast %59 : vector<2x8x1xf32> to vector<2x8x8xf32>
    %61 = arith.mulf %56, %60 : vector<2x8x8xf32>
    %62 = arith.addf %44, %61 : vector<2x8x8xf32>
    "tpu.trace_start"() <{level = 10 : i32, message = "bqk,bkd->bqd"}> : () -> ()
    %cst_22 = arith.constant dense<0.000000e+00> : vector<2x8x8xf32>
    %63 = tpu.matmul %61, %48, %cst_22 {dimension_numbers = #tpu.dot_dimension_numbers<[2], [1], [1], [2], [0, 0, 0, 1, 1, 2], [0], [0]>} : vector<2x8x8xf32>, vector<2x8x8xf32>, vector<2x8x8xf32> -> vector<2x8x8xf32>
    "tpu.trace_stop"() : () -> ()
    %64 = vector.extract_strided_slice %8 {offsets = [0, 0, 24], sizes = [2, 8, 8], strides = [1, 1, 1]} : vector<2x8x96xf32> to vector<2x8x8xf32>
    %65 = vector.extract_strided_slice %8 {offsets = [0, 0, 56], sizes = [2, 8, 8], strides = [1, 1, 1]} : vector<2x8x96xf32> to vector<2x8x8xf32>
    %66 = vector.extract_strided_slice %8 {offsets = [0, 0, 88], sizes = [2, 8, 8], strides = [1, 1, 1]} : vector<2x8x96xf32> to vector<2x8x8xf32>
    "tpu.trace_start"() <{level = 10 : i32, message = "bqd,bkd->bqk"}> : () -> ()
    %cst_23 = arith.constant dense<0.000000e+00> : vector<2x8x8xf32>
    %67 = tpu.matmul %64, %65, %cst_23 {dimension_numbers = #tpu.dot_dimension_numbers<[2], [2], [1], [1], [0, 0, 0, 1, 1, 1], [0], [0]>} : vector<2x8x8xf32>, vector<2x8x8xf32>, vector<2x8x8xf32> -> vector<2x8x8xf32>
    "tpu.trace_stop"() : () -> ()
    %cst_24 = arith.constant 0.353553385 : f32
    %68 = vector.broadcast %cst_24 : f32 to vector<2x8x8xf32>
    %69 = arith.mulf %67, %68 : vector<2x8x8xf32>
    %cst_25 = arith.constant dense<0xFF800000> : vector<2x8xf32>
    %70 = vector.multi_reduction <maximumf>, %69, %cst_25 [2] : vector<2x8x8xf32> to vector<2x8xf32>
    %71 = vector.shape_cast %70 : vector<2x8xf32> to vector<2x8x1xf32>
    %72 = vector.broadcast %71 : vector<2x8x1xf32> to vector<2x8x8xf32>
    %73 = arith.subf %69, %72 : vector<2x8x8xf32>
    %74 = math.exp %73 : vector<2x8x8xf32>
    %cst_26 = arith.constant dense<0.000000e+00> : vector<2x8xf32>
    %75 = vector.multi_reduction <add>, %74, %cst_26 [2] : vector<2x8x8xf32> to vector<2x8xf32>
    %76 = vector.shape_cast %75 : vector<2x8xf32> to vector<2x8x1xf32>
    %77 = tpu.reciprocal %76 {approx = true} : vector<2x8x1xf32> -> vector<2x8x1xf32>
    %78 = vector.broadcast %77 : vector<2x8x1xf32> to vector<2x8x8xf32>
    %79 = arith.mulf %74, %78 : vector<2x8x8xf32>
    %80 = arith.addf %62, %79 : vector<2x8x8xf32>
    "tpu.trace_start"() <{level = 10 : i32, message = "bqk,bkd->bqd"}> : () -> ()
    %cst_27 = arith.constant dense<0.000000e+00> : vector<2x8x8xf32>
    %81 = tpu.matmul %79, %66, %cst_27 {dimension_numbers = #tpu.dot_dimension_numbers<[2], [1], [1], [2], [0, 0, 0, 1, 1, 2], [0], [0]>} : vector<2x8x8xf32>, vector<2x8x8xf32>, vector<2x8x8xf32> -> vector<2x8x8xf32>
    "tpu.trace_stop"() : () -> ()
    %cst_28 = arith.constant 2.500000e-01 : f32
    %82 = vector.broadcast %cst_28 : f32 to vector<2x8x8xf32>
    %83 = arith.mulf %80, %82 : vector<2x8x8xf32>
    %c0_29 = arith.constant 0 : index
    %c0_30 = arith.constant 0 : index
    %c0_31 = arith.constant 0 : index
    %c0_32 = arith.constant 0 : index
    %84 = vector.load %arg14[%c0_29, %c0_30, %c0_31, %c0_32] : memref<4x2x8x8xf32, #tpu.memory_space<vmem>>, vector<1x2x8x8xf32>
    %85 = vector.shape_cast %84 : vector<1x2x8x8xf32> to vector<2x8x8xf32>
    %86 = vector.shape_cast %83 : vector<2x8x8xf32> to vector<1x2x8x8xf32>
    tpu.vector_store %arg14[%c0_29, %c0_30, %c0_31, %c0_32], %86 {strides = array<i32>} : memref<4x2x8x8xf32, #tpu.memory_space<vmem>>, vector<1x2x8x8xf32>,
    %87 = tpu.concatenate %27, %45, %63, %81 in 2 : vector<2x8x8xf32>, vector<2x8x8xf32>, vector<2x8x8xf32>, vector<2x8x8xf32> -> vector<2x8x32xf32>
    %88 = vector.shape_cast %87 : vector<2x8x32xf32> to vector<16x32xf32>
    %c0_33 = arith.constant 0 : index
    %c0_34 = arith.constant 0 : index
    %c0_35 = arith.constant 0 : index
    %89 = vector.load %arg3[%c0_33, %c0_34, %c0_35] : memref<4x32x32xf32, #tpu.memory_space<vmem>>, vector<1x32x32xf32>
    %90 = vector.shape_cast %89 : vector<1x32x32xf32> to vector<32x32xf32>
    %cst_36 = arith.constant dense<0.000000e+00> : vector<16x32xf32>
    %91 = tpu.matmul %88, %90, %cst_36 {dimension_numbers = #tpu.dot_dimension_numbers<[1], [0], [0], [1], [0, 0, 1, 1], [], []>} : vector<16x32xf32>, vector<32x32xf32>, vector<16x32xf32> -> vector<16x32xf32>
    %c0_37 = arith.constant 0 : index
    %c0_38 = arith.constant 0 : index
    %c0_39 = arith.constant 0 : index
    %92 = vector.load %arg4[%c0_37, %c0_38, %c0_39] : memref<4x1x32xf32, #tpu.memory_space<vmem>>, vector<1x1x32xf32>
    %93 = vector.shape_cast %92 : vector<1x1x32xf32> to vector<1x32xf32>
    %94 = vector.broadcast %93 : vector<1x32xf32> to vector<16x32xf32>
    %95 = arith.addf %91, %94 : vector<16x32xf32>
    %96 = arith.addf %0, %95 : vector<16x32xf32>
    %c0_40 = arith.constant 0 : index
    %c0_41 = arith.constant 0 : index
    %c0_42 = arith.constant 0 : index
    %97 = vector.load %arg9[%c0_40, %c0_41, %c0_42] : memref<4x1x32xf32, #tpu.memory_space<vmem>>, vector<1x1x32xf32>
    %98 = vector.shape_cast %97 : vector<1x1x32xf32> to vector<1x32xf32>
    %c0_43 = arith.constant 0 : index
    %c0_44 = arith.constant 0 : index
    %c0_45 = arith.constant 0 : index
    %99 = vector.load %arg10[%c0_43, %c0_44, %c0_45] : memref<4x1x32xf32, #tpu.memory_space<vmem>>, vector<1x1x32xf32>
    %100 = vector.shape_cast %99 : vector<1x1x32xf32> to vector<1x32xf32>
    %cst_46 = arith.constant dense<0.000000e+00> : vector<16xf32>
    %101 = vector.multi_reduction <add>, %96, %cst_46 [1] : vector<16x32xf32> to vector<16xf32>
    %102 = vector.shape_cast %101 : vector<16xf32> to vector<16x1xf32>
    %cst_47 = arith.constant 3.200000e+01 : f32
    %103 = vector.broadcast %cst_47 : f32 to vector<16x1xf32>
    %104 = arith.divf %102, %103 : vector<16x1xf32>
    %105 = vector.broadcast %104 : vector<16x1xf32> to vector<16x32xf32>
    %106 = arith.subf %96, %105 : vector<16x32xf32>
    %107 = arith.mulf %106, %106 : vector<16x32xf32>
    %cst_48 = arith.constant dense<0.000000e+00> : vector<16xf32>
    %108 = vector.multi_reduction <add>, %107, %cst_48 [1] : vector<16x32xf32> to vector<16xf32>
    %109 = vector.shape_cast %108 : vector<16xf32> to vector<16x1xf32>
    %cst_49 = arith.constant 3.200000e+01 : f32
    %110 = vector.broadcast %cst_49 : f32 to vector<16x1xf32>
    %111 = arith.divf %109, %110 : vector<16x1xf32>
    %112 = vector.broadcast %104 : vector<16x1xf32> to vector<16x32xf32>
    %113 = arith.subf %96, %112 : vector<16x32xf32>
    %cst_50 = arith.constant 9.99999974E-6 : f32
    %114 = vector.broadcast %cst_50 : f32 to vector<16x1xf32>
    %115 = arith.addf %111, %114 : vector<16x1xf32>
    %116 = math.rsqrt %115 : vector<16x1xf32>
    %117 = vector.broadcast %116 : vector<16x1xf32> to vector<16x32xf32>
    %118 = arith.mulf %113, %117 : vector<16x32xf32>
    %119 = vector.broadcast %98 : vector<1x32xf32> to vector<16x32xf32>
    %120 = arith.mulf %118, %119 : vector<16x32xf32>
    %121 = vector.broadcast %100 : vector<1x32xf32> to vector<16x32xf32>
    %122 = arith.addf %120, %121 : vector<16x32xf32>
    %c0_51 = arith.constant 0 : index
    %c0_52 = arith.constant 0 : index
    %c0_53 = arith.constant 0 : index
    %123 = vector.load %arg5[%c0_51, %c0_52, %c0_53] : memref<4x32x32xf32, #tpu.memory_space<vmem>>, vector<1x32x32xf32>
    %124 = vector.shape_cast %123 : vector<1x32x32xf32> to vector<32x32xf32>
    %cst_54 = arith.constant dense<0.000000e+00> : vector<16x32xf32>
    %125 = tpu.matmul %122, %124, %cst_54 {dimension_numbers = #tpu.dot_dimension_numbers<[1], [0], [0], [1], [0, 0, 1, 1], [], []>} : vector<16x32xf32>, vector<32x32xf32>, vector<16x32xf32> -> vector<16x32xf32>
    %c0_55 = arith.constant 0 : index
    %c0_56 = arith.constant 0 : index
    %c0_57 = arith.constant 0 : index
    %126 = vector.load %arg6[%c0_55, %c0_56, %c0_57] : memref<4x1x32xf32, #tpu.memory_space<vmem>>, vector<1x1x32xf32>
    %127 = vector.shape_cast %126 : vector<1x1x32xf32> to vector<1x32xf32>
    %128 = vector.broadcast %127 : vector<1x32xf32> to vector<16x32xf32>
    %129 = arith.addf %125, %128 : vector<16x32xf32>
    %cst_58 = arith.constant 0.000000e+00 : f32
    %130 = vector.broadcast %cst_58 : f32 to vector<16x32xf32>
    %131 = arith.maximumf %129, %130 : vector<16x32xf32>
    %c0_59 = arith.constant 0 : index
    %c0_60 = arith.constant 0 : index
    %c0_61 = arith.constant 0 : index
    %132 = vector.load %arg7[%c0_59, %c0_60, %c0_61] : memref<4x32x32xf32, #tpu.memory_space<vmem>>, vector<1x32x32xf32>
    %133 = vector.shape_cast %132 : vector<1x32x32xf32> to vector<32x32xf32>
    %cst_62 = arith.constant dense<0.000000e+00> : vector<16x32xf32>
    %134 = tpu.matmul %131, %133, %cst_62 {dimension_numbers = #tpu.dot_dimension_numbers<[1], [0], [0], [1], [0, 0, 1, 1], [], []>} : vector<16x32xf32>, vector<32x32xf32>, vector<16x32xf32> -> vector<16x32xf32>
    %c0_63 = arith.constant 0 : index
    %c0_64 = arith.constant 0 : index
    %c0_65 = arith.constant 0 : index
    %135 = vector.load %arg8[%c0_63, %c0_64, %c0_65] : memref<4x1x32xf32, #tpu.memory_space<vmem>>, vector<1x1x32xf32>
    %136 = vector.shape_cast %135 : vector<1x1x32xf32> to vector<1x32xf32>
    %137 = vector.broadcast %136 : vector<1x32xf32> to vector<16x32xf32>
    %138 = arith.addf %134, %137 : vector<16x32xf32>
    %139 = arith.addf %122, %138 : vector<16x32xf32>
    %c0_66 = arith.constant 0 : index
    %c0_67 = arith.constant 0 : index
    %c0_68 = arith.constant 0 : index
    %140 = vector.load %arg11[%c0_66, %c0_67, %c0_68] : memref<4x1x32xf32, #tpu.memory_space<vmem>>, vector<1x1x32xf32>
    %141 = vector.shape_cast %140 : vector<1x1x32xf32> to vector<1x32xf32>
    %c0_69 = arith.constant 0 : index
    %c0_70 = arith.constant 0 : index
    %c0_71 = arith.constant 0 : index
    %142 = vector.load %arg12[%c0_69, %c0_70, %c0_71] : memref<4x1x32xf32, #tpu.memory_space<vmem>>, vector<1x1x32xf32>
    %143 = vector.shape_cast %142 : vector<1x1x32xf32> to vector<1x32xf32>
    %cst_72 = arith.constant dense<0.000000e+00> : vector<16xf32>
    %144 = vector.multi_reduction <add>, %139, %cst_72 [1] : vector<16x32xf32> to vector<16xf32>
    %145 = vector.shape_cast %144 : vector<16xf32> to vector<16x1xf32>
    %cst_73 = arith.constant 3.200000e+01 : f32
    %146 = vector.broadcast %cst_73 : f32 to vector<16x1xf32>
    %147 = arith.divf %145, %146 : vector<16x1xf32>
    %148 = vector.broadcast %147 : vector<16x1xf32> to vector<16x32xf32>
    %149 = arith.subf %139, %148 : vector<16x32xf32>
    %150 = arith.mulf %149, %149 : vector<16x32xf32>
    %cst_74 = arith.constant dense<0.000000e+00> : vector<16xf32>
    %151 = vector.multi_reduction <add>, %150, %cst_74 [1] : vector<16x32xf32> to vector<16xf32>
    %152 = vector.shape_cast %151 : vector<16xf32> to vector<16x1xf32>
    %cst_75 = arith.constant 3.200000e+01 : f32
    %153 = vector.broadcast %cst_75 : f32 to vector<16x1xf32>
    %154 = arith.divf %152, %153 : vector<16x1xf32>
    %155 = vector.broadcast %147 : vector<16x1xf32> to vector<16x32xf32>
    %156 = arith.subf %139, %155 : vector<16x32xf32>
    %cst_76 = arith.constant 9.99999974E-6 : f32
    %157 = vector.broadcast %cst_76 : f32 to vector<16x1xf32>
    %158 = arith.addf %154, %157 : vector<16x1xf32>
    %159 = math.rsqrt %158 : vector<16x1xf32>
    %160 = vector.broadcast %159 : vector<16x1xf32> to vector<16x32xf32>
    %161 = arith.mulf %156, %160 : vector<16x32xf32>
    %162 = vector.broadcast %141 : vector<1x32xf32> to vector<16x32xf32>
    %163 = arith.mulf %161, %162 : vector<16x32xf32>
    %164 = vector.broadcast %143 : vector<1x32xf32> to vector<16x32xf32>
    %165 = arith.addf %163, %164 : vector<16x32xf32>
    %c1 = arith.constant 1 : index
    %c0_77 = arith.constant 0 : index
    %c0_78 = arith.constant 0 : index
    %166 = vector.load %arg1[%c1, %c0_77, %c0_78] : memref<4x32x96xf32, #tpu.memory_space<vmem>>, vector<1x32x96xf32>
    %167 = vector.shape_cast %166 : vector<1x32x96xf32> to vector<32x96xf32>
    %cst_79 = arith.constant dense<0.000000e+00> : vector<16x96xf32>
    %168 = tpu.matmul %165, %167, %cst_79 {dimension_numbers = #tpu.dot_dimension_numbers<[1], [0], [0], [1], [0, 0, 1, 1], [], []>} : vector<16x32xf32>, vector<32x96xf32>, vector<16x96xf32> -> vector<16x96xf32>
    %c1_80 = arith.constant 1 : index
    %c0_81 = arith.constant 0 : index
    %c0_82 = arith.constant 0 : index
    %169 = vector.load %arg2[%c1_80, %c0_81, %c0_82] : memref<4x1x96xf32, #tpu.memory_space<vmem>>, vector<1x1x96xf32>
    %170 = vector.shape_cast %169 : vector<1x1x96xf32> to vector<1x96xf32>
    %171 = vector.broadcast %170 : vector<1x96xf32> to vector<16x96xf32>
    %172 = arith.addf %168, %171 : vector<16x96xf32>
    %173 = vector.shape_cast %172 : vector<16x96xf32> to vector<2x8x96xf32>
    %cst_83 = arith.constant 0.000000e+00 : f32
    %174 = vector.broadcast %cst_83 : f32 to vector<2x8x8xf32>
    %175 = vector.extract_strided_slice %173 {offsets = [0, 0, 0], sizes = [2, 8, 8], strides = [1, 1, 1]} : vector<2x8x96xf32> to vector<2x8x8xf32>
    %176 = vector.extract_strided_slice %173 {offsets = [0, 0, 32], sizes = [2, 8, 8], strides = [1, 1, 1]} : vector<2x8x96xf32> to vector<2x8x8xf32>
    %177 = vector.extract_strided_slice %173 {offsets = [0, 0, 64], sizes = [2, 8, 8], strides = [1, 1, 1]} : vector<2x8x96xf32> to vector<2x8x8xf32>
    "tpu.trace_start"() <{level = 10 : i32, message = "bqd,bkd->bqk"}> : () -> ()
    %cst_84 = arith.constant dense<0.000000e+00> : vector<2x8x8xf32>
    %178 = tpu.matmul %175, %176, %cst_84 {dimension_numbers = #tpu.dot_dimension_numbers<[2], [2], [1], [1], [0, 0, 0, 1, 1, 1], [0], [0]>} : vector<2x8x8xf32>, vector<2x8x8xf32>, vector<2x8x8xf32> -> vector<2x8x8xf32>
    "tpu.trace_stop"() : () -> ()
    %cst_85 = arith.constant 0.353553385 : f32
    %179 = vector.broadcast %cst_85 : f32 to vector<2x8x8xf32>
    %180 = arith.mulf %178, %179 : vector<2x8x8xf32>
    %cst_86 = arith.constant dense<0xFF800000> : vector<2x8xf32>
    %181 = vector.multi_reduction <maximumf>, %180, %cst_86 [2] : vector<2x8x8xf32> to vector<2x8xf32>
    %182 = vector.shape_cast %181 : vector<2x8xf32> to vector<2x8x1xf32>
    %183 = vector.broadcast %182 : vector<2x8x1xf32> to vector<2x8x8xf32>
    %184 = arith.subf %180, %183 : vector<2x8x8xf32>
    %185 = math.exp %184 : vector<2x8x8xf32>
    %cst_87 = arith.constant dense<0.000000e+00> : vector<2x8xf32>
    %186 = vector.multi_reduction <add>, %185, %cst_87 [2] : vector<2x8x8xf32> to vector<2x8xf32>
    %187 = vector.shape_cast %186 : vector<2x8xf32> to vector<2x8x1xf32>
    %188 = tpu.reciprocal %187 {approx = true} : vector<2x8x1xf32> -> vector<2x8x1xf32>
    %189 = vector.broadcast %188 : vector<2x8x1xf32> to vector<2x8x8xf32>
    %190 = arith.mulf %185, %189 : vector<2x8x8xf32>
    %191 = arith.addf %174, %190 : vector<2x8x8xf32>
    "tpu.trace_start"() <{level = 10 : i32, message = "bqk,bkd->bqd"}> : () -> ()
    %cst_88 = arith.constant dense<0.000000e+00> : vector<2x8x8xf32>
    %192 = tpu.matmul %190, %177, %cst_88 {dimension_numbers = #tpu.dot_dimension_numbers<[2], [1], [1], [2], [0, 0, 0, 1, 1, 2], [0], [0]>} : vector<2x8x8xf32>, vector<2x8x8xf32>, vector<2x8x8xf32> -> vector<2x8x8xf32>
    "tpu.trace_stop"() : () -> ()
    %193 = vector.extract_strided_slice %173 {offsets = [0, 0, 8], sizes = [2, 8, 8], strides = [1, 1, 1]} : vector<2x8x96xf32> to vector<2x8x8xf32>
    %194 = vector.extract_strided_slice %173 {offsets = [0, 0, 40], sizes = [2, 8, 8], strides = [1, 1, 1]} : vector<2x8x96xf32> to vector<2x8x8xf32>
    %195 = vector.extract_strided_slice %173 {offsets = [0, 0, 72], sizes = [2, 8, 8], strides = [1, 1, 1]} : vector<2x8x96xf32> to vector<2x8x8xf32>
    "tpu.trace_start"() <{level = 10 : i32, message = "bqd,bkd->bqk"}> : () -> ()
    %cst_89 = arith.constant dense<0.000000e+00> : vector<2x8x8xf32>
    %196 = tpu.matmul %193, %194, %cst_89 {dimension_numbers = #tpu.dot_dimension_numbers<[2], [2], [1], [1], [0, 0, 0, 1, 1, 1], [0], [0]>} : vector<2x8x8xf32>, vector<2x8x8xf32>, vector<2x8x8xf32> -> vector<2x8x8xf32>
    "tpu.trace_stop"() : () -> ()
    %cst_90 = arith.constant 0.353553385 : f32
    %197 = vector.broadcast %cst_90 : f32 to vector<2x8x8xf32>
    %198 = arith.mulf %196, %197 : vector<2x8x8xf32>
    %cst_91 = arith.constant dense<0xFF800000> : vector<2x8xf32>
    %199 = vector.multi_reduction <maximumf>, %198, %cst_91 [2] : vector<2x8x8xf32> to vector<2x8xf32>
    %200 = vector.shape_cast %199 : vector<2x8xf32> to vector<2x8x1xf32>
    %201 = vector.broadcast %200 : vector<2x8x1xf32> to vector<2x8x8xf32>
    %202 = arith.subf %198, %201 : vector<2x8x8xf32>
    %203 = math.exp %202 : vector<2x8x8xf32>
    %cst_92 = arith.constant dense<0.000000e+00> : vector<2x8xf32>
    %204 = vector.multi_reduction <add>, %203, %cst_92 [2] : vector<2x8x8xf32> to vector<2x8xf32>
    %205 = vector.shape_cast %204 : vector<2x8xf32> to vector<2x8x1xf32>
    %206 = tpu.reciprocal %205 {approx = true} : vector<2x8x1xf32> -> vector<2x8x1xf32>
    %207 = vector.broadcast %206 : vector<2x8x1xf32> to vector<2x8x8xf32>
    %208 = arith.mulf %203, %207 : vector<2x8x8xf32>
    %209 = arith.addf %191, %208 : vector<2x8x8xf32>
    "tpu.trace_start"() <{level = 10 : i32, message = "bqk,bkd->bqd"}> : () -> ()
    %cst_93 = arith.constant dense<0.000000e+00> : vector<2x8x8xf32>
    %210 = tpu.matmul %208, %195, %cst_93 {dimension_numbers = #tpu.dot_dimension_numbers<[2], [1], [1], [2], [0, 0, 0, 1, 1, 2], [0], [0]>} : vector<2x8x8xf32>, vector<2x8x8xf32>, vector<2x8x8xf32> -> vector<2x8x8xf32>
    "tpu.trace_stop"() : () -> ()
    %211 = vector.extract_strided_slice %173 {offsets = [0, 0, 16], sizes = [2, 8, 8], strides = [1, 1, 1]} : vector<2x8x96xf32> to vector<2x8x8xf32>
    %212 = vector.extract_strided_slice %173 {offsets = [0, 0, 48], sizes = [2, 8, 8], strides = [1, 1, 1]} : vector<2x8x96xf32> to vector<2x8x8xf32>
    %213 = vector.extract_strided_slice %173 {offsets = [0, 0, 80], sizes = [2, 8, 8], strides = [1, 1, 1]} : vector<2x8x96xf32> to vector<2x8x8xf32>
    "tpu.trace_start"() <{level = 10 : i32, message = "bqd,bkd->bqk"}> : () -> ()
    %cst_94 = arith.constant dense<0.000000e+00> : vector<2x8x8xf32>
    %214 = tpu.matmul %211, %212, %cst_94 {dimension_numbers = #tpu.dot_dimension_numbers<[2], [2], [1], [1], [0, 0, 0, 1, 1, 1], [0], [0]>} : vector<2x8x8xf32>, vector<2x8x8xf32>, vector<2x8x8xf32> -> vector<2x8x8xf32>
    "tpu.trace_stop"() : () -> ()
    %cst_95 = arith.constant 0.353553385 : f32
    %215 = vector.broadcast %cst_95 : f32 to vector<2x8x8xf32>
    %216 = arith.mulf %214, %215 : vector<2x8x8xf32>
    %cst_96 = arith.constant dense<0xFF800000> : vector<2x8xf32>
    %217 = vector.multi_reduction <maximumf>, %216, %cst_96 [2] : vector<2x8x8xf32> to vector<2x8xf32>
    %218 = vector.shape_cast %217 : vector<2x8xf32> to vector<2x8x1xf32>
    %219 = vector.broadcast %218 : vector<2x8x1xf32> to vector<2x8x8xf32>
    %220 = arith.subf %216, %219 : vector<2x8x8xf32>
    %221 = math.exp %220 : vector<2x8x8xf32>
    %cst_97 = arith.constant dense<0.000000e+00> : vector<2x8xf32>
    %222 = vector.multi_reduction <add>, %221, %cst_97 [2] : vector<2x8x8xf32> to vector<2x8xf32>
    %223 = vector.shape_cast %222 : vector<2x8xf32> to vector<2x8x1xf32>
    %224 = tpu.reciprocal %223 {approx = true} : vector<2x8x1xf32> -> vector<2x8x1xf32>
    %225 = vector.broadcast %224 : vector<2x8x1xf32> to vector<2x8x8xf32>
    %226 = arith.mulf %221, %225 : vector<2x8x8xf32>
    %227 = arith.addf %209, %226 : vector<2x8x8xf32>
    "tpu.trace_start"() <{level = 10 : i32, message = "bqk,bkd->bqd"}> : () -> ()
    %cst_98 = arith.constant dense<0.000000e+00> : vector<2x8x8xf32>
    %228 = tpu.matmul %226, %213, %cst_98 {dimension_numbers = #tpu.dot_dimension_numbers<[2], [1], [1], [2], [0, 0, 0, 1, 1, 2], [0], [0]>} : vector<2x8x8xf32>, vector<2x8x8xf32>, vector<2x8x8xf32> -> vector<2x8x8xf32>
    "tpu.trace_stop"() : () -> ()
    %229 = vector.extract_strided_slice %173 {offsets = [0, 0, 24], sizes = [2, 8, 8], strides = [1, 1, 1]} : vector<2x8x96xf32> to vector<2x8x8xf32>
    %230 = vector.extract_strided_slice %173 {offsets = [0, 0, 56], sizes = [2, 8, 8], strides = [1, 1, 1]} : vector<2x8x96xf32> to vector<2x8x8xf32>
    %231 = vector.extract_strided_slice %173 {offsets = [0, 0, 88], sizes = [2, 8, 8], strides = [1, 1, 1]} : vector<2x8x96xf32> to vector<2x8x8xf32>
    "tpu.trace_start"() <{level = 10 : i32, message = "bqd,bkd->bqk"}> : () -> ()
    %cst_99 = arith.constant dense<0.000000e+00> : vector<2x8x8xf32>
    %232 = tpu.matmul %229, %230, %cst_99 {dimension_numbers = #tpu.dot_dimension_numbers<[2], [2], [1], [1], [0, 0, 0, 1, 1, 1], [0], [0]>} : vector<2x8x8xf32>, vector<2x8x8xf32>, vector<2x8x8xf32> -> vector<2x8x8xf32>
    "tpu.trace_stop"() : () -> ()
    %cst_100 = arith.constant 0.353553385 : f32
    %233 = vector.broadcast %cst_100 : f32 to vector<2x8x8xf32>
    %234 = arith.mulf %232, %233 : vector<2x8x8xf32>
    %cst_101 = arith.constant dense<0xFF800000> : vector<2x8xf32>
    %235 = vector.multi_reduction <maximumf>, %234, %cst_101 [2] : vector<2x8x8xf32> to vector<2x8xf32>
    %236 = vector.shape_cast %235 : vector<2x8xf32> to vector<2x8x1xf32>
    %237 = vector.broadcast %236 : vector<2x8x1xf32> to vector<2x8x8xf32>
    %238 = arith.subf %234, %237 : vector<2x8x8xf32>
    %239 = math.exp %238 : vector<2x8x8xf32>
    %cst_102 = arith.constant dense<0.000000e+00> : vector<2x8xf32>
    %240 = vector.multi_reduction <add>, %239, %cst_102 [2] : vector<2x8x8xf32> to vector<2x8xf32>
    %241 = vector.shape_cast %240 : vector<2x8xf32> to vector<2x8x1xf32>
    %242 = tpu.reciprocal %241 {approx = true} : vector<2x8x1xf32> -> vector<2x8x1xf32>
    %243 = vector.broadcast %242 : vector<2x8x1xf32> to vector<2x8x8xf32>
    %244 = arith.mulf %239, %243 : vector<2x8x8xf32>
    %245 = arith.addf %227, %244 : vector<2x8x8xf32>
    "tpu.trace_start"() <{level = 10 : i32, message = "bqk,bkd->bqd"}> : () -> ()
    %cst_103 = arith.constant dense<0.000000e+00> : vector<2x8x8xf32>
    %246 = tpu.matmul %244, %231, %cst_103 {dimension_numbers = #tpu.dot_dimension_numbers<[2], [1], [1], [2], [0, 0, 0, 1, 1, 2], [0], [0]>} : vector<2x8x8xf32>, vector<2x8x8xf32>, vector<2x8x8xf32> -> vector<2x8x8xf32>
    "tpu.trace_stop"() : () -> ()
    %cst_104 = arith.constant 2.500000e-01 : f32
    %247 = vector.broadcast %cst_104 : f32 to vector<2x8x8xf32>
    %248 = arith.mulf %245, %247 : vector<2x8x8xf32>
    %c1_105 = arith.constant 1 : index
    %c0_106 = arith.constant 0 : index
    %c0_107 = arith.constant 0 : index
    %c0_108 = arith.constant 0 : index
    %249 = vector.load %arg14[%c1_105, %c0_106, %c0_107, %c0_108] : memref<4x2x8x8xf32, #tpu.memory_space<vmem>>, vector<1x2x8x8xf32>
    %250 = vector.shape_cast %249 : vector<1x2x8x8xf32> to vector<2x8x8xf32>
    %251 = vector.shape_cast %248 : vector<2x8x8xf32> to vector<1x2x8x8xf32>
    tpu.vector_store %arg14[%c1_105, %c0_106, %c0_107, %c0_108], %251 {strides = array<i32>} : memref<4x2x8x8xf32, #tpu.memory_space<vmem>>, vector<1x2x8x8xf32>,
    %252 = tpu.concatenate %192, %210, %228, %246 in 2 : vector<2x8x8xf32>, vector<2x8x8xf32>, vector<2x8x8xf32>, vector<2x8x8xf32> -> vector<2x8x32xf32>
    %253 = vector.shape_cast %252 : vector<2x8x32xf32> to vector<16x32xf32>
    %c1_109 = arith.constant 1 : index
    %c0_110 = arith.constant 0 : index
    %c0_111 = arith.constant 0 : index
    %254 = vector.load %arg3[%c1_109, %c0_110, %c0_111] : memref<4x32x32xf32, #tpu.memory_space<vmem>>, vector<1x32x32xf32>
    %255 = vector.shape_cast %254 : vector<1x32x32xf32> to vector<32x32xf32>
    %cst_112 = arith.constant dense<0.000000e+00> : vector<16x32xf32>
    %256 = tpu.matmul %253, %255, %cst_112 {dimension_numbers = #tpu.dot_dimension_numbers<[1], [0], [0], [1], [0, 0, 1, 1], [], []>} : vector<16x32xf32>, vector<32x32xf32>, vector<16x32xf32> -> vector<16x32xf32>
    %c1_113 = arith.constant 1 : index
    %c0_114 = arith.constant 0 : index
    %c0_115 = arith.constant 0 : index
    %257 = vector.load %arg4[%c1_113, %c0_114, %c0_115] : memref<4x1x32xf32, #tpu.memory_space<vmem>>, vector<1x1x32xf32>
    %258 = vector.shape_cast %257 : vector<1x1x32xf32> to vector<1x32xf32>
    %259 = vector.broadcast %258 : vector<1x32xf32> to vector<16x32xf32>
    %260 = arith.addf %256, %259 : vector<16x32xf32>
    %261 = arith.addf %165, %260 : vector<16x32xf32>
    %c1_116 = arith.constant 1 : index
    %c0_117 = arith.constant 0 : index
    %c0_118 = arith.constant 0 : index
    %262 = vector.load %arg9[%c1_116, %c0_117, %c0_118] : memref<4x1x32xf32, #tpu.memory_space<vmem>>, vector<1x1x32xf32>
    %263 = vector.shape_cast %262 : vector<1x1x32xf32> to vector<1x32xf32>
    %c1_119 = arith.constant 1 : index
    %c0_120 = arith.constant 0 : index
    %c0_121 = arith.constant 0 : index
    %264 = vector.load %arg10[%c1_119, %c0_120, %c0_121] : memref<4x1x32xf32, #tpu.memory_space<vmem>>, vector<1x1x32xf32>
    %265 = vector.shape_cast %264 : vector<1x1x32xf32> to vector<1x32xf32>
    %cst_122 = arith.constant dense<0.000000e+00> : vector<16xf32>
    %266 = vector.multi_reduction <add>, %261, %cst_122 [1] : vector<16x32xf32> to vector<16xf32>
    %267 = vector.shape_cast %266 : vector<16xf32> to vector<16x1xf32>
    %cst_123 = arith.constant 3.200000e+01 : f32
    %268 = vector.broadcast %cst_123 : f32 to vector<16x1xf32>
    %269 = arith.divf %267, %268 : vector<16x1xf32>
    %270 = vector.broadcast %269 : vector<16x1xf32> to vector<16x32xf32>
    %271 = arith.subf %261, %270 : vector<16x32xf32>
    %272 = arith.mulf %271, %271 : vector<16x32xf32>
    %cst_124 = arith.constant dense<0.000000e+00> : vector<16xf32>
    %273 = vector.multi_reduction <add>, %272, %cst_124 [1] : vector<16x32xf32> to vector<16xf32>
    %274 = vector.shape_cast %273 : vector<16xf32> to vector<16x1xf32>
    %cst_125 = arith.constant 3.200000e+01 : f32
    %275 = vector.broadcast %cst_125 : f32 to vector<16x1xf32>
    %276 = arith.divf %274, %275 : vector<16x1xf32>
    %277 = vector.broadcast %269 : vector<16x1xf32> to vector<16x32xf32>
    %278 = arith.subf %261, %277 : vector<16x32xf32>
    %cst_126 = arith.constant 9.99999974E-6 : f32
    %279 = vector.broadcast %cst_126 : f32 to vector<16x1xf32>
    %280 = arith.addf %276, %279 : vector<16x1xf32>
    %281 = math.rsqrt %280 : vector<16x1xf32>
    %282 = vector.broadcast %281 : vector<16x1xf32> to vector<16x32xf32>
    %283 = arith.mulf %278, %282 : vector<16x32xf32>
    %284 = vector.broadcast %263 : vector<1x32xf32> to vector<16x32xf32>
    %285 = arith.mulf %283, %284 : vector<16x32xf32>
    %286 = vector.broadcast %265 : vector<1x32xf32> to vector<16x32xf32>
    %287 = arith.addf %285, %286 : vector<16x32xf32>
    %c1_127 = arith.constant 1 : index
    %c0_128 = arith.constant 0 : index
    %c0_129 = arith.constant 0 : index
    %288 = vector.load %arg5[%c1_127, %c0_128, %c0_129] : memref<4x32x32xf32, #tpu.memory_space<vmem>>, vector<1x32x32xf32>
    %289 = vector.shape_cast %288 : vector<1x32x32xf32> to vector<32x32xf32>
    %cst_130 = arith.constant dense<0.000000e+00> : vector<16x32xf32>
    %290 = tpu.matmul %287, %289, %cst_130 {dimension_numbers = #tpu.dot_dimension_numbers<[1], [0], [0], [1], [0, 0, 1, 1], [], []>} : vector<16x32xf32>, vector<32x32xf32>, vector<16x32xf32> -> vector<16x32xf32>
    %c1_131 = arith.constant 1 : index
    %c0_132 = arith.constant 0 : index
    %c0_133 = arith.constant 0 : index
    %291 = vector.load %arg6[%c1_131, %c0_132, %c0_133] : memref<4x1x32xf32, #tpu.memory_space<vmem>>, vector<1x1x32xf32>
    %292 = vector.shape_cast %291 : vector<1x1x32xf32> to vector<1x32xf32>
    %293 = vector.broadcast %292 : vector<1x32xf32> to vector<16x32xf32>
    %294 = arith.addf %290, %293 : vector<16x32xf32>
    %cst_134 = arith.constant 0.000000e+00 : f32
    %295 = vector.broadcast %cst_134 : f32 to vector<16x32xf32>
    %296 = arith.maximumf %294, %295 : vector<16x32xf32>
    %c1_135 = arith.constant 1 : index
    %c0_136 = arith.constant 0 : index
    %c0_137 = arith.constant 0 : index
    %297 = vector.load %arg7[%c1_135, %c0_136, %c0_137] : memref<4x32x32xf32, #tpu.memory_space<vmem>>, vector<1x32x32xf32>
    %298 = vector.shape_cast %297 : vector<1x32x32xf32> to vector<32x32xf32>
    %cst_138 = arith.constant dense<0.000000e+00> : vector<16x32xf32>
    %299 = tpu.matmul %296, %298, %cst_138 {dimension_numbers = #tpu.dot_dimension_numbers<[1], [0], [0], [1], [0, 0, 1, 1], [], []>} : vector<16x32xf32>, vector<32x32xf32>, vector<16x32xf32> -> vector<16x32xf32>
    %c1_139 = arith.constant 1 : index
    %c0_140 = arith.constant 0 : index
    %c0_141 = arith.constant 0 : index
    %300 = vector.load %arg8[%c1_139, %c0_140, %c0_141] : memref<4x1x32xf32, #tpu.memory_space<vmem>>, vector<1x1x32xf32>
    %301 = vector.shape_cast %300 : vector<1x1x32xf32> to vector<1x32xf32>
    %302 = vector.broadcast %301 : vector<1x32xf32> to vector<16x32xf32>
    %303 = arith.addf %299, %302 : vector<16x32xf32>
    %304 = arith.addf %287, %303 : vector<16x32xf32>
    %c1_142 = arith.constant 1 : index
    %c0_143 = arith.constant 0 : index
    %c0_144 = arith.constant 0 : index
    %305 = vector.load %arg11[%c1_142, %c0_143, %c0_144] : memref<4x1x32xf32, #tpu.memory_space<vmem>>, vector<1x1x32xf32>
    %306 = vector.shape_cast %305 : vector<1x1x32xf32> to vector<1x32xf32>
    %c1_145 = arith.constant 1 : index
    %c0_146 = arith.constant 0 : index
    %c0_147 = arith.constant 0 : index
    %307 = vector.load %arg12[%c1_145, %c0_146, %c0_147] : memref<4x1x32xf32, #tpu.memory_space<vmem>>, vector<1x1x32xf32>
    %308 = vector.shape_cast %307 : vector<1x1x32xf32> to vector<1x32xf32>
    %cst_148 = arith.constant dense<0.000000e+00> : vector<16xf32>
    %309 = vector.multi_reduction <add>, %304, %cst_148 [1] : vector<16x32xf32> to vector<16xf32>
    %310 = vector.shape_cast %309 : vector<16xf32> to vector<16x1xf32>
    %cst_149 = arith.constant 3.200000e+01 : f32
    %311 = vector.broadcast %cst_149 : f32 to vector<16x1xf32>
    %312 = arith.divf %310, %311 : vector<16x1xf32>
    %313 = vector.broadcast %312 : vector<16x1xf32> to vector<16x32xf32>
    %314 = arith.subf %304, %313 : vector<16x32xf32>
    %315 = arith.mulf %314, %314 : vector<16x32xf32>
    %cst_150 = arith.constant dense<0.000000e+00> : vector<16xf32>
    %316 = vector.multi_reduction <add>, %315, %cst_150 [1] : vector<16x32xf32> to vector<16xf32>
    %317 = vector.shape_cast %316 : vector<16xf32> to vector<16x1xf32>
    %cst_151 = arith.constant 3.200000e+01 : f32
    %318 = vector.broadcast %cst_151 : f32 to vector<16x1xf32>
    %319 = arith.divf %317, %318 : vector<16x1xf32>
    %320 = vector.broadcast %312 : vector<16x1xf32> to vector<16x32xf32>
    %321 = arith.subf %304, %320 : vector<16x32xf32>
    %cst_152 = arith.constant 9.99999974E-6 : f32
    %322 = vector.broadcast %cst_152 : f32 to vector<16x1xf32>
    %323 = arith.addf %319, %322 : vector<16x1xf32>
    %324 = math.rsqrt %323 : vector<16x1xf32>
    %325 = vector.broadcast %324 : vector<16x1xf32> to vector<16x32xf32>
    %326 = arith.mulf %321, %325 : vector<16x32xf32>
    %327 = vector.broadcast %306 : vector<1x32xf32> to vector<16x32xf32>
    %328 = arith.mulf %326, %327 : vector<16x32xf32>
    %329 = vector.broadcast %308 : vector<1x32xf32> to vector<16x32xf32>
    %330 = arith.addf %328, %329 : vector<16x32xf32>
    %c2 = arith.constant 2 : index
    %c0_153 = arith.constant 0 : index
    %c0_154 = arith.constant 0 : index
    %331 = vector.load %arg1[%c2, %c0_153, %c0_154] : memref<4x32x96xf32, #tpu.memory_space<vmem>>, vector<1x32x96xf32>
    %332 = vector.shape_cast %331 : vector<1x32x96xf32> to vector<32x96xf32>
    %cst_155 = arith.constant dense<0.000000e+00> : vector<16x96xf32>
    %333 = tpu.matmul %330, %332, %cst_155 {dimension_numbers = #tpu.dot_dimension_numbers<[1], [0], [0], [1], [0, 0, 1, 1], [], []>} : vector<16x32xf32>, vector<32x96xf32>, vector<16x96xf32> -> vector<16x96xf32>
    %c2_156 = arith.constant 2 : index
    %c0_157 = arith.constant 0 : index
    %c0_158 = arith.constant 0 : index
    %334 = vector.load %arg2[%c2_156, %c0_157, %c0_158] : memref<4x1x96xf32, #tpu.memory_space<vmem>>, vector<1x1x96xf32>
    %335 = vector.shape_cast %334 : vector<1x1x96xf32> to vector<1x96xf32>
    %336 = vector.broadcast %335 : vector<1x96xf32> to vector<16x96xf32>
    %337 = arith.addf %333, %336 : vector<16x96xf32>
    %338 = vector.shape_cast %337 : vector<16x96xf32> to vector<2x8x96xf32>
    %cst_159 = arith.constant 0.000000e+00 : f32
    %339 = vector.broadcast %cst_159 : f32 to vector<2x8x8xf32>
    %340 = vector.extract_strided_slice %338 {offsets = [0, 0, 0], sizes = [2, 8, 8], strides = [1, 1, 1]} : vector<2x8x96xf32> to vector<2x8x8xf32>
    %341 = vector.extract_strided_slice %338 {offsets = [0, 0, 32], sizes = [2, 8, 8], strides = [1, 1, 1]} : vector<2x8x96xf32> to vector<2x8x8xf32>
    %342 = vector.extract_strided_slice %338 {offsets = [0, 0, 64], sizes = [2, 8, 8], strides = [1, 1, 1]} : vector<2x8x96xf32> to vector<2x8x8xf32>
    "tpu.trace_start"() <{level = 10 : i32, message = "bqd,bkd->bqk"}> : () -> ()
    %cst_160 = arith.constant dense<0.000000e+00> : vector<2x8x8xf32>
    %343 = tpu.matmul %340, %341, %cst_160 {dimension_numbers = #tpu.dot_dimension_numbers<[2], [2], [1], [1], [0, 0, 0, 1, 1, 1], [0], [0]>} : vector<2x8x8xf32>, vector<2x8x8xf32>, vector<2x8x8xf32> -> vector<2x8x8xf32>
    "tpu.trace_stop"() : () -> ()
    %cst_161 = arith.constant 0.353553385 : f32
    %344 = vector.broadcast %cst_161 : f32 to vector<2x8x8xf32>
    %345 = arith.mulf %343, %344 : vector<2x8x8xf32>
    %cst_162 = arith.constant dense<0xFF800000> : vector<2x8xf32>
    %346 = vector.multi_reduction <maximumf>, %345, %cst_162 [2] : vector<2x8x8xf32> to vector<2x8xf32>
    %347 = vector.shape_cast %346 : vector<2x8xf32> to vector<2x8x1xf32>
    %348 = vector.broadcast %347 : vector<2x8x1xf32> to vector<2x8x8xf32>
    %349 = arith.subf %345, %348 : vector<2x8x8xf32>
    %350 = math.exp %349 : vector<2x8x8xf32>
    %cst_163 = arith.constant dense<0.000000e+00> : vector<2x8xf32>
    %351 = vector.multi_reduction <add>, %350, %cst_163 [2] : vector<2x8x8xf32> to vector<2x8xf32>
    %352 = vector.shape_cast %351 : vector<2x8xf32> to vector<2x8x1xf32>
    %353 = tpu.reciprocal %352 {approx = true} : vector<2x8x1xf32> -> vector<2x8x1xf32>
    %354 = vector.broadcast %353 : vector<2x8x1xf32> to vector<2x8x8xf32>
    %355 = arith.mulf %350, %354 : vector<2x8x8xf32>
    %356 = arith.addf %339, %355 : vector<2x8x8xf32>
    "tpu.trace_start"() <{level = 10 : i32, message = "bqk,bkd->bqd"}> : () -> ()
    %cst_164 = arith.constant dense<0.000000e+00> : vector<2x8x8xf32>
    %357 = tpu.matmul %355, %342, %cst_164 {dimension_numbers = #tpu.dot_dimension_numbers<[2], [1], [1], [2], [0, 0, 0, 1, 1, 2], [0], [0]>} : vector<2x8x8xf32>, vector<2x8x8xf32>, vector<2x8x8xf32> -> vector<2x8x8xf32>
    "tpu.trace_stop"() : () -> ()
    %358 = vector.extract_strided_slice %338 {offsets = [0, 0, 8], sizes = [2, 8, 8], strides = [1, 1, 1]} : vector<2x8x96xf32> to vector<2x8x8xf32>
    %359 = vector.extract_strided_slice %338 {offsets = [0, 0, 40], sizes = [2, 8, 8], strides = [1, 1, 1]} : vector<2x8x96xf32> to vector<2x8x8xf32>
    %360 = vector.extract_strided_slice %338 {offsets = [0, 0, 72], sizes = [2, 8, 8], strides = [1, 1, 1]} : vector<2x8x96xf32> to vector<2x8x8xf32>
    "tpu.trace_start"() <{level = 10 : i32, message = "bqd,bkd->bqk"}> : () -> ()
    %cst_165 = arith.constant dense<0.000000e+00> : vector<2x8x8xf32>
    %361 = tpu.matmul %358, %359, %cst_165 {dimension_numbers = #tpu.dot_dimension_numbers<[2], [2], [1], [1], [0, 0, 0, 1, 1, 1], [0], [0]>} : vector<2x8x8xf32>, vector<2x8x8xf32>, vector<2x8x8xf32> -> vector<2x8x8xf32>
    "tpu.trace_stop"() : () -> ()
    %cst_166 = arith.constant 0.353553385 : f32
    %362 = vector.broadcast %cst_166 : f32 to vector<2x8x8xf32>
    %363 = arith.mulf %361, %362 : vector<2x8x8xf32>
    %cst_167 = arith.constant dense<0xFF800000> : vector<2x8xf32>
    %364 = vector.multi_reduction <maximumf>, %363, %cst_167 [2] : vector<2x8x8xf32> to vector<2x8xf32>
    %365 = vector.shape_cast %364 : vector<2x8xf32> to vector<2x8x1xf32>
    %366 = vector.broadcast %365 : vector<2x8x1xf32> to vector<2x8x8xf32>
    %367 = arith.subf %363, %366 : vector<2x8x8xf32>
    %368 = math.exp %367 : vector<2x8x8xf32>
    %cst_168 = arith.constant dense<0.000000e+00> : vector<2x8xf32>
    %369 = vector.multi_reduction <add>, %368, %cst_168 [2] : vector<2x8x8xf32> to vector<2x8xf32>
    %370 = vector.shape_cast %369 : vector<2x8xf32> to vector<2x8x1xf32>
    %371 = tpu.reciprocal %370 {approx = true} : vector<2x8x1xf32> -> vector<2x8x1xf32>
    %372 = vector.broadcast %371 : vector<2x8x1xf32> to vector<2x8x8xf32>
    %373 = arith.mulf %368, %372 : vector<2x8x8xf32>
    %374 = arith.addf %356, %373 : vector<2x8x8xf32>
    "tpu.trace_start"() <{level = 10 : i32, message = "bqk,bkd->bqd"}> : () -> ()
    %cst_169 = arith.constant dense<0.000000e+00> : vector<2x8x8xf32>
    %375 = tpu.matmul %373, %360, %cst_169 {dimension_numbers = #tpu.dot_dimension_numbers<[2], [1], [1], [2], [0, 0, 0, 1, 1, 2], [0], [0]>} : vector<2x8x8xf32>, vector<2x8x8xf32>, vector<2x8x8xf32> -> vector<2x8x8xf32>
    "tpu.trace_stop"() : () -> ()
    %376 = vector.extract_strided_slice %338 {offsets = [0, 0, 16], sizes = [2, 8, 8], strides = [1, 1, 1]} : vector<2x8x96xf32> to vector<2x8x8xf32>
    %377 = vector.extract_strided_slice %338 {offsets = [0, 0, 48], sizes = [2, 8, 8], strides = [1, 1, 1]} : vector<2x8x96xf32> to vector<2x8x8xf32>
    %378 = vector.extract_strided_slice %338 {offsets = [0, 0, 80], sizes = [2, 8, 8], strides = [1, 1, 1]} : vector<2x8x96xf32> to vector<2x8x8xf32>
    "tpu.trace_start"() <{level = 10 : i32, message = "bqd,bkd->bqk"}> : () -> ()
    %cst_170 = arith.constant dense<0.000000e+00> : vector<2x8x8xf32>
    %379 = tpu.matmul %376, %377, %cst_170 {dimension_numbers = #tpu.dot_dimension_numbers<[2], [2], [1], [1], [0, 0, 0, 1, 1, 1], [0], [0]>} : vector<2x8x8xf32>, vector<2x8x8xf32>, vector<2x8x8xf32> -> vector<2x8x8xf32>
    "tpu.trace_stop"() : () -> ()
    %cst_171 = arith.constant 0.353553385 : f32
    %380 = vector.broadcast %cst_171 : f32 to vector<2x8x8xf32>
    %381 = arith.mulf %379, %380 : vector<2x8x8xf32>
    %cst_172 = arith.constant dense<0xFF800000> : vector<2x8xf32>
    %382 = vector.multi_reduction <maximumf>, %381, %cst_172 [2] : vector<2x8x8xf32> to vector<2x8xf32>
    %383 = vector.shape_cast %382 : vector<2x8xf32> to vector<2x8x1xf32>
    %384 = vector.broadcast %383 : vector<2x8x1xf32> to vector<2x8x8xf32>
    %385 = arith.subf %381, %384 : vector<2x8x8xf32>
    %386 = math.exp %385 : vector<2x8x8xf32>
    %cst_173 = arith.constant dense<0.000000e+00> : vector<2x8xf32>
    %387 = vector.multi_reduction <add>, %386, %cst_173 [2] : vector<2x8x8xf32> to vector<2x8xf32>
    %388 = vector.shape_cast %387 : vector<2x8xf32> to vector<2x8x1xf32>
    %389 = tpu.reciprocal %388 {approx = true} : vector<2x8x1xf32> -> vector<2x8x1xf32>
    %390 = vector.broadcast %389 : vector<2x8x1xf32> to vector<2x8x8xf32>
    %391 = arith.mulf %386, %390 : vector<2x8x8xf32>
    %392 = arith.addf %374, %391 : vector<2x8x8xf32>
    "tpu.trace_start"() <{level = 10 : i32, message = "bqk,bkd->bqd"}> : () -> ()
    %cst_174 = arith.constant dense<0.000000e+00> : vector<2x8x8xf32>
    %393 = tpu.matmul %391, %378, %cst_174 {dimension_numbers = #tpu.dot_dimension_numbers<[2], [1], [1], [2], [0, 0, 0, 1, 1, 2], [0], [0]>} : vector<2x8x8xf32>, vector<2x8x8xf32>, vector<2x8x8xf32> -> vector<2x8x8xf32>
    "tpu.trace_stop"() : () -> ()
    %394 = vector.extract_strided_slice %338 {offsets = [0, 0, 24], sizes = [2, 8, 8], strides = [1, 1, 1]} : vector<2x8x96xf32> to vector<2x8x8xf32>
    %395 = vector.extract_strided_slice %338 {offsets = [0, 0, 56], sizes = [2, 8, 8], strides = [1, 1, 1]} : vector<2x8x96xf32> to vector<2x8x8xf32>
    %396 = vector.extract_strided_slice %338 {offsets = [0, 0, 88], sizes = [2, 8, 8], strides = [1, 1, 1]} : vector<2x8x96xf32> to vector<2x8x8xf32>
    "tpu.trace_start"() <{level = 10 : i32, message = "bqd,bkd->bqk"}> : () -> ()
    %cst_175 = arith.constant dense<0.000000e+00> : vector<2x8x8xf32>
    %397 = tpu.matmul %394, %395, %cst_175 {dimension_numbers = #tpu.dot_dimension_numbers<[2], [2], [1], [1], [0, 0, 0, 1, 1, 1], [0], [0]>} : vector<2x8x8xf32>, vector<2x8x8xf32>, vector<2x8x8xf32> -> vector<2x8x8xf32>
    "tpu.trace_stop"() : () -> ()
    %cst_176 = arith.constant 0.353553385 : f32
    %398 = vector.broadcast %cst_176 : f32 to vector<2x8x8xf32>
    %399 = arith.mulf %397, %398 : vector<2x8x8xf32>
    %cst_177 = arith.constant dense<0xFF800000> : vector<2x8xf32>
    %400 = vector.multi_reduction <maximumf>, %399, %cst_177 [2] : vector<2x8x8xf32> to vector<2x8xf32>
    %401 = vector.shape_cast %400 : vector<2x8xf32> to vector<2x8x1xf32>
    %402 = vector.broadcast %401 : vector<2x8x1xf32> to vector<2x8x8xf32>
    %403 = arith.subf %399, %402 : vector<2x8x8xf32>
    %404 = math.exp %403 : vector<2x8x8xf32>
    %cst_178 = arith.constant dense<0.000000e+00> : vector<2x8xf32>
    %405 = vector.multi_reduction <add>, %404, %cst_178 [2] : vector<2x8x8xf32> to vector<2x8xf32>
    %406 = vector.shape_cast %405 : vector<2x8xf32> to vector<2x8x1xf32>
    %407 = tpu.reciprocal %406 {approx = true} : vector<2x8x1xf32> -> vector<2x8x1xf32>
    %408 = vector.broadcast %407 : vector<2x8x1xf32> to vector<2x8x8xf32>
    %409 = arith.mulf %404, %408 : vector<2x8x8xf32>
    %410 = arith.addf %392, %409 : vector<2x8x8xf32>
    "tpu.trace_start"() <{level = 10 : i32, message = "bqk,bkd->bqd"}> : () -> ()
    %cst_179 = arith.constant dense<0.000000e+00> : vector<2x8x8xf32>
    %411 = tpu.matmul %409, %396, %cst_179 {dimension_numbers = #tpu.dot_dimension_numbers<[2], [1], [1], [2], [0, 0, 0, 1, 1, 2], [0], [0]>} : vector<2x8x8xf32>, vector<2x8x8xf32>, vector<2x8x8xf32> -> vector<2x8x8xf32>
    "tpu.trace_stop"() : () -> ()
    %cst_180 = arith.constant 2.500000e-01 : f32
    %412 = vector.broadcast %cst_180 : f32 to vector<2x8x8xf32>
    %413 = arith.mulf %410, %412 : vector<2x8x8xf32>
    %c2_181 = arith.constant 2 : index
    %c0_182 = arith.constant 0 : index
    %c0_183 = arith.constant 0 : index
    %c0_184 = arith.constant 0 : index
    %414 = vector.load %arg14[%c2_181, %c0_182, %c0_183, %c0_184] : memref<4x2x8x8xf32, #tpu.memory_space<vmem>>, vector<1x2x8x8xf32>
    %415 = vector.shape_cast %414 : vector<1x2x8x8xf32> to vector<2x8x8xf32>
    %416 = vector.shape_cast %413 : vector<2x8x8xf32> to vector<1x2x8x8xf32>
    tpu.vector_store %arg14[%c2_181, %c0_182, %c0_183, %c0_184], %416 {strides = array<i32>} : memref<4x2x8x8xf32, #tpu.memory_space<vmem>>, vector<1x2x8x8xf32>,
    %417 = tpu.concatenate %357, %375, %393, %411 in 2 : vector<2x8x8xf32>, vector<2x8x8xf32>, vector<2x8x8xf32>, vector<2x8x8xf32> -> vector<2x8x32xf32>
    %418 = vector.shape_cast %417 : vector<2x8x32xf32> to vector<16x32xf32>
    %c2_185 = arith.constant 2 : index
    %c0_186 = arith.constant 0 : index
    %c0_187 = arith.constant 0 : index
    %419 = vector.load %arg3[%c2_185, %c0_186, %c0_187] : memref<4x32x32xf32, #tpu.memory_space<vmem>>, vector<1x32x32xf32>
    %420 = vector.shape_cast %419 : vector<1x32x32xf32> to vector<32x32xf32>
    %cst_188 = arith.constant dense<0.000000e+00> : vector<16x32xf32>
    %421 = tpu.matmul %418, %420, %cst_188 {dimension_numbers = #tpu.dot_dimension_numbers<[1], [0], [0], [1], [0, 0, 1, 1], [], []>} : vector<16x32xf32>, vector<32x32xf32>, vector<16x32xf32> -> vector<16x32xf32>
    %c2_189 = arith.constant 2 : index
    %c0_190 = arith.constant 0 : index
    %c0_191 = arith.constant 0 : index
    %422 = vector.load %arg4[%c2_189, %c0_190, %c0_191] : memref<4x1x32xf32, #tpu.memory_space<vmem>>, vector<1x1x32xf32>
    %423 = vector.shape_cast %422 : vector<1x1x32xf32> to vector<1x32xf32>
    %424 = vector.broadcast %423 : vector<1x32xf32> to vector<16x32xf32>
    %425 = arith.addf %421, %424 : vector<16x32xf32>
    %426 = arith.addf %330, %425 : vector<16x32xf32>
    %c2_192 = arith.constant 2 : index
    %c0_193 = arith.constant 0 : index
    %c0_194 = arith.constant 0 : index
    %427 = vector.load %arg9[%c2_192, %c0_193, %c0_194] : memref<4x1x32xf32, #tpu.memory_space<vmem>>, vector<1x1x32xf32>
    %428 = vector.shape_cast %427 : vector<1x1x32xf32> to vector<1x32xf32>
    %c2_195 = arith.constant 2 : index
    %c0_196 = arith.constant 0 : index
    %c0_197 = arith.constant 0 : index
    %429 = vector.load %arg10[%c2_195, %c0_196, %c0_197] : memref<4x1x32xf32, #tpu.memory_space<vmem>>, vector<1x1x32xf32>
    %430 = vector.shape_cast %429 : vector<1x1x32xf32> to vector<1x32xf32>
    %cst_198 = arith.constant dense<0.000000e+00> : vector<16xf32>
    %431 = vector.multi_reduction <add>, %426, %cst_198 [1] : vector<16x32xf32> to vector<16xf32>
    %432 = vector.shape_cast %431 : vector<16xf32> to vector<16x1xf32>
    %cst_199 = arith.constant 3.200000e+01 : f32
    %433 = vector.broadcast %cst_199 : f32 to vector<16x1xf32>
    %434 = arith.divf %432, %433 : vector<16x1xf32>
    %435 = vector.broadcast %434 : vector<16x1xf32> to vector<16x32xf32>
    %436 = arith.subf %426, %435 : vector<16x32xf32>
    %437 = arith.mulf %436, %436 : vector<16x32xf32>
    %cst_200 = arith.constant dense<0.000000e+00> : vector<16xf32>
    %438 = vector.multi_reduction <add>, %437, %cst_200 [1] : vector<16x32xf32> to vector<16xf32>
    %439 = vector.shape_cast %438 : vector<16xf32> to vector<16x1xf32>
    %cst_201 = arith.constant 3.200000e+01 : f32
    %440 = vector.broadcast %cst_201 : f32 to vector<16x1xf32>
    %441 = arith.divf %439, %440 : vector<16x1xf32>
    %442 = vector.broadcast %434 : vector<16x1xf32> to vector<16x32xf32>
    %443 = arith.subf %426, %442 : vector<16x32xf32>
    %cst_202 = arith.constant 9.99999974E-6 : f32
    %444 = vector.broadcast %cst_202 : f32 to vector<16x1xf32>
    %445 = arith.addf %441, %444 : vector<16x1xf32>
    %446 = math.rsqrt %445 : vector<16x1xf32>
    %447 = vector.broadcast %446 : vector<16x1xf32> to vector<16x32xf32>
    %448 = arith.mulf %443, %447 : vector<16x32xf32>
    %449 = vector.broadcast %428 : vector<1x32xf32> to vector<16x32xf32>
    %450 = arith.mulf %448, %449 : vector<16x32xf32>
    %451 = vector.broadcast %430 : vector<1x32xf32> to vector<16x32xf32>
    %452 = arith.addf %450, %451 : vector<16x32xf32>
    %c2_203 = arith.constant 2 : index
    %c0_204 = arith.constant 0 : index
    %c0_205 = arith.constant 0 : index
    %453 = vector.load %arg5[%c2_203, %c0_204, %c0_205] : memref<4x32x32xf32, #tpu.memory_space<vmem>>, vector<1x32x32xf32>
    %454 = vector.shape_cast %453 : vector<1x32x32xf32> to vector<32x32xf32>
    %cst_206 = arith.constant dense<0.000000e+00> : vector<16x32xf32>
    %455 = tpu.matmul %452, %454, %cst_206 {dimension_numbers = #tpu.dot_dimension_numbers<[1], [0], [0], [1], [0, 0, 1, 1], [], []>} : vector<16x32xf32>, vector<32x32xf32>, vector<16x32xf32> -> vector<16x32xf32>
    %c2_207 = arith.constant 2 : index
    %c0_208 = arith.constant 0 : index
    %c0_209 = arith.constant 0 : index
    %456 = vector.load %arg6[%c2_207, %c0_208, %c0_209] : memref<4x1x32xf32, #tpu.memory_space<vmem>>, vector<1x1x32xf32>
    %457 = vector.shape_cast %456 : vector<1x1x32xf32> to vector<1x32xf32>
    %458 = vector.broadcast %457 : vector<1x32xf32> to vector<16x32xf32>
    %459 = arith.addf %455, %458 : vector<16x32xf32>
    %cst_210 = arith.constant 0.000000e+00 : f32
    %460 = vector.broadcast %cst_210 : f32 to vector<16x32xf32>
    %461 = arith.maximumf %459, %460 : vector<16x32xf32>
    %c2_211 = arith.constant 2 : index
    %c0_212 = arith.constant 0 : index
    %c0_213 = arith.constant 0 : index
    %462 = vector.load %arg7[%c2_211, %c0_212, %c0_213] : memref<4x32x32xf32, #tpu.memory_space<vmem>>, vector<1x32x32xf32>
    %463 = vector.shape_cast %462 : vector<1x32x32xf32> to vector<32x32xf32>
    %cst_214 = arith.constant dense<0.000000e+00> : vector<16x32xf32>
    %464 = tpu.matmul %461, %463, %cst_214 {dimension_numbers = #tpu.dot_dimension_numbers<[1], [0], [0], [1], [0, 0, 1, 1], [], []>} : vector<16x32xf32>, vector<32x32xf32>, vector<16x32xf32> -> vector<16x32xf32>
    %c2_215 = arith.constant 2 : index
    %c0_216 = arith.constant 0 : index
    %c0_217 = arith.constant 0 : index
    %465 = vector.load %arg8[%c2_215, %c0_216, %c0_217] : memref<4x1x32xf32, #tpu.memory_space<vmem>>, vector<1x1x32xf32>
    %466 = vector.shape_cast %465 : vector<1x1x32xf32> to vector<1x32xf32>
    %467 = vector.broadcast %466 : vector<1x32xf32> to vector<16x32xf32>
    %468 = arith.addf %464, %467 : vector<16x32xf32>
    %469 = arith.addf %452, %468 : vector<16x32xf32>
    %c2_218 = arith.constant 2 : index
    %c0_219 = arith.constant 0 : index
    %c0_220 = arith.constant 0 : index
    %470 = vector.load %arg11[%c2_218, %c0_219, %c0_220] : memref<4x1x32xf32, #tpu.memory_space<vmem>>, vector<1x1x32xf32>
    %471 = vector.shape_cast %470 : vector<1x1x32xf32> to vector<1x32xf32>
    %c2_221 = arith.constant 2 : index
    %c0_222 = arith.constant 0 : index
    %c0_223 = arith.constant 0 : index
    %472 = vector.load %arg12[%c2_221, %c0_222, %c0_223] : memref<4x1x32xf32, #tpu.memory_space<vmem>>, vector<1x1x32xf32>
    %473 = vector.shape_cast %472 : vector<1x1x32xf32> to vector<1x32xf32>
    %cst_224 = arith.constant dense<0.000000e+00> : vector<16xf32>
    %474 = vector.multi_reduction <add>, %469, %cst_224 [1] : vector<16x32xf32> to vector<16xf32>
    %475 = vector.shape_cast %474 : vector<16xf32> to vector<16x1xf32>
    %cst_225 = arith.constant 3.200000e+01 : f32
    %476 = vector.broadcast %cst_225 : f32 to vector<16x1xf32>
    %477 = arith.divf %475, %476 : vector<16x1xf32>
    %478 = vector.broadcast %477 : vector<16x1xf32> to vector<16x32xf32>
    %479 = arith.subf %469, %478 : vector<16x32xf32>
    %480 = arith.mulf %479, %479 : vector<16x32xf32>
    %cst_226 = arith.constant dense<0.000000e+00> : vector<16xf32>
    %481 = vector.multi_reduction <add>, %480, %cst_226 [1] : vector<16x32xf32> to vector<16xf32>
    %482 = vector.shape_cast %481 : vector<16xf32> to vector<16x1xf32>
    %cst_227 = arith.constant 3.200000e+01 : f32
    %483 = vector.broadcast %cst_227 : f32 to vector<16x1xf32>
    %484 = arith.divf %482, %483 : vector<16x1xf32>
    %485 = vector.broadcast %477 : vector<16x1xf32> to vector<16x32xf32>
    %486 = arith.subf %469, %485 : vector<16x32xf32>
    %cst_228 = arith.constant 9.99999974E-6 : f32
    %487 = vector.broadcast %cst_228 : f32 to vector<16x1xf32>
    %488 = arith.addf %484, %487 : vector<16x1xf32>
    %489 = math.rsqrt %488 : vector<16x1xf32>
    %490 = vector.broadcast %489 : vector<16x1xf32> to vector<16x32xf32>
    %491 = arith.mulf %486, %490 : vector<16x32xf32>
    %492 = vector.broadcast %471 : vector<1x32xf32> to vector<16x32xf32>
    %493 = arith.mulf %491, %492 : vector<16x32xf32>
    %494 = vector.broadcast %473 : vector<1x32xf32> to vector<16x32xf32>
    %495 = arith.addf %493, %494 : vector<16x32xf32>
    %c3 = arith.constant 3 : index
    %c0_229 = arith.constant 0 : index
    %c0_230 = arith.constant 0 : index
    %496 = vector.load %arg1[%c3, %c0_229, %c0_230] : memref<4x32x96xf32, #tpu.memory_space<vmem>>, vector<1x32x96xf32>
    %497 = vector.shape_cast %496 : vector<1x32x96xf32> to vector<32x96xf32>
    %cst_231 = arith.constant dense<0.000000e+00> : vector<16x96xf32>
    %498 = tpu.matmul %495, %497, %cst_231 {dimension_numbers = #tpu.dot_dimension_numbers<[1], [0], [0], [1], [0, 0, 1, 1], [], []>} : vector<16x32xf32>, vector<32x96xf32>, vector<16x96xf32> -> vector<16x96xf32>
    %c3_232 = arith.constant 3 : index
    %c0_233 = arith.constant 0 : index
    %c0_234 = arith.constant 0 : index
    %499 = vector.load %arg2[%c3_232, %c0_233, %c0_234] : memref<4x1x96xf32, #tpu.memory_space<vmem>>, vector<1x1x96xf32>
    %500 = vector.shape_cast %499 : vector<1x1x96xf32> to vector<1x96xf32>
    %501 = vector.broadcast %500 : vector<1x96xf32> to vector<16x96xf32>
    %502 = arith.addf %498, %501 : vector<16x96xf32>
    %503 = vector.shape_cast %502 : vector<16x96xf32> to vector<2x8x96xf32>
    %cst_235 = arith.constant 0.000000e+00 : f32
    %504 = vector.broadcast %cst_235 : f32 to vector<2x8x8xf32>
    %505 = vector.extract_strided_slice %503 {offsets = [0, 0, 0], sizes = [2, 8, 8], strides = [1, 1, 1]} : vector<2x8x96xf32> to vector<2x8x8xf32>
    %506 = vector.extract_strided_slice %503 {offsets = [0, 0, 32], sizes = [2, 8, 8], strides = [1, 1, 1]} : vector<2x8x96xf32> to vector<2x8x8xf32>
    %507 = vector.extract_strided_slice %503 {offsets = [0, 0, 64], sizes = [2, 8, 8], strides = [1, 1, 1]} : vector<2x8x96xf32> to vector<2x8x8xf32>
    "tpu.trace_start"() <{level = 10 : i32, message = "bqd,bkd->bqk"}> : () -> ()
    %cst_236 = arith.constant dense<0.000000e+00> : vector<2x8x8xf32>
    %508 = tpu.matmul %505, %506, %cst_236 {dimension_numbers = #tpu.dot_dimension_numbers<[2], [2], [1], [1], [0, 0, 0, 1, 1, 1], [0], [0]>} : vector<2x8x8xf32>, vector<2x8x8xf32>, vector<2x8x8xf32> -> vector<2x8x8xf32>
    "tpu.trace_stop"() : () -> ()
    %cst_237 = arith.constant 0.353553385 : f32
    %509 = vector.broadcast %cst_237 : f32 to vector<2x8x8xf32>
    %510 = arith.mulf %508, %509 : vector<2x8x8xf32>
    %cst_238 = arith.constant dense<0xFF800000> : vector<2x8xf32>
    %511 = vector.multi_reduction <maximumf>, %510, %cst_238 [2] : vector<2x8x8xf32> to vector<2x8xf32>
    %512 = vector.shape_cast %511 : vector<2x8xf32> to vector<2x8x1xf32>
    %513 = vector.broadcast %512 : vector<2x8x1xf32> to vector<2x8x8xf32>
    %514 = arith.subf %510, %513 : vector<2x8x8xf32>
    %515 = math.exp %514 : vector<2x8x8xf32>
    %cst_239 = arith.constant dense<0.000000e+00> : vector<2x8xf32>
    %516 = vector.multi_reduction <add>, %515, %cst_239 [2] : vector<2x8x8xf32> to vector<2x8xf32>
    %517 = vector.shape_cast %516 : vector<2x8xf32> to vector<2x8x1xf32>
    %518 = tpu.reciprocal %517 {approx = true} : vector<2x8x1xf32> -> vector<2x8x1xf32>
    %519 = vector.broadcast %518 : vector<2x8x1xf32> to vector<2x8x8xf32>
    %520 = arith.mulf %515, %519 : vector<2x8x8xf32>
    %521 = arith.addf %504, %520 : vector<2x8x8xf32>
    "tpu.trace_start"() <{level = 10 : i32, message = "bqk,bkd->bqd"}> : () -> ()
    %cst_240 = arith.constant dense<0.000000e+00> : vector<2x8x8xf32>
    %522 = tpu.matmul %520, %507, %cst_240 {dimension_numbers = #tpu.dot_dimension_numbers<[2], [1], [1], [2], [0, 0, 0, 1, 1, 2], [0], [0]>} : vector<2x8x8xf32>, vector<2x8x8xf32>, vector<2x8x8xf32> -> vector<2x8x8xf32>
    "tpu.trace_stop"() : () -> ()
    %523 = vector.extract_strided_slice %503 {offsets = [0, 0, 8], sizes = [2, 8, 8], strides = [1, 1, 1]} : vector<2x8x96xf32> to vector<2x8x8xf32>
    %524 = vector.extract_strided_slice %503 {offsets = [0, 0, 40], sizes = [2, 8, 8], strides = [1, 1, 1]} : vector<2x8x96xf32> to vector<2x8x8xf32>
    %525 = vector.extract_strided_slice %503 {offsets = [0, 0, 72], sizes = [2, 8, 8], strides = [1, 1, 1]} : vector<2x8x96xf32> to vector<2x8x8xf32>
    "tpu.trace_start"() <{level = 10 : i32, message = "bqd,bkd->bqk"}> : () -> ()
    %cst_241 = arith.constant dense<0.000000e+00> : vector<2x8x8xf32>
    %526 = tpu.matmul %523, %524, %cst_241 {dimension_numbers = #tpu.dot_dimension_numbers<[2], [2], [1], [1], [0, 0, 0, 1, 1, 1], [0], [0]>} : vector<2x8x8xf32>, vector<2x8x8xf32>, vector<2x8x8xf32> -> vector<2x8x8xf32>
    "tpu.trace_stop"() : () -> ()
    %cst_242 = arith.constant 0.353553385 : f32
    %527 = vector.broadcast %cst_242 : f32 to vector<2x8x8xf32>
    %528 = arith.mulf %526, %527 : vector<2x8x8xf32>
    %cst_243 = arith.constant dense<0xFF800000> : vector<2x8xf32>
    %529 = vector.multi_reduction <maximumf>, %528, %cst_243 [2] : vector<2x8x8xf32> to vector<2x8xf32>
    %530 = vector.shape_cast %529 : vector<2x8xf32> to vector<2x8x1xf32>
    %531 = vector.broadcast %530 : vector<2x8x1xf32> to vector<2x8x8xf32>
    %532 = arith.subf %528, %531 : vector<2x8x8xf32>
    %533 = math.exp %532 : vector<2x8x8xf32>
    %cst_244 = arith.constant dense<0.000000e+00> : vector<2x8xf32>
    %534 = vector.multi_reduction <add>, %533, %cst_244 [2] : vector<2x8x8xf32> to vector<2x8xf32>
    %535 = vector.shape_cast %534 : vector<2x8xf32> to vector<2x8x1xf32>
    %536 = tpu.reciprocal %535 {approx = true} : vector<2x8x1xf32> -> vector<2x8x1xf32>
    %537 = vector.broadcast %536 : vector<2x8x1xf32> to vector<2x8x8xf32>
    %538 = arith.mulf %533, %537 : vector<2x8x8xf32>
    %539 = arith.addf %521, %538 : vector<2x8x8xf32>
    "tpu.trace_start"() <{level = 10 : i32, message = "bqk,bkd->bqd"}> : () -> ()
    %cst_245 = arith.constant dense<0.000000e+00> : vector<2x8x8xf32>
    %540 = tpu.matmul %538, %525, %cst_245 {dimension_numbers = #tpu.dot_dimension_numbers<[2], [1], [1], [2], [0, 0, 0, 1, 1, 2], [0], [0]>} : vector<2x8x8xf32>, vector<2x8x8xf32>, vector<2x8x8xf32> -> vector<2x8x8xf32>
    "tpu.trace_stop"() : () -> ()
    %541 = vector.extract_strided_slice %503 {offsets = [0, 0, 16], sizes = [2, 8, 8], strides = [1, 1, 1]} : vector<2x8x96xf32> to vector<2x8x8xf32>
    %542 = vector.extract_strided_slice %503 {offsets = [0, 0, 48], sizes = [2, 8, 8], strides = [1, 1, 1]} : vector<2x8x96xf32> to vector<2x8x8xf32>
    %543 = vector.extract_strided_slice %503 {offsets = [0, 0, 80], sizes = [2, 8, 8], strides = [1, 1, 1]} : vector<2x8x96xf32> to vector<2x8x8xf32>
    "tpu.trace_start"() <{level = 10 : i32, message = "bqd,bkd->bqk"}> : () -> ()
    %cst_246 = arith.constant dense<0.000000e+00> : vector<2x8x8xf32>
    %544 = tpu.matmul %541, %542, %cst_246 {dimension_numbers = #tpu.dot_dimension_numbers<[2], [2], [1], [1], [0, 0, 0, 1, 1, 1], [0], [0]>} : vector<2x8x8xf32>, vector<2x8x8xf32>, vector<2x8x8xf32> -> vector<2x8x8xf32>
    "tpu.trace_stop"() : () -> ()
    %cst_247 = arith.constant 0.353553385 : f32
    %545 = vector.broadcast %cst_247 : f32 to vector<2x8x8xf32>
    %546 = arith.mulf %544, %545 : vector<2x8x8xf32>
    %cst_248 = arith.constant dense<0xFF800000> : vector<2x8xf32>
    %547 = vector.multi_reduction <maximumf>, %546, %cst_248 [2] : vector<2x8x8xf32> to vector<2x8xf32>
    %548 = vector.shape_cast %547 : vector<2x8xf32> to vector<2x8x1xf32>
    %549 = vector.broadcast %548 : vector<2x8x1xf32> to vector<2x8x8xf32>
    %550 = arith.subf %546, %549 : vector<2x8x8xf32>
    %551 = math.exp %550 : vector<2x8x8xf32>
    %cst_249 = arith.constant dense<0.000000e+00> : vector<2x8xf32>
    %552 = vector.multi_reduction <add>, %551, %cst_249 [2] : vector<2x8x8xf32> to vector<2x8xf32>
    %553 = vector.shape_cast %552 : vector<2x8xf32> to vector<2x8x1xf32>
    %554 = tpu.reciprocal %553 {approx = true} : vector<2x8x1xf32> -> vector<2x8x1xf32>
    %555 = vector.broadcast %554 : vector<2x8x1xf32> to vector<2x8x8xf32>
    %556 = arith.mulf %551, %555 : vector<2x8x8xf32>
    %557 = arith.addf %539, %556 : vector<2x8x8xf32>
    "tpu.trace_start"() <{level = 10 : i32, message = "bqk,bkd->bqd"}> : () -> ()
    %cst_250 = arith.constant dense<0.000000e+00> : vector<2x8x8xf32>
    %558 = tpu.matmul %556, %543, %cst_250 {dimension_numbers = #tpu.dot_dimension_numbers<[2], [1], [1], [2], [0, 0, 0, 1, 1, 2], [0], [0]>} : vector<2x8x8xf32>, vector<2x8x8xf32>, vector<2x8x8xf32> -> vector<2x8x8xf32>
    "tpu.trace_stop"() : () -> ()
    %559 = vector.extract_strided_slice %503 {offsets = [0, 0, 24], sizes = [2, 8, 8], strides = [1, 1, 1]} : vector<2x8x96xf32> to vector<2x8x8xf32>
    %560 = vector.extract_strided_slice %503 {offsets = [0, 0, 56], sizes = [2, 8, 8], strides = [1, 1, 1]} : vector<2x8x96xf32> to vector<2x8x8xf32>
    %561 = vector.extract_strided_slice %503 {offsets = [0, 0, 88], sizes = [2, 8, 8], strides = [1, 1, 1]} : vector<2x8x96xf32> to vector<2x8x8xf32>
    "tpu.trace_start"() <{level = 10 : i32, message = "bqd,bkd->bqk"}> : () -> ()
    %cst_251 = arith.constant dense<0.000000e+00> : vector<2x8x8xf32>
    %562 = tpu.matmul %559, %560, %cst_251 {dimension_numbers = #tpu.dot_dimension_numbers<[2], [2], [1], [1], [0, 0, 0, 1, 1, 1], [0], [0]>} : vector<2x8x8xf32>, vector<2x8x8xf32>, vector<2x8x8xf32> -> vector<2x8x8xf32>
    "tpu.trace_stop"() : () -> ()
    %cst_252 = arith.constant 0.353553385 : f32
    %563 = vector.broadcast %cst_252 : f32 to vector<2x8x8xf32>
    %564 = arith.mulf %562, %563 : vector<2x8x8xf32>
    %cst_253 = arith.constant dense<0xFF800000> : vector<2x8xf32>
    %565 = vector.multi_reduction <maximumf>, %564, %cst_253 [2] : vector<2x8x8xf32> to vector<2x8xf32>
    %566 = vector.shape_cast %565 : vector<2x8xf32> to vector<2x8x1xf32>
    %567 = vector.broadcast %566 : vector<2x8x1xf32> to vector<2x8x8xf32>
    %568 = arith.subf %564, %567 : vector<2x8x8xf32>
    %569 = math.exp %568 : vector<2x8x8xf32>
    %cst_254 = arith.constant dense<0.000000e+00> : vector<2x8xf32>
    %570 = vector.multi_reduction <add>, %569, %cst_254 [2] : vector<2x8x8xf32> to vector<2x8xf32>
    %571 = vector.shape_cast %570 : vector<2x8xf32> to vector<2x8x1xf32>
    %572 = tpu.reciprocal %571 {approx = true} : vector<2x8x1xf32> -> vector<2x8x1xf32>
    %573 = vector.broadcast %572 : vector<2x8x1xf32> to vector<2x8x8xf32>
    %574 = arith.mulf %569, %573 : vector<2x8x8xf32>
    %575 = arith.addf %557, %574 : vector<2x8x8xf32>
    "tpu.trace_start"() <{level = 10 : i32, message = "bqk,bkd->bqd"}> : () -> ()
    %cst_255 = arith.constant dense<0.000000e+00> : vector<2x8x8xf32>
    %576 = tpu.matmul %574, %561, %cst_255 {dimension_numbers = #tpu.dot_dimension_numbers<[2], [1], [1], [2], [0, 0, 0, 1, 1, 2], [0], [0]>} : vector<2x8x8xf32>, vector<2x8x8xf32>, vector<2x8x8xf32> -> vector<2x8x8xf32>
    "tpu.trace_stop"() : () -> ()
    %cst_256 = arith.constant 2.500000e-01 : f32
    %577 = vector.broadcast %cst_256 : f32 to vector<2x8x8xf32>
    %578 = arith.mulf %575, %577 : vector<2x8x8xf32>
    %c3_257 = arith.constant 3 : index
    %c0_258 = arith.constant 0 : index
    %c0_259 = arith.constant 0 : index
    %c0_260 = arith.constant 0 : index
    %579 = vector.load %arg14[%c3_257, %c0_258, %c0_259, %c0_260] : memref<4x2x8x8xf32, #tpu.memory_space<vmem>>, vector<1x2x8x8xf32>
    %580 = vector.shape_cast %579 : vector<1x2x8x8xf32> to vector<2x8x8xf32>
    %581 = vector.shape_cast %578 : vector<2x8x8xf32> to vector<1x2x8x8xf32>
    tpu.vector_store %arg14[%c3_257, %c0_258, %c0_259, %c0_260], %581 {strides = array<i32>} : memref<4x2x8x8xf32, #tpu.memory_space<vmem>>, vector<1x2x8x8xf32>,
    %582 = tpu.concatenate %522, %540, %558, %576 in 2 : vector<2x8x8xf32>, vector<2x8x8xf32>, vector<2x8x8xf32>, vector<2x8x8xf32> -> vector<2x8x32xf32>
    %583 = vector.shape_cast %582 : vector<2x8x32xf32> to vector<16x32xf32>
    %c3_261 = arith.constant 3 : index
    %c0_262 = arith.constant 0 : index
    %c0_263 = arith.constant 0 : index
    %584 = vector.load %arg3[%c3_261, %c0_262, %c0_263] : memref<4x32x32xf32, #tpu.memory_space<vmem>>, vector<1x32x32xf32>
    %585 = vector.shape_cast %584 : vector<1x32x32xf32> to vector<32x32xf32>
    %cst_264 = arith.constant dense<0.000000e+00> : vector<16x32xf32>
    %586 = tpu.matmul %583, %585, %cst_264 {dimension_numbers = #tpu.dot_dimension_numbers<[1], [0], [0], [1], [0, 0, 1, 1], [], []>} : vector<16x32xf32>, vector<32x32xf32>, vector<16x32xf32> -> vector<16x32xf32>
    %c3_265 = arith.constant 3 : index
    %c0_266 = arith.constant 0 : index
    %c0_267 = arith.constant 0 : index
    %587 = vector.load %arg4[%c3_265, %c0_266, %c0_267] : memref<4x1x32xf32, #tpu.memory_space<vmem>>, vector<1x1x32xf32>
    %588 = vector.shape_cast %587 : vector<1x1x32xf32> to vector<1x32xf32>
    %589 = vector.broadcast %588 : vector<1x32xf32> to vector<16x32xf32>
    %590 = arith.addf %586, %589 : vector<16x32xf32>
    %591 = arith.addf %495, %590 : vector<16x32xf32>
    %c3_268 = arith.constant 3 : index
    %c0_269 = arith.constant 0 : index
    %c0_270 = arith.constant 0 : index
    %592 = vector.load %arg9[%c3_268, %c0_269, %c0_270] : memref<4x1x32xf32, #tpu.memory_space<vmem>>, vector<1x1x32xf32>
    %593 = vector.shape_cast %592 : vector<1x1x32xf32> to vector<1x32xf32>
    %c3_271 = arith.constant 3 : index
    %c0_272 = arith.constant 0 : index
    %c0_273 = arith.constant 0 : index
    %594 = vector.load %arg10[%c3_271, %c0_272, %c0_273] : memref<4x1x32xf32, #tpu.memory_space<vmem>>, vector<1x1x32xf32>
    %595 = vector.shape_cast %594 : vector<1x1x32xf32> to vector<1x32xf32>
    %cst_274 = arith.constant dense<0.000000e+00> : vector<16xf32>
    %596 = vector.multi_reduction <add>, %591, %cst_274 [1] : vector<16x32xf32> to vector<16xf32>
    %597 = vector.shape_cast %596 : vector<16xf32> to vector<16x1xf32>
    %cst_275 = arith.constant 3.200000e+01 : f32
    %598 = vector.broadcast %cst_275 : f32 to vector<16x1xf32>
    %599 = arith.divf %597, %598 : vector<16x1xf32>
    %600 = vector.broadcast %599 : vector<16x1xf32> to vector<16x32xf32>
    %601 = arith.subf %591, %600 : vector<16x32xf32>
    %602 = arith.mulf %601, %601 : vector<16x32xf32>
    %cst_276 = arith.constant dense<0.000000e+00> : vector<16xf32>
    %603 = vector.multi_reduction <add>, %602, %cst_276 [1] : vector<16x32xf32> to vector<16xf32>
    %604 = vector.shape_cast %603 : vector<16xf32> to vector<16x1xf32>
    %cst_277 = arith.constant 3.200000e+01 : f32
    %605 = vector.broadcast %cst_277 : f32 to vector<16x1xf32>
    %606 = arith.divf %604, %605 : vector<16x1xf32>
    %607 = vector.broadcast %599 : vector<16x1xf32> to vector<16x32xf32>
    %608 = arith.subf %591, %607 : vector<16x32xf32>
    %cst_278 = arith.constant 9.99999974E-6 : f32
    %609 = vector.broadcast %cst_278 : f32 to vector<16x1xf32>
    %610 = arith.addf %606, %609 : vector<16x1xf32>
    %611 = math.rsqrt %610 : vector<16x1xf32>
    %612 = vector.broadcast %611 : vector<16x1xf32> to vector<16x32xf32>
    %613 = arith.mulf %608, %612 : vector<16x32xf32>
    %614 = vector.broadcast %593 : vector<1x32xf32> to vector<16x32xf32>
    %615 = arith.mulf %613, %614 : vector<16x32xf32>
    %616 = vector.broadcast %595 : vector<1x32xf32> to vector<16x32xf32>
    %617 = arith.addf %615, %616 : vector<16x32xf32>
    %c3_279 = arith.constant 3 : index
    %c0_280 = arith.constant 0 : index
    %c0_281 = arith.constant 0 : index
    %618 = vector.load %arg5[%c3_279, %c0_280, %c0_281] : memref<4x32x32xf32, #tpu.memory_space<vmem>>, vector<1x32x32xf32>
    %619 = vector.shape_cast %618 : vector<1x32x32xf32> to vector<32x32xf32>
    %cst_282 = arith.constant dense<0.000000e+00> : vector<16x32xf32>
    %620 = tpu.matmul %617, %619, %cst_282 {dimension_numbers = #tpu.dot_dimension_numbers<[1], [0], [0], [1], [0, 0, 1, 1], [], []>} : vector<16x32xf32>, vector<32x32xf32>, vector<16x32xf32> -> vector<16x32xf32>
    %c3_283 = arith.constant 3 : index
    %c0_284 = arith.constant 0 : index
    %c0_285 = arith.constant 0 : index
    %621 = vector.load %arg6[%c3_283, %c0_284, %c0_285] : memref<4x1x32xf32, #tpu.memory_space<vmem>>, vector<1x1x32xf32>
    %622 = vector.shape_cast %621 : vector<1x1x32xf32> to vector<1x32xf32>
    %623 = vector.broadcast %622 : vector<1x32xf32> to vector<16x32xf32>
    %624 = arith.addf %620, %623 : vector<16x32xf32>
    %cst_286 = arith.constant 0.000000e+00 : f32
    %625 = vector.broadcast %cst_286 : f32 to vector<16x32xf32>
    %626 = arith.maximumf %624, %625 : vector<16x32xf32>
    %c3_287 = arith.constant 3 : index
    %c0_288 = arith.constant 0 : index
    %c0_289 = arith.constant 0 : index
    %627 = vector.load %arg7[%c3_287, %c0_288, %c0_289] : memref<4x32x32xf32, #tpu.memory_space<vmem>>, vector<1x32x32xf32>
    %628 = vector.shape_cast %627 : vector<1x32x32xf32> to vector<32x32xf32>
    %cst_290 = arith.constant dense<0.000000e+00> : vector<16x32xf32>
    %629 = tpu.matmul %626, %628, %cst_290 {dimension_numbers = #tpu.dot_dimension_numbers<[1], [0], [0], [1], [0, 0, 1, 1], [], []>} : vector<16x32xf32>, vector<32x32xf32>, vector<16x32xf32> -> vector<16x32xf32>
    %c3_291 = arith.constant 3 : index
    %c0_292 = arith.constant 0 : index
    %c0_293 = arith.constant 0 : index
    %630 = vector.load %arg8[%c3_291, %c0_292, %c0_293] : memref<4x1x32xf32, #tpu.memory_space<vmem>>, vector<1x1x32xf32>
    %631 = vector.shape_cast %630 : vector<1x1x32xf32> to vector<1x32xf32>
    %632 = vector.broadcast %631 : vector<1x32xf32> to vector<16x32xf32>
    %633 = arith.addf %629, %632 : vector<16x32xf32>
    %634 = arith.addf %617, %633 : vector<16x32xf32>
    %c3_294 = arith.constant 3 : index
    %c0_295 = arith.constant 0 : index
    %c0_296 = arith.constant 0 : index
    %635 = vector.load %arg11[%c3_294, %c0_295, %c0_296] : memref<4x1x32xf32, #tpu.memory_space<vmem>>, vector<1x1x32xf32>
    %636 = vector.shape_cast %635 : vector<1x1x32xf32> to vector<1x32xf32>
    %c3_297 = arith.constant 3 : index
    %c0_298 = arith.constant 0 : index
    %c0_299 = arith.constant 0 : index
    %637 = vector.load %arg12[%c3_297, %c0_298, %c0_299] : memref<4x1x32xf32, #tpu.memory_space<vmem>>, vector<1x1x32xf32>
    %638 = vector.shape_cast %637 : vector<1x1x32xf32> to vector<1x32xf32>
    %cst_300 = arith.constant dense<0.000000e+00> : vector<16xf32>
    %639 = vector.multi_reduction <add>, %634, %cst_300 [1] : vector<16x32xf32> to vector<16xf32>
    %640 = vector.shape_cast %639 : vector<16xf32> to vector<16x1xf32>
    %cst_301 = arith.constant 3.200000e+01 : f32
    %641 = vector.broadcast %cst_301 : f32 to vector<16x1xf32>
    %642 = arith.divf %640, %641 : vector<16x1xf32>
    %643 = vector.broadcast %642 : vector<16x1xf32> to vector<16x32xf32>
    %644 = arith.subf %634, %643 : vector<16x32xf32>
    %645 = arith.mulf %644, %644 : vector<16x32xf32>
    %cst_302 = arith.constant dense<0.000000e+00> : vector<16xf32>
    %646 = vector.multi_reduction <add>, %645, %cst_302 [1] : vector<16x32xf32> to vector<16xf32>
    %647 = vector.shape_cast %646 : vector<16xf32> to vector<16x1xf32>
    %cst_303 = arith.constant 3.200000e+01 : f32
    %648 = vector.broadcast %cst_303 : f32 to vector<16x1xf32>
    %649 = arith.divf %647, %648 : vector<16x1xf32>
    %650 = vector.broadcast %642 : vector<16x1xf32> to vector<16x32xf32>
    %651 = arith.subf %634, %650 : vector<16x32xf32>
    %cst_304 = arith.constant 9.99999974E-6 : f32
    %652 = vector.broadcast %cst_304 : f32 to vector<16x1xf32>
    %653 = arith.addf %649, %652 : vector<16x1xf32>
    %654 = math.rsqrt %653 : vector<16x1xf32>
    %655 = vector.broadcast %654 : vector<16x1xf32> to vector<16x32xf32>
    %656 = arith.mulf %651, %655 : vector<16x32xf32>
    %657 = vector.broadcast %636 : vector<1x32xf32> to vector<16x32xf32>
    %658 = arith.mulf %656, %657 : vector<16x32xf32>
    %659 = vector.broadcast %638 : vector<1x32xf32> to vector<16x32xf32>
    %660 = arith.addf %658, %659 : vector<16x32xf32>
    %c0_305 = arith.constant 0 : index
    %c0_306 = arith.constant 0 : index
    %661 = vector.load %arg13[%c0_305, %c0_306] : memref<16x32xf32, #tpu.memory_space<vmem>>, vector<16x32xf32>
    tpu.vector_store %arg13[%c0_305, %c0_306], %660 {strides = array<i32>} : memref<16x32xf32, #tpu.memory_space<vmem>>, vector<16x32xf32>,
    return
  }
}

</mosaic_0001>

<bundles_post_ra>
// kernel: tpu_custom_call.1
= control target key start
LH: loop header
LB: loop body
LE: loop exit
PB: predicated region body
PF: predicated region fallthrough
CT: control target
= control target key end

     0   :  { %20 = vsyncpa [#allocation3], 0  ;;  %s5157_s0 = inlined_call_operand.hbm [shape: f32[16,32], index: 0, kind: input, shape index: {}]   ;;  %s5158_s1 = inlined_call_operand.hbm [shape: f32[4,32,96], index: 1, kind: input, shape index: {}]   ;;  %s5159_s2 = inlined_call_operand.hbm [shape: f32[4,1,96], index: 2, kind: input, shape index: {}]   ;;  %s5160_s3 = inlined_call_operand.hbm [shape: f32[4,32,32], index: 3, kind: input, shape index: {}]   ;;  %s5161_s4 = inlined_call_operand.hbm [shape: f32[4,1,32], index: 4, kind: input, shape index: {}]   ;;  %s5162_s5 = inlined_call_operand.hbm [shape: f32[4,32,32], index: 5, kind: input, shape index: {}]   ;;  %s5163_s6 = inlined_call_operand.vmem [shape: f32[4,1,32], index: 6, kind: input, shape index: {}]   ;;  %s5164_s7 = inlined_call_operand.hbm [shape: f32[4,32,32], index: 7, kind: input, shape index: {}]   ;;  %s5165_s8 = inlined_call_operand.hbm [shape: f32[4,1,32], index: 8, kind: input, shape index: {}]   ;;  %s5166_s9 = inlined_call_operand.vmem [shape: f32[4,1,32], index: 9, kind: input, shape index: {}]   ;;  %s5167_s10 = inlined_call_operand.hbm [shape: f32[4,1,32], index: 10, kind: input, shape index: {}]   ;;  %s5168_s11 = inlined_call_operand.hbm [shape: f32[4,1,32], index: 11, kind: input, shape index: {}]   ;;  %s5169_s12 = inlined_call_operand.hbm [shape: f32[4,1,32], index: 12, kind: input, shape index: {}]   ;;  %s5170_s13 = inlined_call_operand.hbm [shape: f32[16,32], index: 13, kind: output, shape index: {0}]   ;;  %s5171_s14 = inlined_call_operand.hbm [shape: f32[4,2,8,8], index: 14, kind: output, shape index: {1}]  }
   0x1   :  { %21 = vsyncpa [#allocation6], 0 }
   0x2   :  { %22 = vsyncpa [#allocation9], 0 }
   0x3   :  { %23 = vsyncpa [#allocation12], 0 }
   0x4   :  { %24 = vsyncpa [#allocation15], 0 }
   0x5   :  { %25 = vsyncpa [#allocation18], 0 }
   0x6   :  { %26 = vsyncpa [#allocation4], 0 }
   0x7   :  { %27 = vsyncpa [#allocation22], 0  ;;  %s45_s15 = sshll.u32 %s5158_s1, 4  ;;  %s4352_s16 = smov [#allocation5]   ;;  %s46_s15 = int_to_ptr.hbm [resolvable:$true] %s45_s15 }
   0x8   :  { %s47_s17 = sshll.u32 %s4352_s16, 4  ;;  %s71_s20 = sshll.u32 %s5160_s3, 4  ;;  %s48_s17 = int_to_ptr.vmem [resolvable:$true] %s47_s17  ;;  %s72_s20 = int_to_ptr.hbm [resolvable:$true] %s71_s20 }
   0x9   :  { %s4353_s21 = smov 128   ;;  %s4354_s22 = smov 8  }
   0xa   :  { %53 = dma.hbm_to_vmem [thread:$0]  %s46_s15, 2048, %s48_s17, [#allocation6], %s4353_s21, %s4353_s21, %s4354_s22  }
   0xb   :  { %s4355_s23 = smov [#allocation8]   ;;  %s97_s1 = sshll.u32 %s5162_s5, 4  ;;  %s98_s1 = int_to_ptr.hbm [resolvable:$true] %s97_s1 }
   0xc   :  { %s73_s24 = sshll.u32 %s4355_s23, 4  ;;  %s4356_s3 = smov [#allocation11]   ;;  %s74_s24 = int_to_ptr.vmem [resolvable:$true] %s73_s24 }
   0xd   :  { %79 = dma.hbm_to_vmem [thread:$0]  %s72_s20, 2048, %s74_s24, [#allocation9], %s4353_s21, %s4353_s21, %s4354_s22  }
   0xe   :  { %s99_s27 = sshll.u32 %s4356_s3, 4  ;;  %s125_s30 = sshll.u32 %s5165_s8, 4  ;;  %s100_s27 = int_to_ptr.vmem [resolvable:$true] %s99_s27  ;;  %s126_s30 = int_to_ptr.hbm [resolvable:$true] %s125_s30 }
   0xf   :  { %105 = dma.hbm_to_vmem [thread:$0]  %s98_s1, 2048, %s100_s27, [#allocation12], %s4353_s21, %s4353_s21, %s4354_s22  }
  0x10   :  { %s4357_s15 = smov [#allocation14]   ;;  %s153_s18 = sshll.u32 %s5168_s11, 4  ;;  %s154_s18 = int_to_ptr.hbm [resolvable:$true] %s153_s18 }
  0x11   :  { %s127_s5 = sshll.u32 %s4357_s15, 4  ;;  %s4358_s19 = smov 16   ;;  %s128_s5 = int_to_ptr.vmem [resolvable:$true] %s127_s5 }
  0x12   :  { %s4359_s20 = smov 1   ;;  %s32_s24 = sshll.u32 %s5157_s0, 4  ;;  %s33_s24 = int_to_ptr.hbm [resolvable:$true] %s32_s24 }
  0x13   :  { %133 = dma.hbm_to_vmem [thread:$0]  %s126_s30, 64, %s128_s5, [#allocation15], %s4358_s19, %s4358_s19, %s4359_s20  }
  0x14   :  { %s4360_s25 = smov [#allocation17]   ;;  %s4361_s11 = smov [#allocation2]  }
  0x15   :  { %s155_s26 = sshll.u32 %s4360_s25, 4  ;;  %s34_s1 = sshll.u32 %s4361_s11, 4  ;;  %s156_s26 = int_to_ptr.vmem [resolvable:$true] %s155_s26  ;;  %s35_s1 = int_to_ptr.vmem [resolvable:$true] %s34_s1 }
  0x16   :  { %161 = dma.hbm_to_vmem [thread:$0]  %s154_s18, 64, %s156_s26, [#allocation18], %s4358_s19, %s4358_s19, %s4359_s20  }
  0x17   :  { %s58_s28 = sshll.u32 %s5159_s2, 4  ;;  %s84_s30 = sshll.u32 %s5161_s4, 4  ;;  %s59_s28 = int_to_ptr.hbm [resolvable:$true] %s58_s28  ;;  %s85_s30 = int_to_ptr.hbm [resolvable:$true] %s84_s30 }
  0x18   :  { %40 = dma.hbm_to_vmem [thread:$0]  %s33_s24, 256, %s35_s1, [#allocation3], %s4353_s21, %s4353_s21, %s4354_s22  }
  0x19   :  { %s4362_s15 = smov [#allocation7]   ;;  %s4363_s16 = smov [#allocation10]  }
  0x1a   :  { %s60_s5 = sshll.u32 %s4362_s15, 4  ;;  %s86_s2 = sshll.u32 %s4363_s16, 4  ;;  %s61_s5 = int_to_ptr.vmem [resolvable:$true] %s60_s5  ;;  %s87_s2 = int_to_ptr.vmem [resolvable:$true] %s86_s2 }
  0x1b   :  { %66 = dma.hbm_to_vmem [thread:$0]  %s59_s28, 64, %s61_s5, [#allocation6], %s4358_s19, %s4358_s19, %s4359_s20  }
  0x1c   :  { %s112_s8 = sshll.u32 %s5164_s7, 4  ;;  %s140_s24 = sshll.u32 %s5167_s10, 4  ;;  %s113_s8 = int_to_ptr.hbm [resolvable:$true] %s112_s8  ;;  %s141_s24 = int_to_ptr.hbm [resolvable:$true] %s140_s24 }
  0x1d   :  { %92 = dma.hbm_to_vmem [thread:$0]  %s85_s30, 64, %s87_s2, [#allocation9], %s4358_s19, %s4358_s19, %s4359_s20  }
  0x1e   :  { %s4364_s25 = smov [#allocation13]   ;;  %s4365_s11 = smov [#allocation16]  }
  0x1f   :  { %s114_s26 = sshll.u32 %s4364_s25, 4  ;;  %s142_s7 = sshll.u32 %s4365_s11, 4  ;;  %s115_s26 = int_to_ptr.vmem [resolvable:$true] %s114_s26  ;;  %s143_s7 = int_to_ptr.vmem [resolvable:$true] %s142_s7 }
  0x20   :  { %120 = dma.hbm_to_vmem [thread:$0]  %s113_s8, 2048, %s115_s26, [#allocation12], %s4353_s21, %s4353_s21, %s4354_s22  }
  0x21   :  { %s166_s27 = sshll.u32 %s5169_s12, 4  ;;  %s4366_s10 = smov [#allocation19]   ;;  %s167_s27 = int_to_ptr.hbm [resolvable:$true] %s166_s27 }
  0x22   :  { %148 = dma.hbm_to_vmem [thread:$0]  %s141_s24, 64, %s143_s7, [#allocation15], %s4358_s19, %s4358_s19, %s4359_s20  }
  0x23   :  { %s168_s28 = sshll.u32 %s4366_s10, 4  ;;  %s169_s28 = int_to_ptr.vmem [resolvable:$true] %s168_s28 }
  0x24   :  { %174 = dma.hbm_to_vmem [thread:$0]  %s167_s27, 64, %s169_s28, [#allocation18], %s4358_s19, %s4358_s19, %s4359_s20  }
  0x25   :  { %4336 = dma.done.wait [#allocation3], 256  }
  0x26   :  { %4337 = vsyncadd [#allocation3], 4294967040 }
  0x27   :  { %4338 = dma.done.wait [#allocation6], 2112  }
  0x28   :  { %4339 = vsyncadd [#allocation6], 4294965184 }
  0x29   :  { %4340 = dma.done.wait [#allocation9], 2112  }
  0x2a   :  { %4341 = vsyncadd [#allocation9], 4294965184 }
  0x2b   :  { %4342 = dma.done.wait [#allocation12], 4096  }
  0x2c   :  { %4343 = vsyncadd [#allocation12], 4294963200 }
  0x2d   :  { %4344 = dma.done.wait [#allocation15], 128  }
  0x2e   :  { %4345 = vsyncadd [#allocation15], 4294967168 }
  0x2f   :  { %4346 = dma.done.wait [#allocation18], 128  }
  0x30   :  { %4347 = vsyncadd [#allocation18], 4294967168  ;;  %v224_v0 = vld [vmem:[#allocation5 + $0x18] sm:$0xff]  ;;  %v223_v1 = vld [vmem:[#allocation5 + $0x10] sm:$0xff]  ;;  %vm229_vm0 = vcmask 261120   ;;  %s4367_s12 = smov 64  }
  0x31   :  { %248 = vmatpush.msra.mxu0 %v224_v0  ;;  %v222_v2 = vld [vmem:[#allocation5 + $0x8] sm:$0xff]  ;;  %v221_v3 = vld [vmem:[#allocation5] sm:$0xff]  ;;  %v4523_v4 = vld [vmem:[#allocation2] sm:$0xff]  ;;  %s4368_s20 = smov 96   ;;  %s4369_s0 = smov 88   ;;  %vm262_vm1 = vcmask 64512  }
  0x32   :  { %v4527_v5 = vld [vmem:[#allocation2 + $0x8] sm:$0xff]  ;;  %v3830_v6 = vld [vmem:[#allocation7] ss:$0 sm:$0xff]  ;;  %s4370_s29 = smov 120   ;;  %s4371_s30 = smov 80   ;;  %vm824_vm2 = vcmask 130048  }
  0x33   :  { %249 = vmatpush.msra.mxu0 %v223_v1  ;;  %s4372_s15 = smov 112   ;;  %s4373_s5 = smov 104   ;;  %vm827_vm3 = vcmask 195584  }
  0x34   :  { %s4374_s16 = smov 72   ;;  %s4375_s2 = smov 56  }
  0x35   :  { %250 = vmatpush.msra.mxu0 %v222_v2  ;;  %s4376_s17 = smov 48   ;;  %s4377_s18 = smov 40  }
  0x36   :  { %s4378_s8 = smov 24  }
  0x37   :  { %251 = vmatpush.msra.mxu0 %v221_v3 }
  0x38   :  { %3651 = vmatmul.msk.f32.vlgmr.msra.gmra.mxu0 %vm229_vm0, %v4523_v4 }
  0x40   :  { %3652 = vmatmul.msk.f32.gmra.mxu0 %vm229_vm0, %v4527_v5 }
  0xb5   :  { %v253_v7 = vpop.f32.mrf.mxu0 }
  0xb6   :  { %v4531_v8 = vadd.f32 %v3830_v6, %v253_v7 }
  0xb8   :  { %340 = vrot.lane.b32.xlu2 %v4531_v8, %s4367_s12  ;;  %260 = vrot.lane.b32.xlu0 %v4531_v8, %s4368_s20 }
  0xbd   :  { %v256_v9 = vpop.f32.mrf.mxu0 }
  0xbe   :  { %v4537_v10 = vadd.f32 %v3830_v6, %v256_v9 }
  0xc0   :  { %288 = vrot.lane.b32.xlu1 %v4537_v10, %s4368_s20  ;;  %422 = vrot.lane.b32.xlu2 %v4537_v10, %s4369_s0 }
  0xc8   :  { %392 = vrot.lane.b32.xlu1 %v4531_v8, %s4370_s29  ;;  %420 = vrot.lane.b32.xlu2 %v4537_v10, %s4370_s29 }
  0xd0   :  { %394 = vrot.lane.b32.xlu2 %v4531_v8, %s4369_s0 }
  0xd8   :  { %528 = vrot.lane.b32.xlu2 %v4531_v8, %s4371_s30 }
  0xe0   :  { %526 = vrot.lane.b32.xlu2 %v4531_v8, %s4372_s15 }
  0xe8   :  { %660 = vrot.lane.b32.xlu2 %v4531_v8, %s4373_s5 }
  0xf0   :  { %690 = vrot.lane.b32.xlu2 %v4537_v10, %s4374_s16 }
 0x112   :  { %v341_v11 = vpop.permute.xlu2 %340 }
 0x11a   :  { %v423_v12 = vpop.permute.xlu2 %422 }
 0x122   :  { %v421_v13 = vpop.permute.xlu2 %420 }
 0x12a   :  { %v261_v14 = vpop.permute.xlu0 %260  ;;  %v395_v15 = vpop.permute.xlu2 %394 }
 0x12b   :  { %3653 = vmatpush.xpose.msk.msra.mxu1 %vm262_vm1, %v261_v14 }
 0x12e   :  { %3654 = vmatmul.msk.f32.vlgmr.msra.gmra.mxu1 %vm262_vm1, %v4531_v8 }
 0x12f   :  { %361 = vmatpush.msrb.mxu1 %v341_v11 }
 0x131   :  { %3659 = vmatpush.xpose.msk.msra.mxu1 %vm262_vm1, %v395_v15 }
 0x132   :  { %v289_v16 = vpop.permute.xlu1 %288  ;;  %v529_v17 = vpop.permute.xlu2 %528 }
 0x133   :  { %3655 = vmatpush.xpose.msk.msra.mxu2 %vm262_vm1, %v289_v16 }
 0x136   :  { %3656 = vmatmul.msk.f32.vlgmr.msra.gmra.mxu2 %vm262_vm1, %v4537_v10 }
 0x137   :  { %3661 = vmatpush.xpose.msk.msrb.mxu2 %vm262_vm1, %v423_v12 }
 0x13a   :  { %v527_v18 = vpop.permute.xlu2 %526  ;;  %v393_v36 = vpop.permute.xlu1 %392 }
 0x13b   :  { %3665 = vmatpush.xpose.msk.msra.mxu2 %vm262_vm1, %v529_v17 }
 0x13e   :  { %3662 = vmatmul.msk.f32.vlgmr.msrb.gmra.mxu2 %vm262_vm1, %v421_v13 }
 0x142   :  { %v661_v41 = vpop.permute.xlu2 %660 }
 0x146   :  { %3666 = vmatmul.msk.f32.vlgmr.msra.gmra.mxu2 %vm262_vm1, %v527_v18 }
 0x14a   :  { %v691_v43 = vpop.permute.xlu2 %690 }
 0x1ab   :  { %v284_v19 = vpop.f32.mrf.mxu1 }
 0x1ac   :  { %v314_v20 = vmul.f32 0.35355338, %v284_v19 }
 0x1ae   :  { %v316_v21 = vsel %vm262_vm1, %v314_v20, -inf }
 0x1af   :  { %317 = vmax.xlane.f32.xlu0 %v316_v21 }
 0x1b9   :  { %v311_v22 = vpop.f32.mrf.mxu2 }
 0x1ba   :  { %v315_v23 = vmul.f32 0.35355338, %v311_v22 }
 0x1bc   :  { %v319_v24 = vsel %vm262_vm1, %v315_v23, -inf }
 0x1bd   :  { %320 = vmax.xlane.f32.xlu2 %v319_v24 }
 0x1c1   :  { %v445_v25 = vpop.f32.mrf.mxu2 }
 0x1c2   :  { %v4574_v34 = vmul.f32 0.35355338, %v445_v25 }
 0x1c3   :  { %554 = vrot.lane.b32.xlu0 %v4537_v10, %s4372_s15 }
 0x1c4   :  { %v453_v35 = vsel %vm262_vm1, %v4574_v34, -inf }
 0x1c9   :  { %v551_v26 = vpop.f32.mrf.mxu2 }
 0x1ca   :  { %v582_v27 = vmul.f32 0.35355338, %v551_v26 }
 0x1cc   :  { %v584_v28 = vsel %vm262_vm1, %v582_v27, -inf }
 0x1ed   :  { %585 = vmax.xlane.f32.xlu0 %v584_v28 }
 0x1f5   :  { %454 = vmax.xlane.f32.xlu0 %v453_v35 }
 0x222   :  { %v318_v29 = vpop.xlane.xlu0 %317 }
 0x223   :  { %v322_v30 = vsub.f32 %v314_v20, %v318_v29 }
 0x225   :  { %v324_v31 = vmul.f32 1.442695, %v322_v30 }
 0x227   :  { %3862 = vpow2.f32 %v324_v31 }
 0x22d   :  { %v3863_v32 = vpop.eup %3862 }
 0x22e   :  { %v328_v33 = vsel %vm262_vm1, %v3863_v32, 0.0 }
 0x22f   :  { %329 = vadd.xlane.f32.xlu1 %v328_v33 }
 0x230   :  { %v321_v46 = vpop.xlane.xlu2 %320 }
 0x231   :  { %v323_v48 = vsub.f32 %v315_v23, %v321_v46 }
 0x233   :  { %v326_v49 = vmul.f32 1.442695, %v323_v48 }
 0x235   :  { %v555_v44 = vpop.permute.xlu0 %554 }
 0x248   :  { %662 = vrot.lane.b32.xlu1 %v4531_v8, %s4374_s16 }
 0x250   :  { %556 = vrot.lane.b32.xlu1 %v4537_v10, %s4371_s30 }
 0x258   :  { %688 = vrot.lane.b32.xlu1 %v4537_v10, %s4373_s5 }
 0x260   :  { %v586_v53 = vpop.xlane.xlu0 %585 }
 0x261   :  { %v590_v55 = vsub.f32 %v582_v27, %v586_v53 }
 0x263   :  { %v592_v57 = vmul.f32 1.442695, %v590_v55 }
 0x268   :  { %v455_v7 = vpop.xlane.xlu0 %454 }
 0x269   :  { %v457_v9 = vsub.f32 %v4574_v34, %v455_v7 }
 0x26b   :  { %v460_v11 = vmul.f32 1.442695, %v457_v9 }
 0x2a2   :  { %v330_v37 = vpop.xlane.xlu1 %329 }
 0x2a3   :  { %3864 = vrcp.f32 %v330_v37 }
 0x2a4   :  { %3866 = vpow2.f32 %v326_v49 }
 0x2a5   :  { %3868 = vpow2.f32 %v592_v57 }
 0x2a6   :  { %3870 = vpow2.f32 %v460_v11 }
 0x2a9   :  { %v3865_v38 = vpop.eup %3864 }
 0x2aa   :  { %v4584_v39 = vmul.f32 %v3865_v38, %v3863_v32  ;;  %v3867_v54 = vpop.eup %3866 }
 0x2ab   :  { %v331_v56 = vsel %vm262_vm1, %v3867_v54, 0.0  ;;  %v4601_v0 = vpop.eup %3868 }
 0x2ac   :  { %3657 = vmatmul.msk.f32.vlgmr.msrb.gmra.mxu1 %vm262_vm1, %v4584_v39  ;;  %v596_v1 = vsel %vm262_vm1, %v4601_v0, 0.0  ;;  %v4613_v12 = vpop.eup %3870 }
 0x2ad   :  { %v465_v13 = vsel %vm262_vm1, %v4613_v12, 0.0 }
 0x2b4   :  { %3660 = vmatmul.msk.f32.vlgmr.msra.gmra.mxu1 %vm262_vm1, %v393_v36 }
 0x2ba   :  { %v663_v40 = vpop.permute.xlu1 %662 }
 0x2bb   :  { %3671 = vmatpush.xpose.msk.msrb.mxu2 %vm262_vm1, %v663_v40 }
 0x2be   :  { %3672 = vmatmul.msk.f32.vlgmr.msrb.gmra.mxu2 %vm262_vm1, %v661_v41 }
 0x2c2   :  { %v557_v42 = vpop.permute.xlu1 %556 }
 0x2c3   :  { %3667 = vmatpush.xpose.msk.msrb.mxu0 %vm262_vm1, %v557_v42 }
 0x2c6   :  { %3668 = vmatmul.msk.f32.vlgmr.msrb.gmra.mxu0 %vm262_vm1, %v555_v44 }
 0x2c7   :  { %3673 = vmatpush.xpose.msk.msra.mxu0 %vm262_vm1, %v691_v43 }
 0x2ca   :  { %v689_v45 = vpop.permute.xlu1 %688 }
 0x2ce   :  { %3674 = vmatmul.msk.f32.vlgmr.msra.gmra.mxu0 %vm262_vm1, %v689_v45 }
 0x329   :  { %v4595_v47 = vpop.f32.mrf.mxu1 }
 0x331   :  { %v417_v50 = vpop.f32.mrf.mxu1 }
 0x332   :  { %v448_v51 = vmul.f32 0.35355338, %v417_v50 }
 0x334   :  { %v450_v52 = vsel %vm262_vm1, %v448_v51, -inf }
 0x335   :  { %451 = vmax.xlane.f32.xlu1 %v450_v52 }
 0x33d   :  { %332 = vadd.xlane.f32.xlu1 %v331_v56 }
 0x341   :  { %v685_v58 = vpop.f32.mrf.mxu2 }
 0x342   :  { %v716_v59 = vmul.f32 0.35355338, %v685_v58 }
 0x343   :  { %v579_v60 = vpop.f32.mrf.mxu0 }
 0x344   :  { %v583_v61 = vmul.f32 0.35355338, %v579_v60  ;;  %v718_v62 = vsel %vm262_vm1, %v716_v59, -inf }
 0x345   :  { %719 = vmax.xlane.f32.xlu2 %v718_v62 }
 0x346   :  { %v587_v63 = vsel %vm262_vm1, %v583_v61, -inf }
 0x347   :  { %588 = vmax.xlane.f32.xlu0 %v587_v63 }
 0x34b   :  { %v713_v2 = vpop.f32.mrf.mxu0 }
 0x34c   :  { %v717_v3 = vmul.f32 0.35355338, %v713_v2 }
 0x34d   :  { %597 = vadd.xlane.f32.xlu2 %v596_v1 }
 0x34e   :  { %v721_v6 = vsel %vm262_vm1, %v717_v3, -inf }
 0x355   :  { %722 = vmax.xlane.f32.xlu2 %v721_v6 }
 0x356   :  { %366 = vrot.lane.b32.xlu1 %v4537_v10, %s4367_s12 }
 0x35b   :  { %474 = vrot.lane.b32.xlu0 %v4531_v8, %s4375_s2 }
 0x35e   :  { %608 = vrot.lane.b32.xlu1 %v4531_v8, %s4376_s17 }
 0x385   :  { %466 = vadd.xlane.f32.xlu0 %v465_v13 }
 0x399   :  { %634 = vrot.lane.b32.xlu0 %v4537_v10, %s4376_s17 }
 0x3a8   :  { %v452_v14 = vpop.xlane.xlu1 %451 }
 0x3a9   :  { %v456_v18 = vsub.f32 %v448_v51, %v452_v14 }
 0x3ab   :  { %v458_v23 = vmul.f32 1.442695, %v456_v18  ;;  %v831_v18 = vld [vmem:[#allocation8 + $0x8] sm:$0xff] }
 0x3b0   :  { %v333_v19 = vpop.xlane.xlu1 %332 }
 0x3b8   :  { %v720_v15 = vpop.xlane.xlu2 %719 }
 0x3b9   :  { %v724_v16 = vsub.f32 %v716_v59, %v720_v15 }
 0x3ba   :  { %v589_v17 = vpop.xlane.xlu0 %588 }
 0x3bb   :  { %v726_v20 = vmul.f32 1.442695, %v724_v16  ;;  %v591_v21 = vsub.f32 %v583_v61, %v589_v17  ;;  %v833_v16 = vld [vmem:[#allocation8 + $0x18] sm:$0xff]  ;;  %v832_v17 = vld [vmem:[#allocation8 + $0x10] sm:$0xff] }
 0x3bc   :  { %856 = vmatpush.msra.mxu2 %v833_v16 }
 0x3bd   :  { %3872 = vpow2.f32 %v726_v20  ;;  %v594_v22 = vmul.f32 1.442695, %v591_v21 }
 0x3be   :  { %3874 = vrcp.f32 %v333_v19  ;;  %857 = vmatpush.msra.mxu2 %v832_v17  ;;  %v830_v19 = vld [vmem:[#allocation8] sm:$0xff] }
 0x3bf   :  { %3876 = vpow2.f32 %v594_v22 }
 0x3c0   :  { %3878 = vpow2.f32 %v458_v23  ;;  %v598_v35 = vpop.xlane.xlu2 %597  ;;  %858 = vmatpush.msra.mxu2 %v831_v18 }
 0x3c2   :  { %859 = vmatpush.msra.mxu2 %v830_v19 }
 0x3c3   :  { %v3873_v24 = vpop.eup %3872 }
 0x3c4   :  { %v3875_v25 = vpop.eup %3874  ;;  %v730_v26 = vsel %vm262_vm1, %v3873_v24, 0.0 }
 0x3c5   :  { %v3877_v27 = vpop.eup %3876  ;;  %731 = vadd.xlane.f32.xlu2 %v730_v26  ;;  %v337_v30 = vmul.f32 %v3875_v25, %v3867_v54 }
 0x3c6   :  { %v599_v28 = vsel %vm262_vm1, %v3877_v27, 0.0  ;;  %v3879_v31 = vpop.eup %3878 }
 0x3c7   :  { %600 = vadd.xlane.f32.xlu1 %v599_v28  ;;  %v462_v32 = vsel %vm262_vm1, %v3879_v31, 0.0 }
 0x3c8   :  { %v367_v29 = vpop.permute.xlu1 %366  ;;  %v723_v36 = vpop.xlane.xlu2 %722 }
 0x3c9   :  { %387 = vmatpush.msra.mxu3 %v367_v29  ;;  %v725_v37 = vsub.f32 %v717_v3, %v723_v36 }
 0x3ca   :  { %3658 = vmatmul.msk.f32.vlgmr.msra.gmra.mxu3 %vm262_vm1, %v337_v30 }
 0x3cb   :  { %v728_v38 = vmul.f32 1.442695, %v725_v37 }
 0x3cd   :  { %463 = vadd.xlane.f32.xlu2 %v462_v32  ;;  %v475_v33 = vpop.permute.xlu0 %474  ;;  %3880 = vpow2.f32 %v728_v38  ;;  %v3831_v32 = vld [vmem:[#allocation10] ss:$0 sm:$0xff] }
 0x3ce   :  { %495 = vmatpush.msrb.mxu3 %v475_v33  ;;  %3882 = vrcp.f32 %v598_v35 }
 0x3d0   :  { %v609_v34 = vpop.permute.xlu1 %608 }
 0x3d1   :  { %629 = vmatpush.msra.mxu3 %v609_v34 }
 0x3d3   :  { %v3881_v40 = vpop.eup %3880 }
 0x3d4   :  { %v733_v41 = vsel %vm262_vm1, %v3881_v40, 0.0  ;;  %v3883_v45 = vpop.eup %3882 }
 0x3d5   :  { %v604_v49 = vmul.f32 %v3883_v45, %v4601_v0 }
 0x3e0   :  { %768 = vrot.lane.b32.xlu1 %v4537_v10, %s4377_s18 }
 0x3e5   :  { %742 = vrot.lane.b32.xlu2 %v4531_v8, %s4377_s18 }
 0x3ed   :  { %500 = vrot.lane.b32.xlu2 %v4537_v10, %s4375_s2 }
 0x3f8   :  { %v467_v44 = vpop.xlane.xlu0 %466 }
 0x40b   :  { %v635_v59 = vpop.permute.xlu0 %634 }
 0x416   :  { %734 = vadd.xlane.f32.xlu2 %v733_v41  ;;  %v4379_v41 = vmov 32.0  }
 0x438   :  { %v732_v42 = vpop.xlane.xlu2 %731 }
 0x43a   :  { %v601_v50 = vpop.xlane.xlu1 %600 }
 0x440   :  { %v464_v43 = vpop.xlane.xlu2 %463 }
 0x441   :  { %3884 = vrcp.f32 %v464_v43 }
 0x442   :  { %3886 = vrcp.f32 %v732_v42 }
 0x443   :  { %3888 = vrcp.f32 %v467_v44 }
 0x444   :  { %3890 = vrcp.f32 %v601_v50 }
 0x447   :  { %v3885_v8 = vpop.eup %3884 }
 0x448   :  { %v743_v46 = vpop.permute.xlu2 %742  ;;  %v470_v10 = vmul.f32 %v3885_v8, %v3879_v31  ;;  %v3887_v48 = vpop.eup %3886 }
 0x449   :  { %v738_v52 = vmul.f32 %v3887_v48, %v3873_v24  ;;  %v3889_v54 = vpop.eup %3888 }
 0x44a   :  { %v472_v51 = vadd.f32 %v470_v10, %v4584_v39  ;;  %3663 = vmatmul.msk.f32.vlgmr.msrb.gmra.mxu3 %vm262_vm1, %v470_v10  ;;  %v471_v56 = vmul.f32 %v3889_v54, %v4613_v12  ;;  %v3891_v39 = vpop.eup %3890 }
 0x44b   :  { %763 = vmatpush.msrb.mxu3 %v743_v46  ;;  %v605_v61 = vmul.f32 %v3891_v39, %v3877_v27 }
 0x44c   :  { %v606_v53 = vadd.f32 %v604_v49, %v472_v51  ;;  %v473_v63 = vadd.f32 %v471_v56, %v337_v30 }
 0x44d   :  { %v389_v7 = vpop.f32.mrf.mxu3 }
 0x44e   :  { %v740_v55 = vadd.f32 %v738_v52, %v606_v53  ;;  %v607_v1 = vadd.f32 %v605_v61, %v473_v63 }
 0x450   :  { %v794_v57 = vmul.f32 0.25, %v740_v55  ;;  %v501_v58 = vpop.permute.xlu2 %500  ;;  %v935_v55 = vld [vmem:[#allocation11 + $0x18] sm:$0xff] }
 0x451   :  { %521 = vmatpush.msrb.mxu1 %v501_v58  ;;  %958 = vmatpush.msrb.mxu0 %v935_v55  ;;  %v932_v58 = vld [vmem:[#allocation11] sm:$0xff]  ;;  %v1069_v55 = vld [vmem:[#allocation5 + $0x30] sm:$0xff] }
 0x452   :  { %796 = vst.msk [vmem:[#allocation21] sm:$0xff] %vm262_vm1, %v794_v57  ;;  %v769_v60 = vpop.permute.xlu1 %768  ;;  %3664 = vmatmul.msk.f32.vlgmr.msrb.gmra.mxu1 %vm262_vm1, %v471_v56  ;;  %3669 = vmatmul.msk.f32.vlgmr.msra.gmra.mxu3 %vm262_vm1, %v604_v49  ;;  %v934_v56 = vld [vmem:[#allocation11 + $0x10] sm:$0xff]  ;;  %v933_v57 = vld [vmem:[#allocation11 + $0x8] sm:$0xff] }
 0x453   :  { %655 = vmatpush.msra.mxu1 %v635_v59  ;;  %959 = vmatpush.msrb.mxu0 %v934_v56  ;;  %v1068_v56 = vld [vmem:[#allocation5 + $0x28] sm:$0xff] }
 0x455   :  { %789 = vmatpush.msrb.mxu1 %v769_v60  ;;  %960 = vmatpush.msrb.mxu0 %v933_v57  ;;  %v1067_v57 = vld [vmem:[#allocation5 + $0x20] sm:$0xff] }
 0x457   :  { %961 = vmatpush.msrb.mxu0 %v932_v58 }
 0x45a   :  { %3670 = vmatmul.msk.f32.vlgmr.msra.gmra.mxu1 %vm262_vm1, %v605_v61  ;;  %3675 = vmatmul.msk.f32.vlgmr.msrb.gmra.mxu3 %vm262_vm1, %v738_v52 }
 0x489   :  { %v735_v62 = vpop.xlane.xlu2 %734 }
 0x48a   :  { %3892 = vrcp.f32 %v735_v62 }
 0x48b   :  { %3894 = vrcp.f32 %v4379_v41 }
 0x490   :  { %v3893_v0 = vpop.eup %3892 }
 0x491   :  { %v739_v2 = vmul.f32 %v3893_v0, %v3881_v40  ;;  %v3895_v42 = vpop.eup %3894 }
 0x492   :  { %v878_v43 = vmul.f32 32.0, %v3895_v42  ;;  %vm882_vm4 = vweird.f32 %v3895_v42 }
 0x493   :  { %v741_v3 = vadd.f32 %v739_v2, %v607_v1  ;;  %3676 = vmatmul.msk.f32.vlgmr.msrb.gmra.mxu1 %vm262_vm1, %v739_v2 }
 0x494   :  { %v879_v44 = vsub.f32 1.0, %v878_v43 }
 0x495   :  { %v795_v6 = vmul.f32 0.25, %v741_v3  ;;  %v3832_v3 = vld [vmem:[%s5166_s9] ss:$0 sm:$0xff] }
 0x496   :  { %v880_v45 = vmul.f32 %v3895_v42, %v879_v44 }
 0x497   :  { %797 = vst.msk [vmem:[#allocation21 + $0x8] sm:$0xff] %vm262_vm1, %v795_v6 }
 0x498   :  { %v881_v8 = vadd.f32 %v3895_v42, %v880_v45 }
 0x49a   :  { %v4660_v46 = vsel %vm882_vm4, %v3895_v42, %v881_v8 }
 0x4cd   :  { %v497_v9 = vpop.f32.mrf.mxu3 }
 0x4ce   :  { %800 = vrot.lane.b32.xlu0 %v497_v9, %s4354_s22  ;;  %v3833_v9 = vld [vmem:[#allocation16] ss:$0 sm:$0xff] }
 0x4cf   :  { %v523_v11 = vpop.f32.mrf.mxu1 }
 0x4d0   :  { %802 = vrot.lane.b32.xlu2 %v523_v11, %s4354_s22 }
 0x4d5   :  { %v631_v12 = vpop.f32.mrf.mxu3 }
 0x4d6   :  { %808 = vrot.lane.b32.xlu1 %v631_v12, %s4358_s19 }
 0x4d7   :  { %v657_v13 = vpop.f32.mrf.mxu1 }
 0x4dd   :  { %v765_v14 = vpop.f32.mrf.mxu3 }
 0x4de   :  { %816 = vrot.lane.b32.xlu0 %v765_v14, %s4378_s8  ;;  %810 = vrot.lane.b32.xlu1 %v657_v13, %s4358_s19  ;;  %v974_v13 = vld [vmem:[#allocation13 + $0x18] sm:$0xff] }
 0x4df   :  { %997 = vmatpush.msra.mxu3 %v974_v13 }
 0x510   :  { %v791_v15 = vpop.f32.mrf.mxu1 }
 0x511   :  { %818 = vrot.lane.b32.xlu0 %v791_v15, %s4378_s8 }
 0x52a   :  { %v803_v26 = vpop.permute.xlu2 %802 }
 0x52b   :  { %v823_v28 = vsel %vm262_vm1, %v389_v7, %v803_v26 }
 0x540   :  { %v801_v20 = vpop.permute.xlu0 %800 }
 0x541   :  { %v822_v22 = vsel %vm262_vm1, %v4595_v47, %v801_v20 }
 0x548   :  { %v809_v21 = vpop.permute.xlu1 %808 }
 0x549   :  { %v825_v23 = vsel %vm824_vm2, %v822_v22, %v809_v21 }
 0x550   :  { %v817_v24 = vpop.permute.xlu0 %816  ;;  %v811_v27 = vpop.permute.xlu1 %810 }
 0x551   :  { %v828_v25 = vsel %vm827_vm3, %v825_v23, %v817_v24  ;;  %v826_v29 = vsel %vm824_vm2, %v823_v28, %v811_v27  ;;  %v973_v27 = vld [vmem:[#allocation13 + $0x10] sm:$0xff]  ;;  %v972_v28 = vld [vmem:[#allocation13 + $0x8] sm:$0xff] }
 0x552   :  { %3677 = vmatmul.msk.f32.vlgmr.msra.gmra.mxu2 %vm229_vm0, %v828_v25  ;;  %998 = vmatpush.msra.mxu3 %v973_v27 }
 0x554   :  { %999 = vmatpush.msra.mxu3 %v972_v28 }
 0x583   :  { %v819_v30 = vpop.permute.xlu0 %818 }
 0x584   :  { %v829_v31 = vsel %vm827_vm3, %v826_v29, %v819_v30  ;;  %v971_v29 = vld [vmem:[#allocation13] sm:$0xff]  ;;  %v3834_v30 = vld [vmem:[%s5163_s6] ss:$0 sm:$0xff] }
 0x585   :  { %3678 = vmatmul.msk.f32.gmra.mxu2 %vm229_vm0, %v829_v31  ;;  %1000 = vmatpush.msra.mxu3 %v971_v29 }
 0x5d5   :  { %v861_v47 = vpop.f32.mrf.mxu2 }
 0x5d6   :  { %v862_v33 = vadd.f32 %v3831_v32, %v861_v47 }
 0x5d8   :  { %v867_v34 = vadd.f32 %v862_v33, %v4523_v4 }
 0x5da   :  { %v871_v35 = vsel %vm229_vm0, %v867_v34, 0.0 }
 0x5db   :  { %872 = vadd.xlane.f32.xlu1 %v871_v35 }
 0x608   :  { %v864_v36 = vpop.f32.mrf.mxu2 }
 0x609   :  { %v865_v37 = vadd.f32 %v3831_v32, %v864_v36  ;;  %v3835_v36 = vld [vmem:[#allocation14] ss:$0 sm:$0xff] }
 0x60b   :  { %v868_v38 = vadd.f32 %v865_v37, %v4527_v5 }
 0x60d   :  { %v874_v40 = vsel %vm229_vm0, %v868_v38, 0.0 }
 0x60e   :  { %875 = vadd.xlane.f32.xlu0 %v874_v40 }
 0x64e   :  { %v873_v4 = vpop.xlane.xlu1 %872 }
 0x64f   :  { %v884_v10 = vmul.f32 %v4660_v46, %v873_v4 }
 0x651   :  { %v886_v48 = vsub.f32 %v867_v34, %v884_v10 }
 0x653   :  { %v888_v49 = vmul.f32 %v886_v48, %v886_v48 }
 0x655   :  { %v890_v5 = vsel %vm229_vm0, %v888_v49, 0.0 }
 0x656   :  { %891 = vadd.xlane.f32.xlu2 %v890_v5 }
 0x681   :  { %v876_v50 = vpop.xlane.xlu0 %875 }
 0x682   :  { %v885_v51 = vmul.f32 %v4660_v46, %v876_v50 }
 0x684   :  { %v887_v52 = vsub.f32 %v868_v38, %v885_v51 }
 0x686   :  { %v889_v53 = vmul.f32 %v887_v52, %v887_v52 }
 0x688   :  { %v893_v54 = vsel %vm229_vm0, %v889_v53, 0.0 }
 0x689   :  { %894 = vadd.xlane.f32.xlu1 %v893_v54  ;;  %v1070_v54 = vld [vmem:[#allocation5 + $0x38] sm:$0xff] }
 0x68a   :  { %1094 = vmatpush.msra.mxu1 %v1070_v54 }
 0x68c   :  { %1095 = vmatpush.msra.mxu1 %v1069_v55 }
 0x68e   :  { %1096 = vmatpush.msra.mxu1 %v1068_v56 }
 0x690   :  { %1097 = vmatpush.msra.mxu1 %v1067_v57 }
 0x6c9   :  { %v892_v59 = vpop.xlane.xlu2 %891 }
 0x6ca   :  { %v896_v60 = vmul.f32 %v892_v59, %v4660_v46 }
 0x6cc   :  { %v898_v39 = vadd.f32 1e-05, %v896_v60 }
 0x6ce   :  { %3896 = vrsqrt.f32 %v898_v39  ;;  %vm906_vm6 = vweird.f32 %v898_v39 }
 0x6d4   :  { %v3897_v61 = vpop.eup %3896 }
 0x6d5   :  { %v901_v62 = vmul.f32 %v3897_v61, %v898_v39  ;;  %vm907_vm5 = vweird.f32 %v3897_v61 }
 0x6d6   :  { %vm908_vm7 = vmor %vm906_vm6, %vm907_vm5 }
 0x6d7   :  { %v902_v63 = vmul.f32 %v3897_v61, %v901_v62 }
 0x6d9   :  { %v903_v0 = vmul.f32 0.5, %v902_v63 }
 0x6db   :  { %v904_v1 = vsub.f32 1.5, %v903_v0 }
 0x6dd   :  { %v905_v2 = vmul.f32 %v3897_v61, %v904_v1 }
 0x6df   :  { %v909_v6 = vsel %vm908_vm7, %v3897_v61, %v905_v2  ;;  %v3836_v2 = vld [vmem:[#allocation17] ss:$0 sm:$0xff] }
 0x6e0   :  { %v920_v7 = vmul.f32 %v909_v6, %v886_v48 }
 0x6e2   :  { %v925_v11 = vmul.f32 %v3832_v3, %v920_v7  ;;  %v3837_v7 = vld [vmem:[#allocation19] ss:$0 sm:$0xff] }
 0x6e4   :  { %v930_v12 = vadd.f32 %v3833_v9, %v925_v11 }
 0x6e6   :  { %3679 = vmatmul.msk.f32.vlgmr.msrb.gmra.mxu0 %vm229_vm0, %v930_v12 }
 0x6fc   :  { %v895_v14 = vpop.xlane.xlu1 %894 }
 0x6fd   :  { %v897_v15 = vmul.f32 %v895_v14, %v4660_v46 }
 0x6ff   :  { %v899_v16 = vadd.f32 1e-05, %v897_v15 }
 0x701   :  { %3898 = vrsqrt.f32 %v899_v16  ;;  %vm916_vm9 = vweird.f32 %v899_v16 }
 0x707   :  { %v3899_v17 = vpop.eup %3898 }
 0x708   :  { %v911_v18 = vmul.f32 %v3899_v17, %v899_v16  ;;  %vm917_vm8 = vweird.f32 %v3899_v17 }
 0x709   :  { %vm918_vm10 = vmor %vm916_vm9, %vm917_vm8 }
 0x70a   :  { %v912_v19 = vmul.f32 %v3899_v17, %v911_v18 }
 0x70c   :  { %v913_v20 = vmul.f32 0.5, %v912_v19 }
 0x70e   :  { %v914_v21 = vsub.f32 1.5, %v913_v20 }
 0x710   :  { %v915_v22 = vmul.f32 %v3899_v17, %v914_v21 }
 0x712   :  { %v919_v23 = vsel %vm918_vm10, %v3899_v17, %v915_v22 }
 0x713   :  { %v921_v24 = vmul.f32 %v919_v23, %v887_v52 }
 0x715   :  { %v926_v25 = vmul.f32 %v3832_v3, %v921_v24 }
 0x717   :  { %v931_v26 = vadd.f32 %v3833_v9, %v926_v25  ;;  %v3838_v25 = vld [vmem:[#allocation7 + $0x1] ss:$0 sm:$0xff] }
 0x719   :  { %3680 = vmatmul.msk.f32.gmra.mxu0 %vm229_vm0, %v931_v26 }
 0x763   :  { %v963_v31 = vpop.f32.mrf.mxu0 }
 0x764   :  { %v964_v32 = vadd.f32 %v3834_v30, %v963_v31 }
 0x766   :  { %v969_v47 = vmax.f32 %v964_v32, 0.0 }
 0x768   :  { %3681 = vmatmul.msk.f32.vlgmr.msra.gmra.mxu3 %vm229_vm0, %v969_v47 }
 0x796   :  { %v966_v33 = vpop.f32.mrf.mxu0 }
 0x797   :  { %v967_v34 = vadd.f32 %v3834_v30, %v966_v33 }
 0x799   :  { %v970_v35 = vmax.f32 %v967_v34, 0.0 }
 0x79b   :  { %3682 = vmatmul.msk.f32.gmra.mxu3 %vm229_vm0, %v970_v35 }
 0x7eb   :  { %v1002_v37 = vpop.f32.mrf.mxu3 }
 0x7ec   :  { %v1003_v38 = vadd.f32 %v3835_v36, %v1002_v37 }
 0x7ee   :  { %v1008_v40 = vadd.f32 %v1003_v38, %v930_v12 }
 0x7f0   :  { %v1012_v41 = vsel %vm229_vm0, %v1008_v40, 0.0 }
 0x7f1   :  { %1013 = vadd.xlane.f32.xlu0 %v1012_v41 }
 0x81e   :  { %v1005_v42 = vpop.f32.mrf.mxu3 }
 0x81f   :  { %v1006_v43 = vadd.f32 %v3835_v36, %v1005_v42 }
 0x821   :  { %v1009_v44 = vadd.f32 %v1006_v43, %v931_v26 }
 0x823   :  { %v1015_v45 = vsel %vm229_vm0, %v1009_v44, 0.0 }
 0x824   :  { %1016 = vadd.xlane.f32.xlu1 %v1015_v45 }
 0x864   :  { %v1014_v8 = vpop.xlane.xlu0 %1013 }
 0x865   :  { %v1018_v4 = vmul.f32 %v1014_v8, %v4660_v46 }
 0x867   :  { %v1020_v10 = vsub.f32 %v1008_v40, %v1018_v4 }
 0x869   :  { %v1022_v48 = vmul.f32 %v1020_v10, %v1020_v10 }
 0x86b   :  { %v1024_v49 = vsel %vm229_vm0, %v1022_v48, 0.0 }
 0x86c   :  { %1025 = vadd.xlane.f32.xlu2 %v1024_v49 }
 0x897   :  { %v1017_v5 = vpop.xlane.xlu1 %1016 }
 0x898   :  { %v1019_v50 = vmul.f32 %v1017_v5, %v4660_v46 }
 0x89a   :  { %v1021_v51 = vsub.f32 %v1009_v44, %v1019_v50 }
 0x89c   :  { %v1023_v52 = vmul.f32 %v1021_v51, %v1021_v51 }
 0x89e   :  { %v1027_v53 = vsel %vm229_vm0, %v1023_v52, 0.0 }
 0x89f   :  { %1028 = vadd.xlane.f32.xlu0 %v1027_v53 }
 0x8df   :  { %v1026_v58 = vpop.xlane.xlu2 %1025 }
 0x8e0   :  { %v1030_v59 = vmul.f32 %v1026_v58, %v4660_v46 }
 0x8e2   :  { %v1032_v60 = vadd.f32 1e-05, %v1030_v59 }
 0x8e4   :  { %3900 = vrsqrt.f32 %v1032_v60  ;;  %vm1040_vm12 = vweird.f32 %v1032_v60 }
 0x8ea   :  { %v3901_v39 = vpop.eup %3900 }
 0x8eb   :  { %v1035_v61 = vmul.f32 %v3901_v39, %v1032_v60  ;;  %vm1041_vm11 = vweird.f32 %v3901_v39 }
 0x8ec   :  { %vm1042_vm13 = vmor %vm1040_vm12, %vm1041_vm11 }
 0x8ed   :  { %v1036_v62 = vmul.f32 %v3901_v39, %v1035_v61 }
 0x8ef   :  { %v1037_v63 = vmul.f32 0.5, %v1036_v62 }
 0x8f1   :  { %v1038_v0 = vsub.f32 1.5, %v1037_v63 }
 0x8f3   :  { %v1039_v1 = vmul.f32 %v3901_v39, %v1038_v0 }
 0x8f5   :  { %v1043_v3 = vsel %vm1042_vm13, %v3901_v39, %v1039_v1 }
 0x8f6   :  { %v1054_v6 = vmul.f32 %v1043_v3, %v1020_v10 }
 0x8f8   :  { %v1059_v9 = vmul.f32 %v3836_v2, %v1054_v6 }
 0x8fa   :  { %v4685_v11 = vadd.f32 %v3837_v7, %v1059_v9 }
 0x8fc   :  { %3683 = vmatmul.msk.f32.vlgmr.msra.gmra.mxu1 %vm229_vm0, %v4685_v11 }
 0x912   :  { %v1029_v12 = vpop.xlane.xlu0 %1028 }
 0x913   :  { %v1031_v13 = vmul.f32 %v1029_v12, %v4660_v46 }
 0x915   :  { %v1033_v14 = vadd.f32 1e-05, %v1031_v13 }
 0x917   :  { %3902 = vrsqrt.f32 %v1033_v14  ;;  %vm1050_vm15 = vweird.f32 %v1033_v14 }
 0x91d   :  { %v3903_v15 = vpop.eup %3902 }
 0x91e   :  { %v1045_v16 = vmul.f32 %v3903_v15, %v1033_v14  ;;  %vm1051_vm14 = vweird.f32 %v3903_v15 }
 0x91f   :  { %vm1052_vm4 = vmor %vm1050_vm15, %vm1051_vm14 }
 0x920   :  { %v1046_v17 = vmul.f32 %v3903_v15, %v1045_v16 }
 0x922   :  { %v1047_v18 = vmul.f32 0.5, %v1046_v17 }
 0x924   :  { %v1048_v19 = vsub.f32 1.5, %v1047_v18 }
 0x926   :  { %v1049_v20 = vmul.f32 %v3903_v15, %v1048_v19 }
 0x928   :  { %v1053_v21 = vsel %vm1052_vm4, %v3903_v15, %v1049_v20 }
 0x929   :  { %v1055_v22 = vmul.f32 %v1053_v21, %v1021_v51 }
 0x92b   :  { %v1060_v23 = vmul.f32 %v3836_v2, %v1055_v22 }
 0x92d   :  { %v4690_v24 = vadd.f32 %v3837_v7, %v1060_v23 }
 0x92f   :  { %3684 = vmatmul.msk.f32.gmra.mxu1 %vm229_vm0, %v4690_v24 }
 0x979   :  { %v1099_v26 = vpop.f32.mrf.mxu1 }
 0x97a   :  { %v4694_v27 = vadd.f32 %v3838_v25, %v1099_v26 }
 0x97c   :  { %1237 = vrot.lane.b32.xlu0 %v4694_v27, %s4370_s29  ;;  %1239 = vrot.lane.b32.xlu2 %v4694_v27, %s4369_s0 }
 0x97d   :  { %1106 = vrot.lane.b32.xlu1 %v4694_v27, %s4368_s20 }
 0x984   :  { %1373 = vrot.lane.b32.xlu0 %v4694_v27, %s4371_s30  ;;  %1507 = vrot.lane.b32.xlu2 %v4694_v27, %s4374_s16 }
 0x985   :  { %1371 = vrot.lane.b32.xlu1 %v4694_v27, %s4372_s15 }
 0x98c   :  { %1505 = vrot.lane.b32.xlu0 %v4694_v27, %s4373_s5 }
 0x9ac   :  { %v1102_v28 = vpop.f32.mrf.mxu1 }
 0x9ad   :  { %v4710_v29 = vadd.f32 %v3838_v25, %v1102_v28 }
 0x9af   :  { %1265 = vrot.lane.b32.xlu0 %v4710_v29, %s4370_s29  ;;  %1267 = vrot.lane.b32.xlu2 %v4710_v29, %s4369_s0 }
 0x9b0   :  { %1133 = vrot.lane.b32.xlu1 %v4710_v29, %s4368_s20 }
 0x9b7   :  { %1535 = vrot.lane.b32.xlu0 %v4710_v29, %s4374_s16  ;;  %1399 = vrot.lane.b32.xlu2 %v4710_v29, %s4372_s15 }
 0x9b8   :  { %1401 = vrot.lane.b32.xlu1 %v4710_v29, %s4371_s30 }
 0x9bf   :  { %1185 = vrot.lane.b32.xlu2 %v4694_v27, %s4367_s12 }
 0x9c0   :  { %1533 = vrot.lane.b32.xlu1 %v4710_v29, %s4373_s5 }
 0x9c8   :  { %1453 = vrot.lane.b32.xlu1 %v4694_v27, %s4376_s17 }
 0x9d6   :  { %v1240_v32 = vpop.permute.xlu2 %1239 }
 0x9de   :  { %v1508_v33 = vpop.permute.xlu2 %1507 }
 0x9ee   :  { %v1238_v30 = vpop.permute.xlu0 %1237 }
 0x9ef   :  { %v1107_v31 = vpop.permute.xlu1 %1106 }
 0x9f0   :  { %3685 = vmatpush.xpose.msk.msrb.mxu2 %vm262_vm1, %v1107_v31 }
 0x9f3   :  { %3686 = vmatmul.msk.f32.vlgmr.msrb.gmra.mxu2 %vm262_vm1, %v4694_v27 }
 0x9f4   :  { %3691 = vmatpush.xpose.msk.msra.mxu2 %vm262_vm1, %v1240_v32 }
 0x9f6   :  { %v1374_v47 = vpop.permute.xlu0 %1373 }
 0x9f7   :  { %v1372_v34 = vpop.permute.xlu1 %1371 }
 0x9f8   :  { %3697 = vmatpush.xpose.msk.msrb.mxu2 %vm262_vm1, %v1374_v47 }
 0x9fb   :  { %3692 = vmatmul.msk.f32.vlgmr.msra.gmra.mxu2 %vm262_vm1, %v1238_v30 }
 0x9fc   :  { %3703 = vmatpush.xpose.msk.msra.mxu2 %vm262_vm1, %v1508_v33 }
 0x9fe   :  { %v1506_v36 = vpop.permute.xlu0 %1505 }
 0xa03   :  { %3698 = vmatmul.msk.f32.vlgmr.msrb.gmra.mxu2 %vm262_vm1, %v1372_v34 }
 0xa09   :  { %v1268_v35 = vpop.permute.xlu2 %1267 }
 0xa0b   :  { %3704 = vmatmul.msk.f32.vlgmr.msra.gmra.mxu2 %vm262_vm1, %v1506_v36 }
 0xa11   :  { %v1400_v37 = vpop.permute.xlu2 %1399 }
 0xa19   :  { %v1186_v38 = vpop.permute.xlu2 %1185 }
 0xa1a   :  { %1206 = vmatpush.msrb.mxu3 %v1186_v38 }
 0xa21   :  { %v1266_v41 = vpop.permute.xlu0 %1265 }
 0xa22   :  { %v1134_v40 = vpop.permute.xlu1 %1133 }
 0xa23   :  { %3687 = vmatpush.xpose.msk.msra.mxu0 %vm262_vm1, %v1134_v40 }
 0xa26   :  { %3688 = vmatmul.msk.f32.vlgmr.msra.gmra.mxu0 %vm262_vm1, %v4710_v29 }
 0xa27   :  { %3693 = vmatpush.xpose.msk.msrb.mxu0 %vm262_vm1, %v1268_v35 }
 0xa29   :  { %v1536_v43 = vpop.permute.xlu0 %1535 }
 0xa2a   :  { %v1402_v42 = vpop.permute.xlu1 %1401 }
 0xa2b   :  { %3699 = vmatpush.xpose.msk.msra.mxu0 %vm262_vm1, %v1402_v42 }
 0xa2e   :  { %3694 = vmatmul.msk.f32.vlgmr.msrb.gmra.mxu0 %vm262_vm1, %v1266_v41 }
 0xa2f   :  { %3705 = vmatpush.xpose.msk.msrb.mxu0 %vm262_vm1, %v1536_v43 }
 0xa32   :  { %v1534_v44 = vpop.permute.xlu1 %1533 }
 0xa36   :  { %3700 = vmatmul.msk.f32.vlgmr.msra.gmra.mxu0 %vm262_vm1, %v1400_v37 }
 0xa3a   :  { %v1454_v12 = vpop.permute.xlu1 %1453 }
 0xa3e   :  { %3706 = vmatmul.msk.f32.vlgmr.msrb.gmra.mxu0 %vm262_vm1, %v1534_v44 }
 0xa76   :  { %v1129_v45 = vpop.f32.mrf.mxu2 }
 0xa77   :  { %v1159_v8 = vmul.f32 0.35355338, %v1129_v45 }
 0xa79   :  { %v1161_v4 = vsel %vm262_vm1, %v1159_v8, -inf }
 0xa7a   :  { %1162 = vmax.xlane.f32.xlu2 %v1161_v4 }
 0xa7e   :  { %v1262_v10 = vpop.f32.mrf.mxu2 }
 0xa7f   :  { %v1293_v54 = vmul.f32 0.35355338, %v1262_v10 }
 0xa81   :  { %v1295_v57 = vsel %vm262_vm1, %v1293_v54, -inf }
 0xa86   :  { %v1396_v48 = vpop.f32.mrf.mxu2 }
 0xa87   :  { %v1427_v59 = vmul.f32 0.35355338, %v1396_v48 }
 0xa89   :  { %v1429_v60 = vsel %vm262_vm1, %v1427_v59, -inf }
 0xa8e   :  { %v1530_v49 = vpop.f32.mrf.mxu2 }
 0xa8f   :  { %v1561_v5 = vmul.f32 0.35355338, %v1530_v49 }
 0xa91   :  { %v1563_v50 = vsel %vm262_vm1, %v1561_v5, -inf }
 0xa92   :  { %1564 = vmax.xlane.f32.xlu2 %v1563_v50 }
 0xaa3   :  { %v1156_v51 = vpop.f32.mrf.mxu0 }
 0xaa4   :  { %v1160_v52 = vmul.f32 0.35355338, %v1156_v51 }
 0xaa6   :  { %v1164_v53 = vsel %vm262_vm1, %v1160_v52, -inf }
 0xaa7   :  { %1165 = vmax.xlane.f32.xlu0 %v1164_v53 }
 0xaab   :  { %v1290_v55 = vpop.f32.mrf.mxu0 }
 0xaac   :  { %v1294_v56 = vmul.f32 0.35355338, %v1290_v55 }
 0xaae   :  { %v1298_v58 = vsel %vm262_vm1, %v1294_v56, -inf }
 0xaaf   :  { %1296 = vmax.xlane.f32.xlu0 %v1295_v57  ;;  %1299 = vmax.xlane.f32.xlu1 %v1298_v58 }
 0xab3   :  { %v1424_v39 = vpop.f32.mrf.mxu0 }
 0xab4   :  { %v4756_v61 = vmul.f32 0.35355338, %v1424_v39 }
 0xab6   :  { %v1432_v62 = vsel %vm262_vm1, %v4756_v61, -inf }
 0xab7   :  { %1430 = vmax.xlane.f32.xlu1 %v1429_v60 }
 0xabb   :  { %v1558_v63 = vpop.f32.mrf.mxu0 }
 0xabc   :  { %v1562_v2 = vmul.f32 0.35355338, %v1558_v63 }
 0xabe   :  { %v1566_v6 = vsel %vm262_vm1, %v1562_v2, -inf }
 0xac3   :  { %1319 = vrot.lane.b32.xlu0 %v4694_v27, %s4375_s2 }
 0xaed   :  { %v1163_v0 = vpop.xlane.xlu2 %1162  ;;  %1433 = vmax.xlane.f32.xlu0 %v1432_v62 }
 0xaee   :  { %v1167_v1 = vsub.f32 %v1159_v8, %v1163_v0 }
 0xaf0   :  { %v1169_v3 = vmul.f32 1.442695, %v1167_v1 }
 0xaf2   :  { %3904 = vpow2.f32 %v1169_v3 }
 0xaf5   :  { %1567 = vmax.xlane.f32.xlu0 %v1566_v6 }
 0xaf8   :  { %v3905_v7 = vpop.eup %3904 }
 0xaf9   :  { %v1173_v9 = vsel %vm262_vm1, %v3905_v7, 0.0 }
 0xafa   :  { %1174 = vadd.xlane.f32.xlu2 %v1173_v9 }
 0xb05   :  { %v1565_v22 = vpop.xlane.xlu2 %1564 }
 0xb12   :  { %1587 = vrot.lane.b32.xlu2 %v4694_v27, %s4377_s18  ;;  %v1569_v27 = vsub.f32 %v1561_v5, %v1565_v22 }
 0xb14   :  { %v1571_v47 = vmul.f32 1.442695, %v1569_v27 }
 0xb1a   :  { %v1166_v13 = vpop.xlane.xlu0 %1165 }
 0xb1b   :  { %v1168_v20 = vsub.f32 %v1160_v52, %v1166_v13 }
 0xb1d   :  { %v1171_v26 = vmul.f32 1.442695, %v1168_v20 }
 0xb22   :  { %v1300_v14 = vpop.xlane.xlu1 %1299  ;;  %v1297_v15 = vpop.xlane.xlu0 %1296 }
 0xb23   :  { %v1302_v16 = vsub.f32 %v1294_v56, %v1300_v14  ;;  %v1301_v17 = vsub.f32 %v1293_v54, %v1297_v15 }
 0xb25   :  { %v1305_v18 = vmul.f32 1.442695, %v1302_v16  ;;  %v1303_v19 = vmul.f32 1.442695, %v1301_v17 }
 0xb27   :  { %3906 = vpow2.f32 %v1305_v18 }
 0xb28   :  { %3908 = vpow2.f32 %v1303_v19 }
 0xb2a   :  { %v1431_v21 = vpop.xlane.xlu1 %1430 }
 0xb2b   :  { %v1435_v23 = vsub.f32 %v1427_v59, %v1431_v21 }
 0xb2d   :  { %v4764_v25 = vpop.eup %3906  ;;  %v1437_v28 = vmul.f32 1.442695, %v1435_v23 }
 0xb2e   :  { %v3909_v30 = vpop.eup %3908  ;;  %v1310_v31 = vsel %vm262_vm1, %v4764_v25, 0.0 }
 0xb2f   :  { %3910 = vpow2.f32 %v1437_v28  ;;  %1311 = vadd.xlane.f32.xlu0 %v1310_v31  ;;  %v1307_v32 = vsel %vm262_vm1, %v3909_v30, 0.0 }
 0xb30   :  { %1308 = vadd.xlane.f32.xlu1 %v1307_v32  ;;  %3912 = vpow2.f32 %v1171_v26 }
 0xb31   :  { %3914 = vpow2.f32 %v1571_v47 }
 0xb35   :  { %v3911_v33 = vpop.eup %3910  ;;  %v1320_v34 = vpop.permute.xlu0 %1319 }
 0xb36   :  { %1340 = vmatpush.msra.mxu3 %v1320_v34  ;;  %v1441_v35 = vsel %vm262_vm1, %v3911_v33, 0.0  ;;  %v3913_v36 = vpop.eup %3912  ;;  %v1677_v34 = vld [vmem:[#allocation8 + $0x30] sm:$0xff] }
 0xb37   :  { %v1176_v37 = vsel %vm262_vm1, %v3913_v36, 0.0  ;;  %v3915_v38 = vpop.eup %3914 }
 0xb38   :  { %1442 = vadd.xlane.f32.xlu1 %v1441_v35  ;;  %v1575_v40 = vsel %vm262_vm1, %v3915_v38, 0.0 }
 0xb3b   :  { %1177 = vadd.xlane.f32.xlu2 %v1176_v37  ;;  %v1675_v37 = vld [vmem:[#allocation8 + $0x20] sm:$0xff] }
 0xb40   :  { %1576 = vadd.xlane.f32.xlu1 %v1575_v40 }
 0xb53   :  { %1345 = vrot.lane.b32.xlu2 %v4710_v29, %s4375_s2 }
 0xb59   :  { %1211 = vrot.lane.b32.xlu1 %v4710_v29, %s4367_s12 }
 0xb5b   :  { %1613 = vrot.lane.b32.xlu2 %v4710_v29, %s4377_s18 }
 0xb60   :  { %v1434_v41 = vpop.xlane.xlu0 %1433 }
 0xb61   :  { %v1436_v8 = vsub.f32 %v4756_v61, %v1434_v41 }
 0xb63   :  { %v1439_v49 = vmul.f32 1.442695, %v1436_v8 }
 0xb68   :  { %v1568_v42 = vpop.xlane.xlu0 %1567 }
 0xb69   :  { %v1570_v43 = vsub.f32 %v1562_v2, %v1568_v42 }
 0xb6b   :  { %v1573_v44 = vmul.f32 1.442695, %v1570_v43 }
 0xb6d   :  { %3916 = vpow2.f32 %v1573_v44  ;;  %v1175_v45 = vpop.xlane.xlu2 %1174 }
 0xb6e   :  { %3918 = vrcp.f32 %v1175_v45 }
 0xb6f   :  { %3920 = vpow2.f32 %v1439_v49 }
 0xb73   :  { %v3917_v4 = vpop.eup %3916 }
 0xb74   :  { %v3919_v10 = vpop.eup %3918  ;;  %v1578_v48 = vsel %vm262_vm1, %v3917_v4, 0.0 }
 0xb75   :  { %v1181_v5 = vmul.f32 %v3919_v10, %v3905_v7  ;;  %1579 = vadd.xlane.f32.xlu0 %v1578_v48  ;;  %v3921_v50 = vpop.eup %3920  ;;  %v1588_v56 = vpop.permute.xlu2 %1587 }
 0xb76   :  { %v1444_v51 = vsel %vm262_vm1, %v3921_v50, 0.0 }
 0xb77   :  { %3689 = vmatmul.msk.f32.vlgmr.msrb.gmra.mxu3 %vm262_vm1, %v1181_v5 }
 0xb78   :  { %1474 = vmatpush.msrb.mxu3 %v1454_v12 }
 0xb83   :  { %1445 = vadd.xlane.f32.xlu1 %v1444_v51 }
 0xb89   :  { %1479 = vrot.lane.b32.xlu0 %v4710_v29, %s4376_s17 }
 0xba2   :  { %v1312_v1 = vpop.xlane.xlu0 %1311 }
 0xba3   :  { %v1309_v52 = vpop.xlane.xlu1 %1308 }
 0xba4   :  { %3922 = vrcp.f32 %v1309_v52 }
 0xbaa   :  { %v3923_v53 = vpop.eup %3922 }
 0xbab   :  { %v1315_v54 = vmul.f32 %v3923_v53, %v3909_v30  ;;  %v1443_v55 = vpop.xlane.xlu1 %1442 }
 0xbac   :  { %3924 = vrcp.f32 %v1443_v55 }
 0xbad   :  { %3695 = vmatmul.msk.f32.vlgmr.msra.gmra.mxu3 %vm262_vm1, %v1315_v54  ;;  %v1317_v60 = vadd.f32 %v1315_v54, %v1181_v5  ;;  %v3839_v5 = vld [vmem:[#allocation10 + $0x1] ss:$0 sm:$0xff] }
 0xbae   :  { %1608 = vmatpush.msra.mxu3 %v1588_v56  ;;  %v1178_v63 = vpop.xlane.xlu2 %1177 }
 0xbb2   :  { %v3925_v57 = vpop.eup %3924 }
 0xbb3   :  { %v1449_v58 = vmul.f32 %v3925_v57, %v3911_v33  ;;  %v1577_v59 = vpop.xlane.xlu1 %1576  ;;  %v1678_v33 = vld [vmem:[#allocation8 + $0x38] sm:$0xff] }
 0xbb4   :  { %3926 = vrcp.f32 %v1577_v59  ;;  %1702 = vmatpush.msrb.mxu2 %v1678_v33 }
 0xbb5   :  { %3701 = vmatmul.msk.f32.vlgmr.msrb.gmra.mxu3 %vm262_vm1, %v1449_v58  ;;  %v1451_v61 = vadd.f32 %v1449_v58, %v1317_v60  ;;  %3928 = vrcp.f32 %v1178_v63 }
 0xbb6   :  { %3930 = vrcp.f32 %v1312_v1  ;;  %v1346_v7 = vpop.permute.xlu2 %1345  ;;  %1703 = vmatpush.msrb.mxu2 %v1677_v34  ;;  %v1776_v1 = vld [vmem:[#allocation11 + $0x30] sm:$0xff] }
 0xbba   :  { %v3927_v39 = vpop.eup %3926 }
 0xbbb   :  { %v1583_v29 = vmul.f32 %v3927_v39, %v3915_v38  ;;  %v3929_v2 = vpop.eup %3928 }
 0xbbc   :  { %v1182_v3 = vmul.f32 %v3929_v2, %v3913_v36  ;;  %v3931_v9 = vpop.eup %3930  ;;  %v1676_v36 = vld [vmem:[#allocation8 + $0x28] sm:$0xff] }
 0xbbd   :  { %v1585_v62 = vadd.f32 %v1583_v29, %v1451_v61  ;;  %3707 = vmatmul.msk.f32.vlgmr.msra.gmra.mxu3 %vm262_vm1, %v1583_v29  ;;  %v1316_v12 = vmul.f32 %v3931_v9, %v4764_v25  ;;  %1704 = vmatpush.msrb.mxu2 %v1676_v36  ;;  %v1775_v2 = vld [vmem:[#allocation11 + $0x28] sm:$0xff] }
 0xbbe   :  { %v1614_v17 = vpop.permute.xlu2 %1613 }
 0xbbf   :  { %v1639_v0 = vmul.f32 0.25, %v1585_v62  ;;  %v1318_v19 = vadd.f32 %v1316_v12, %v1182_v3  ;;  %1705 = vmatpush.msrb.mxu2 %v1675_v37 }
 0xbc1   :  { %1642 = vst.msk [vmem:[#allocation21 + $0x10] sm:$0xff] %vm262_vm1, %v1639_v0 }
 0xbcb   :  { %v1212_v6 = vpop.permute.xlu1 %1211 }
 0xbcc   :  { %1232 = vmatpush.msrb.mxu1 %v1212_v6 }
 0xbcd   :  { %3690 = vmatmul.msk.f32.vlgmr.msrb.gmra.mxu1 %vm262_vm1, %v1182_v3  ;;  %v1774_v3 = vld [vmem:[#allocation11 + $0x20] sm:$0xff] }
 0xbce   :  { %1366 = vmatpush.msra.mxu1 %v1346_v7 }
 0xbd5   :  { %3696 = vmatmul.msk.f32.vlgmr.msra.gmra.mxu1 %vm262_vm1, %v1316_v12 }
 0xbe8   :  { %v1580_v13 = vpop.xlane.xlu0 %1579 }
 0xbe9   :  { %3932 = vrcp.f32 %v1580_v13 }
 0xbef   :  { %v3933_v16 = vpop.eup %3932 }
 0xbf0   :  { %v1584_v21 = vmul.f32 %v3933_v16, %v3917_v4 }
 0xbf6   :  { %v1446_v14 = vpop.xlane.xlu1 %1445 }
 0xbf7   :  { %3934 = vrcp.f32 %v1446_v14 }
 0xbfa   :  { %v1208_v26 = vpop.f32.mrf.mxu3 }
 0xbfb   :  { %v1480_v15 = vpop.permute.xlu0 %1479 }
 0xbfc   :  { %1500 = vmatpush.msrb.mxu1 %v1480_v15 }
 0xbfd   :  { %v3935_v18 = vpop.eup %3934 }
 0xbfe   :  { %1634 = vmatpush.msra.mxu1 %v1614_v17  ;;  %v1450_v20 = vmul.f32 %v3935_v18, %v3921_v50  ;;  %v3840_v18 = vld [vmem:[%s5166_s9 + $0x1] ss:$0 sm:$0xff] }
 0xc00   :  { %v1452_v22 = vadd.f32 %v1450_v20, %v1318_v19  ;;  %3702 = vmatmul.msk.f32.vlgmr.msrb.gmra.mxu1 %vm262_vm1, %v1450_v20 }
 0xc02   :  { %v1586_v23 = vadd.f32 %v1584_v21, %v1452_v22 }
 0xc04   :  { %v1640_v25 = vmul.f32 0.25, %v1586_v23 }
 0xc06   :  { %1643 = vst.msk [vmem:[#allocation21 + $0x18] sm:$0xff] %vm262_vm1, %v1640_v25  ;;  %v1818_v25 = vld [vmem:[#allocation13 + $0x38] sm:$0xff] }
 0xc07   :  { %1842 = vmatpush.msrb.mxu3 %v1818_v25 }
 0xc08   :  { %3708 = vmatmul.msk.f32.vlgmr.msra.gmra.mxu1 %vm262_vm1, %v1584_v21  ;;  %v3841_v21 = vld [vmem:[#allocation16 + $0x1] ss:$0 sm:$0xff] }
 0xc30   :  { %v1342_v28 = vpop.f32.mrf.mxu3 }
 0xc31   :  { %1646 = vrot.lane.b32.xlu1 %v1342_v28, %s4354_s22 }
 0xc38   :  { %v1476_v30 = vpop.f32.mrf.mxu3 }
 0xc39   :  { %1654 = vrot.lane.b32.xlu0 %v1476_v30, %s4358_s19 }
 0xc40   :  { %v1610_v27 = vpop.f32.mrf.mxu3 }
 0xc41   :  { %1662 = vrot.lane.b32.xlu2 %v1610_v27, %s4378_s8 }
 0xc4a   :  { %v1234_v31 = vpop.f32.mrf.mxu1 }
 0xc52   :  { %v1368_v32 = vpop.f32.mrf.mxu1 }
 0xc53   :  { %1648 = vrot.lane.b32.xlu0 %v1368_v32, %s4354_s22 }
 0xc7d   :  { %v1502_v47 = vpop.f32.mrf.mxu1 }
 0xc7e   :  { %1656 = vrot.lane.b32.xlu2 %v1502_v47, %s4358_s19 }
 0xc85   :  { %v1636_v35 = vpop.f32.mrf.mxu1 }
 0xc86   :  { %1664 = vrot.lane.b32.xlu0 %v1636_v35, %s4378_s8 }
 0xc9b   :  { %v1663_v42 = vpop.permute.xlu2 %1662 }
 0xca3   :  { %v1647_v38 = vpop.permute.xlu1 %1646 }
 0xca4   :  { %v1668_v40 = vsel %vm262_vm1, %v1208_v26, %v1647_v38 }
 0xcab   :  { %v1655_v41 = vpop.permute.xlu0 %1654 }
 0xcac   :  { %v1670_v43 = vsel %vm824_vm2, %v1668_v40, %v1655_v41  ;;  %v1817_v40 = vld [vmem:[#allocation13 + $0x30] sm:$0xff]  ;;  %v1816_v41 = vld [vmem:[#allocation13 + $0x28] sm:$0xff] }
 0xcad   :  { %v1672_v44 = vsel %vm827_vm3, %v1670_v43, %v1663_v42  ;;  %1843 = vmatpush.msrb.mxu3 %v1817_v40  ;;  %v1815_v42 = vld [vmem:[#allocation13 + $0x20] sm:$0xff]  ;;  %v3842_v43 = vld [vmem:[%s5163_s6 + $0x1] ss:$0 sm:$0xff] }
 0xcae   :  { %3709 = vmatmul.msk.f32.vlgmr.msrb.gmra.mxu2 %vm229_vm0, %v1672_v44 }
 0xcaf   :  { %1844 = vmatpush.msrb.mxu3 %v1816_v41 }
 0xcb1   :  { %1845 = vmatpush.msrb.mxu3 %v1815_v42 }
 0xcc5   :  { %v1649_v45 = vpop.permute.xlu0 %1648 }
 0xcc6   :  { %v1669_v4 = vsel %vm262_vm1, %v1234_v31, %v1649_v45 }
 0xcd8   :  { %v1657_v8 = vpop.permute.xlu2 %1656 }
 0xcd9   :  { %v1671_v10 = vsel %vm824_vm2, %v1669_v4, %v1657_v8 }
 0xcf8   :  { %v1665_v48 = vpop.permute.xlu0 %1664 }
 0xcf9   :  { %v1673_v49 = vsel %vm827_vm3, %v1671_v10, %v1665_v48 }
 0xcfa   :  { %3710 = vmatmul.msk.f32.gmra.mxu2 %vm229_vm0, %v1673_v49  ;;  %v3843_v49 = vld [vmem:[#allocation14 + $0x1] ss:$0 sm:$0xff] }
 0xd31   :  { %v1707_v50 = vpop.f32.mrf.mxu2 }
 0xd32   :  { %v1708_v51 = vadd.f32 %v3839_v5, %v1707_v50 }
 0xd34   :  { %v1713_v52 = vadd.f32 %v1708_v51, %v4685_v11 }
 0xd36   :  { %v1719_v53 = vsel %vm229_vm0, %v1713_v52, 0.0 }
 0xd37   :  { %1720 = vadd.xlane.f32.xlu2 %v1719_v53 }
 0xd7d   :  { %v1710_v54 = vpop.f32.mrf.mxu2 }
 0xd7e   :  { %v1711_v55 = vadd.f32 %v3839_v5, %v1710_v54 }
 0xd80   :  { %v1714_v56 = vadd.f32 %v1711_v55, %v4690_v24  ;;  %v1777_v24 = vld [vmem:[#allocation11 + $0x38] sm:$0xff] }
 0xd81   :  { %1801 = vmatpush.msra.mxu0 %v1777_v24  ;;  %v1916_v24 = vld [vmem:[#allocation5 + $0x50] sm:$0xff] }
 0xd82   :  { %v1722_v57 = vsel %vm229_vm0, %v1714_v56, 0.0 }
 0xd83   :  { %1723 = vadd.xlane.f32.xlu1 %v1722_v57  ;;  %1802 = vmatpush.msra.mxu0 %v1776_v1  ;;  %v1915_v1 = vld [vmem:[#allocation5 + $0x48] sm:$0xff] }
 0xd85   :  { %1803 = vmatpush.msra.mxu0 %v1775_v2  ;;  %v1914_v2 = vld [vmem:[#allocation5 + $0x40] sm:$0xff] }
 0xd87   :  { %1804 = vmatpush.msra.mxu0 %v1774_v3 }
 0xdaa   :  { %v1721_v58 = vpop.xlane.xlu2 %1720 }
 0xdab   :  { %v1725_v59 = vmul.f32 %v1721_v58, %v4660_v46 }
 0xdad   :  { %v1727_v60 = vsub.f32 %v1713_v52, %v1725_v59 }
 0xdaf   :  { %v1729_v39 = vmul.f32 %v1727_v60, %v1727_v60 }
 0xdb1   :  { %v1731_v61 = vsel %vm229_vm0, %v1729_v39, 0.0 }
 0xdb2   :  { %1732 = vadd.xlane.f32.xlu0 %v1731_v61 }
 0xdf6   :  { %v1724_v29 = vpop.xlane.xlu1 %1723 }
 0xdf7   :  { %v1726_v11 = vmul.f32 %v1724_v29, %v4660_v46 }
 0xdf9   :  { %v1728_v62 = vsub.f32 %v1714_v56, %v1726_v11 }
 0xdfb   :  { %v1730_v63 = vmul.f32 %v1728_v62, %v1728_v62 }
 0xdfd   :  { %v1734_v0 = vsel %vm229_vm0, %v1730_v63, 0.0 }
 0xdfe   :  { %1735 = vadd.xlane.f32.xlu2 %v1734_v0  ;;  %v1917_v0 = vld [vmem:[#allocation5 + $0x58] sm:$0xff] }
 0xdff   :  { %1941 = vmatpush.msrb.mxu1 %v1917_v0 }
 0xe01   :  { %1942 = vmatpush.msrb.mxu1 %v1916_v24 }
 0xe03   :  { %1943 = vmatpush.msrb.mxu1 %v1915_v1 }
 0xe05   :  { %1944 = vmatpush.msrb.mxu1 %v1914_v2 }
 0xe25   :  { %v1733_v6 = vpop.xlane.xlu0 %1732 }
 0xe26   :  { %v1737_v7 = vmul.f32 %v1733_v6, %v4660_v46 }
 0xe28   :  { %v1739_v9 = vadd.f32 1e-05, %v1737_v7 }
 0xe2a   :  { %3936 = vrsqrt.f32 %v1739_v9  ;;  %vm1747_vm6 = vweird.f32 %v1739_v9 }
 0xe30   :  { %v3937_v12 = vpop.eup %3936 }
 0xe31   :  { %v1742_v13 = vmul.f32 %v3937_v12, %v1739_v9  ;;  %vm1748_vm5 = vweird.f32 %v3937_v12 }
 0xe32   :  { %vm1749_vm7 = vmor %vm1747_vm6, %vm1748_vm5 }
 0xe33   :  { %v1743_v14 = vmul.f32 %v3937_v12, %v1742_v13 }
 0xe35   :  { %v1744_v15 = vmul.f32 0.5, %v1743_v14 }
 0xe37   :  { %v1745_v16 = vsub.f32 1.5, %v1744_v15 }
 0xe39   :  { %v1746_v17 = vmul.f32 %v3937_v12, %v1745_v16 }
 0xe3b   :  { %v1750_v19 = vsel %vm1749_vm7, %v3937_v12, %v1746_v17  ;;  %v3844_v17 = vld [vmem:[#allocation17 + $0x1] ss:$0 sm:$0xff] }
 0xe3c   :  { %v1761_v20 = vmul.f32 %v1750_v19, %v1727_v60 }
 0xe3e   :  { %v1766_v22 = vmul.f32 %v3840_v18, %v1761_v20  ;;  %v3845_v20 = vld [vmem:[#allocation19 + $0x1] ss:$0 sm:$0xff] }
 0xe40   :  { %v1771_v23 = vadd.f32 %v3841_v21, %v1766_v22 }
 0xe42   :  { %3713 = vmatmul.msk.f32.vlgmr.msra.gmra.mxu0 %vm229_vm0, %v1771_v23 }
 0xe71   :  { %v1736_v26 = vpop.xlane.xlu2 %1735 }
 0xe72   :  { %v1738_v28 = vmul.f32 %v1736_v26, %v4660_v46 }
 0xe74   :  { %v1740_v30 = vadd.f32 1e-05, %v1738_v28 }
 0xe76   :  { %3938 = vrsqrt.f32 %v1740_v30  ;;  %vm1757_vm9 = vweird.f32 %v1740_v30 }
 0xe7c   :  { %v3939_v27 = vpop.eup %3938 }
 0xe7d   :  { %v1752_v31 = vmul.f32 %v3939_v27, %v1740_v30  ;;  %vm1758_vm8 = vweird.f32 %v3939_v27 }
 0xe7e   :  { %vm1759_vm10 = vmor %vm1757_vm9, %vm1758_vm8 }
 0xe7f   :  { %v1753_v32 = vmul.f32 %v3939_v27, %v1752_v31 }
 0xe81   :  { %v1754_v47 = vmul.f32 0.5, %v1753_v32 }
 0xe83   :  { %v1755_v33 = vsub.f32 1.5, %v1754_v47 }
 0xe85   :  { %v1756_v34 = vmul.f32 %v3939_v27, %v1755_v33 }
 0xe87   :  { %v1760_v35 = vsel %vm1759_vm10, %v3939_v27, %v1756_v34 }
 0xe88   :  { %v1762_v36 = vmul.f32 %v1760_v35, %v1728_v62 }
 0xe8a   :  { %v1767_v37 = vmul.f32 %v3840_v18, %v1762_v36 }
 0xe8c   :  { %v1772_v38 = vadd.f32 %v3841_v21, %v1767_v37  ;;  %v3846_v37 = vld [vmem:[#allocation7 + $0x2] ss:$0 sm:$0xff] }
 0xe8e   :  { %3714 = vmatmul.msk.f32.gmra.mxu0 %vm229_vm0, %v1772_v38 }
 0xebf   :  { %v1806_v44 = vpop.f32.mrf.mxu0 }
 0xec0   :  { %v1807_v45 = vadd.f32 %v3842_v43, %v1806_v44 }
 0xec2   :  { %v1812_v8 = vmax.f32 %v1807_v45, 0.0 }
 0xec4   :  { %3715 = vmatmul.msk.f32.vlgmr.msrb.gmra.mxu3 %vm229_vm0, %v1812_v8 }
 0xf0b   :  { %v1809_v4 = vpop.f32.mrf.mxu0 }
 0xf0c   :  { %v1810_v10 = vadd.f32 %v3842_v43, %v1809_v4 }
 0xf0e   :  { %v1813_v48 = vmax.f32 %v1810_v10, 0.0 }
 0xf10   :  { %3716 = vmatmul.msk.f32.gmra.mxu3 %vm229_vm0, %v1813_v48 }
 0xf47   :  { %v1847_v5 = vpop.f32.mrf.mxu3 }
 0xf48   :  { %v1848_v50 = vadd.f32 %v3843_v49, %v1847_v5 }
 0xf4a   :  { %v1853_v51 = vadd.f32 %v1848_v50, %v1771_v23 }
 0xf4c   :  { %v1859_v52 = vsel %vm229_vm0, %v1853_v51, 0.0 }
 0xf4d   :  { %1860 = vadd.xlane.f32.xlu1 %v1859_v52 }
 0xf93   :  { %v1850_v53 = vpop.f32.mrf.mxu3 }
 0xf94   :  { %v1851_v54 = vadd.f32 %v3843_v49, %v1850_v53 }
 0xf96   :  { %v1854_v55 = vadd.f32 %v1851_v54, %v1772_v38 }
 0xf98   :  { %v1862_v56 = vsel %vm229_vm0, %v1854_v55, 0.0 }
 0xf99   :  { %1863 = vadd.xlane.f32.xlu0 %v1862_v56 }
 0xfc0   :  { %v1861_v57 = vpop.xlane.xlu1 %1860 }
 0xfc1   :  { %v1865_v58 = vmul.f32 %v1861_v57, %v4660_v46 }
 0xfc3   :  { %v1867_v59 = vsub.f32 %v1853_v51, %v1865_v58 }
 0xfc5   :  { %v1869_v60 = vmul.f32 %v1867_v59, %v1867_v59 }
 0xfc7   :  { %v1871_v39 = vsel %vm229_vm0, %v1869_v60, 0.0 }
 0xfc8   :  { %1872 = vadd.xlane.f32.xlu2 %v1871_v39 }
0x100c   :  { %v1864_v61 = vpop.xlane.xlu0 %1863 }
0x100d   :  { %v1866_v29 = vmul.f32 %v1864_v61, %v4660_v46 }
0x100f   :  { %v1868_v11 = vsub.f32 %v1854_v55, %v1866_v29 }
0x1011   :  { %v1870_v62 = vmul.f32 %v1868_v11, %v1868_v11 }
0x1013   :  { %v1874_v63 = vsel %vm229_vm0, %v1870_v62, 0.0 }
0x1014   :  { %1875 = vadd.xlane.f32.xlu1 %v1874_v63 }
0x103b   :  { %v1873_v3 = vpop.xlane.xlu2 %1872 }
0x103c   :  { %v1877_v6 = vmul.f32 %v1873_v3, %v4660_v46 }
0x103e   :  { %v1879_v7 = vadd.f32 1e-05, %v1877_v6 }
0x1040   :  { %3940 = vrsqrt.f32 %v1879_v7  ;;  %vm1887_vm12 = vweird.f32 %v1879_v7 }
0x1046   :  { %v3941_v9 = vpop.eup %3940 }
0x1047   :  { %v1882_v12 = vmul.f32 %v3941_v9, %v1879_v7  ;;  %vm1888_vm11 = vweird.f32 %v3941_v9 }
0x1048   :  { %vm1889_vm13 = vmor %vm1887_vm12, %vm1888_vm11 }
0x1049   :  { %v1883_v13 = vmul.f32 %v3941_v9, %v1882_v12 }
0x104b   :  { %v1884_v14 = vmul.f32 0.5, %v1883_v13 }
0x104d   :  { %v1885_v15 = vsub.f32 1.5, %v1884_v14 }
0x104f   :  { %v1886_v16 = vmul.f32 %v3941_v9, %v1885_v15 }
0x1051   :  { %v1890_v18 = vsel %vm1889_vm13, %v3941_v9, %v1886_v16 }
0x1052   :  { %v1901_v19 = vmul.f32 %v1890_v18, %v1867_v59 }
0x1054   :  { %v1906_v21 = vmul.f32 %v3844_v17, %v1901_v19 }
0x1056   :  { %v4835_v22 = vadd.f32 %v3845_v20, %v1906_v21 }
0x1058   :  { %3717 = vmatmul.msk.f32.vlgmr.msrb.gmra.mxu1 %vm229_vm0, %v4835_v22 }
0x1087   :  { %v1876_v23 = vpop.xlane.xlu1 %1875 }
0x1088   :  { %v1878_v25 = vmul.f32 %v1876_v23, %v4660_v46 }
0x108a   :  { %v1880_v26 = vadd.f32 1e-05, %v1878_v25 }
0x108c   :  { %3942 = vrsqrt.f32 %v1880_v26  ;;  %vm1897_vm15 = vweird.f32 %v1880_v26 }
0x1092   :  { %v3943_v28 = vpop.eup %3942 }
0x1093   :  { %v1892_v30 = vmul.f32 %v3943_v28, %v1880_v26  ;;  %vm1898_vm14 = vweird.f32 %v3943_v28 }
0x1094   :  { %vm1899_vm4 = vmor %vm1897_vm15, %vm1898_vm14 }
0x1095   :  { %v1893_v27 = vmul.f32 %v3943_v28, %v1892_v30 }
0x1097   :  { %v1894_v31 = vmul.f32 0.5, %v1893_v27 }
0x1099   :  { %v1895_v32 = vsub.f32 1.5, %v1894_v31 }
0x109b   :  { %v1896_v47 = vmul.f32 %v3943_v28, %v1895_v32 }
0x109d   :  { %v1900_v33 = vsel %vm1899_vm4, %v3943_v28, %v1896_v47 }
0x109e   :  { %v1902_v34 = vmul.f32 %v1900_v33, %v1868_v11 }
0x10a0   :  { %v1907_v35 = vmul.f32 %v3844_v17, %v1902_v34 }
0x10a2   :  { %v4840_v36 = vadd.f32 %v3845_v20, %v1907_v35 }
0x10a4   :  { %3718 = vmatmul.msk.f32.gmra.mxu1 %vm229_vm0, %v4840_v36 }
0x10d5   :  { %v1946_v38 = vpop.f32.mrf.mxu1 }
0x10d6   :  { %v4844_v40 = vadd.f32 %v3846_v37, %v1946_v38 }
0x10d8   :  { %2084 = vrot.lane.b32.xlu1 %v4844_v40, %s4370_s29  ;;  %2086 = vrot.lane.b32.xlu2 %v4844_v40, %s4369_s0 }
0x10d9   :  { %1953 = vrot.lane.b32.xlu0 %v4844_v40, %s4368_s20 }
0x10e0   :  { %2352 = vrot.lane.b32.xlu1 %v4844_v40, %s4373_s5  ;;  %2218 = vrot.lane.b32.xlu2 %v4844_v40, %s4372_s15 }
0x10e1   :  { %2220 = vrot.lane.b32.xlu0 %v4844_v40, %s4371_s30 }
0x10e9   :  { %2354 = vrot.lane.b32.xlu0 %v4844_v40, %s4374_s16 }
0x1121   :  { %v1949_v41 = vpop.f32.mrf.mxu1 }
0x1122   :  { %v4860_v42 = vadd.f32 %v3846_v37, %v1949_v41 }
0x1124   :  { %2112 = vrot.lane.b32.xlu1 %v4860_v42, %s4370_s29  ;;  %2114 = vrot.lane.b32.xlu0 %v4860_v42, %s4369_s0  ;;  %v3815_v9 = vpack.i.bf16 %v4860_v42, %v4844_v40 }
0x1125   :  { %1980 = vrot.lane.b32.xlu2 %v4860_v42, %s4368_s20 }
0x112c   :  { %2382 = vrot.lane.b32.xlu1 %v4860_v42, %s4374_s16  ;;  %2246 = vrot.lane.b32.xlu0 %v4860_v42, %s4372_s15 }
0x112d   :  { %2248 = vrot.lane.b32.xlu2 %v4860_v42, %s4371_s30 }
0x1132   :  { %v2087_v44 = vpop.permute.xlu2 %2086 }
0x1135   :  { %2380 = vrot.lane.b32.xlu2 %v4860_v42, %s4373_s5 }
0x113a   :  { %v2219_v10 = vpop.permute.xlu2 %2218 }
0x114a   :  { %v2085_v8 = vpop.permute.xlu1 %2084 }
0x114b   :  { %v1954_v43 = vpop.permute.xlu0 %1953 }
0x114c   :  { %3719 = vmatpush.xpose.msk.msra.mxu2 %vm262_vm1, %v1954_v43 }
0x114f   :  { %3720 = vmatmul.msk.f32.vlgmr.msra.gmra.mxu2 %vm262_vm1, %v4844_v40 }
0x1150   :  { %3725 = vmatpush.xpose.msk.msrb.mxu2 %vm262_vm1, %v2087_v44 }
0x1152   :  { %v2353_v48 = vpop.permute.xlu1 %2352 }
0x1153   :  { %v2221_v45 = vpop.permute.xlu0 %2220 }
0x1154   :  { %3731 = vmatpush.xpose.msk.msra.mxu2 %vm262_vm1, %v2221_v45 }
0x1157   :  { %3726 = vmatmul.msk.f32.vlgmr.msrb.gmra.mxu2 %vm262_vm1, %v2085_v8 }
0x115b   :  { %v2355_v4 = vpop.permute.xlu0 %2354 }
0x115c   :  { %3737 = vmatpush.xpose.msk.msrb.mxu2 %vm262_vm1, %v2355_v4 }
0x115f   :  { %3732 = vmatmul.msk.f32.vlgmr.msra.gmra.mxu2 %vm262_vm1, %v2219_v10 }
0x1167   :  { %3738 = vmatmul.msk.f32.vlgmr.msrb.gmra.mxu2 %vm262_vm1, %v2353_v48 }
0x117f   :  { %v1981_v49 = vpop.permute.xlu2 %1980 }
0x1180   :  { %3721 = vmatpush.xpose.msk.msrb.mxu0 %vm262_vm1, %v1981_v49 }
0x1183   :  { %3722 = vmatmul.msk.f32.vlgmr.msrb.gmra.mxu0 %vm262_vm1, %v4860_v42 }
0x1187   :  { %v2249_v51 = vpop.permute.xlu2 %2248 }
0x118f   :  { %v2381_v54 = vpop.permute.xlu2 %2380 }
0x1196   :  { %v2115_v5 = vpop.permute.xlu0 %2114  ;;  %v2113_v50 = vpop.permute.xlu1 %2112 }
0x1197   :  { %3727 = vmatpush.xpose.msk.msra.mxu0 %vm262_vm1, %v2115_v5 }
0x119a   :  { %3728 = vmatmul.msk.f32.vlgmr.msra.gmra.mxu0 %vm262_vm1, %v2113_v50 }
0x119b   :  { %3733 = vmatpush.xpose.msk.msrb.mxu0 %vm262_vm1, %v2249_v51 }
0x119e   :  { %v2383_v52 = vpop.permute.xlu1 %2382  ;;  %v2247_v53 = vpop.permute.xlu0 %2246 }
0x119f   :  { %3739 = vmatpush.xpose.msk.msra.mxu0 %vm262_vm1, %v2383_v52 }
0x11a2   :  { %3734 = vmatmul.msk.f32.vlgmr.msrb.gmra.mxu0 %vm262_vm1, %v2247_v53 }
0x11aa   :  { %3740 = vmatmul.msk.f32.vlgmr.msra.gmra.mxu0 %vm262_vm1, %v2381_v54 }
0x11d2   :  { %v1976_v55 = vpop.f32.mrf.mxu2 }
0x11d3   :  { %v2006_v56 = vmul.f32 0.35355338, %v1976_v55 }
0x11d5   :  { %v2008_v57 = vsel %vm262_vm1, %v2006_v56, -inf }
0x11d6   :  { %2009 = vmax.xlane.f32.xlu0 %v2008_v57 }
0x11da   :  { %v2109_v39 = vpop.f32.mrf.mxu2 }
0x11db   :  { %v2140_v61 = vmul.f32 0.35355338, %v2109_v39 }
0x11dd   :  { %v2142_v29 = vsel %vm262_vm1, %v2140_v61, -inf }
0x11e2   :  { %v2243_v63 = vpop.f32.mrf.mxu2 }
0x11e3   :  { %v2274_v24 = vmul.f32 0.35355338, %v2243_v63 }
0x11e5   :  { %v2276_v6 = vsel %vm262_vm1, %v2274_v24, -inf }
0x11ea   :  { %2166 = vrot.lane.b32.xlu0 %v4844_v40, %s4375_s2  ;;  %v2377_v7 = vpop.f32.mrf.mxu2 }
0x11eb   :  { %v2408_v12 = vmul.f32 0.35355338, %v2377_v7 }
0x11ed   :  { %v2410_v13 = vsel %vm262_vm1, %v2408_v12, -inf }
0x1200   :  { %v2003_v58 = vpop.f32.mrf.mxu0 }
0x1201   :  { %v2007_v59 = vmul.f32 0.35355338, %v2003_v58 }
0x1203   :  { %v2011_v60 = vsel %vm262_vm1, %v2007_v59, -inf }
0x1204   :  { %2012 = vmax.xlane.f32.xlu1 %v2011_v60 }
0x120c   :  { %2143 = vmax.xlane.f32.xlu1 %v2142_v29 }
0x1217   :  { %v2137_v11 = vpop.f32.mrf.mxu0 }
0x1218   :  { %v2141_v62 = vmul.f32 0.35355338, %v2137_v11 }
0x121a   :  { %v2145_v0 = vsel %vm262_vm1, %v2141_v62, -inf }
0x121b   :  { %2146 = vmax.xlane.f32.xlu2 %v2145_v0 }
0x121f   :  { %v2271_v1 = vpop.f32.mrf.mxu0 }
0x1220   :  { %v2275_v2 = vmul.f32 0.35355338, %v2271_v1 }
0x1222   :  { %v2279_v3 = vsel %vm262_vm1, %v2275_v2, -inf }
0x1223   :  { %2280 = vmax.xlane.f32.xlu0 %v2279_v3  ;;  %2277 = vmax.xlane.f32.xlu2 %v2276_v6 }
0x1225   :  { %3816 = vrot.lane.b32.xlu1 %v3815_v9, %s4367_s12 }
0x1227   :  { %v2405_v14 = vpop.f32.mrf.mxu0 }
0x1228   :  { %v2409_v15 = vmul.f32 0.35355338, %v2405_v14 }
0x122a   :  { %v2413_v16 = vsel %vm262_vm1, %v2409_v15, -inf }
0x122b   :  { %2411 = vmax.xlane.f32.xlu0 %v2410_v13 }
0x123b   :  { %2300 = vrot.lane.b32.xlu2 %v4844_v40, %s4376_s17 }
0x123f   :  { %2434 = vrot.lane.b32.xlu0 %v4844_v40, %s4377_s18 }
0x1249   :  { %v2010_v17 = vpop.xlane.xlu0 %2009 }
0x124a   :  { %v2014_v18 = vsub.f32 %v2006_v56, %v2010_v17 }
0x124c   :  { %v2016_v19 = vmul.f32 1.442695, %v2014_v18 }
0x124e   :  { %3944 = vpow2.f32 %v2016_v19 }
0x124f   :  { %2414 = vmax.xlane.f32.xlu1 %v2413_v16 }
0x1254   :  { %v4911_v20 = vpop.eup %3944 }
0x1255   :  { %v2020_v21 = vsel %vm262_vm1, %v4911_v20, 0.0 }
0x125c   :  { %v2167_v34 = vpop.permute.xlu0 %2166 }
0x1264   :  { %2021 = vadd.xlane.f32.xlu2 %v2020_v21 }
0x1277   :  { %v2013_v23 = vpop.xlane.xlu1 %2012 }
0x1278   :  { %v2015_v25 = vsub.f32 %v2007_v59, %v2013_v23 }
0x127a   :  { %v2018_v26 = vmul.f32 1.442695, %v2015_v25 }
0x127c   :  { %3946 = vpow2.f32 %v2018_v26 }
0x127f   :  { %v2144_v28 = vpop.xlane.xlu1 %2143 }
0x1280   :  { %v2148_v30 = vsub.f32 %v2140_v61, %v2144_v28 }
0x1282   :  { %v4915_v27 = vpop.eup %3946  ;;  %v2150_v31 = vmul.f32 1.442695, %v2148_v30 }
0x1283   :  { %v2023_v32 = vsel %vm262_vm1, %v4915_v27, 0.0 }
0x1284   :  { %3948 = vpow2.f32 %v2150_v31  ;;  %2024 = vadd.xlane.f32.xlu1 %v2023_v32 }
0x128a   :  { %v4919_v47 = vpop.eup %3948 }
0x128b   :  { %v2154_v33 = vsel %vm262_vm1, %v4919_v47, 0.0 }
0x128c   :  { %2155 = vadd.xlane.f32.xlu0 %v2154_v33 }
0x128e   :  { %v2147_v35 = vpop.xlane.xlu2 %2146 }
0x128f   :  { %v2149_v37 = vsub.f32 %v2141_v62, %v2147_v35 }
0x1291   :  { %v2152_v38 = vmul.f32 1.442695, %v2149_v37 }
0x1293   :  { %3950 = vpow2.f32 %v2152_v38 }
0x1296   :  { %v2281_v40 = vpop.xlane.xlu0 %2280  ;;  %v2278_v41 = vpop.xlane.xlu2 %2277 }
0x1297   :  { %v2282_v43 = vsub.f32 %v2274_v24, %v2278_v41  ;;  %v3817_v44 = vpop.permute.xlu1 %3816  ;;  %v2283_v48 = vsub.f32 %v2275_v2, %v2281_v40 }
0x1298   :  { %v3819_v45 = vunpack.i.h.bf16 %v3817_v44  ;;  %v3818_v8 = vunpack.i.l.bf16 %v3817_v44 }
0x1299   :  { %v3951_v4 = vpop.eup %3950  ;;  %v2284_v10 = vmul.f32 1.442695, %v2282_v43  ;;  %v2286_v5 = vmul.f32 1.442695, %v2283_v48 }
0x129a   :  { %2053 = vmatpush.msra.mxu3 %v3818_v8  ;;  %2079 = vmatpush.msra.mxu1 %v3819_v45  ;;  %v2157_v49 = vsel %vm262_vm1, %v3951_v4, 0.0 }
0x129b   :  { %2158 = vadd.xlane.f32.xlu0 %v2157_v49  ;;  %3952 = vpow2.f32 %v2284_v10  ;;  %v2525_v49 = vld [vmem:[#allocation8 + $0x58] sm:$0xff] }
0x129c   :  { %2187 = vmatpush.msrb.mxu3 %v2167_v34  ;;  %3954 = vpow2.f32 %v2286_v5  ;;  %v2524_v5 = vld [vmem:[#allocation8 + $0x50] sm:$0xff]  ;;  %2549 = vmatpush.msra.mxu2 %v2525_v49 }
0x129d   :  { %2192 = vrot.lane.b32.xlu1 %v4860_v42, %s4375_s2 }
0x129e   :  { %v2412_v50 = vpop.xlane.xlu0 %2411  ;;  %v2301_v11 = vpop.permute.xlu2 %2300  ;;  %2550 = vmatpush.msra.mxu2 %v2524_v5 }
0x129f   :  { %v2416_v52 = vsub.f32 %v2408_v12, %v2412_v50  ;;  %v2523_v50 = vld [vmem:[#allocation8 + $0x48] sm:$0xff] }
0x12a0   :  { %2551 = vmatpush.msra.mxu2 %v2523_v50 }
0x12a1   :  { %v3953_v51 = vpop.eup %3952  ;;  %v2418_v54 = vmul.f32 1.442695, %v2416_v52 }
0x12a2   :  { %v2288_v53 = vsel %vm262_vm1, %v3953_v51, 0.0  ;;  %v3955_v55 = vpop.eup %3954 }
0x12a3   :  { %2289 = vadd.xlane.f32.xlu2 %v2288_v53  ;;  %3956 = vpow2.f32 %v2418_v54  ;;  %v2291_v56 = vsel %vm262_vm1, %v3955_v55, 0.0 }
0x12a9   :  { %v3957_v57 = vpop.eup %3956 }
0x12aa   :  { %v2422_v58 = vsel %vm262_vm1, %v3957_v57, 0.0 }
0x12ab   :  { %2292 = vadd.xlane.f32.xlu2 %v2291_v56 }
0x12b1   :  { %v2435_v24 = vpop.permute.xlu0 %2434 }
0x12b3   :  { %2423 = vadd.xlane.f32.xlu2 %v2422_v58 }
0x12c2   :  { %v2415_v59 = vpop.xlane.xlu1 %2414 }
0x12c3   :  { %v2417_v60 = vsub.f32 %v2409_v15, %v2415_v59 }
0x12c5   :  { %v2420_v39 = vmul.f32 1.442695, %v2417_v60 }
0x12c7   :  { %3958 = vpow2.f32 %v2420_v39 }
0x12cb   :  { %2326 = vrot.lane.b32.xlu2 %v4860_v42, %s4376_s17 }
0x12cd   :  { %v3959_v61 = vpop.eup %3958 }
0x12ce   :  { %v2425_v29 = vsel %vm262_vm1, %v3959_v61, 0.0 }
0x12cf   :  { %2426 = vadd.xlane.f32.xlu0 %v2425_v29 }
0x12d7   :  { %v2022_v62 = vpop.xlane.xlu2 %2021 }
0x12d8   :  { %3960 = vrcp.f32 %v2022_v62 }
0x12de   :  { %v3961_v63 = vpop.eup %3960 }
0x12df   :  { %v2028_v0 = vmul.f32 %v3961_v63, %v4911_v20 }
0x12e1   :  { %3723 = vmatmul.msk.f32.vlgmr.msra.gmra.mxu3 %vm262_vm1, %v2028_v0 }
0x12e2   :  { %2321 = vmatpush.msra.mxu3 %v2301_v11  ;;  %v3847_v11 = vld [vmem:[#allocation10 + $0x2] ss:$0 sm:$0xff] }
0x12e3   :  { %2460 = vrot.lane.b32.xlu0 %v4860_v42, %s4377_s18 }
0x12f7   :  { %v2025_v1 = vpop.xlane.xlu1 %2024 }
0x12f8   :  { %3962 = vrcp.f32 %v2025_v1 }
0x12fe   :  { %v3963_v2 = vpop.eup %3962 }
0x12ff   :  { %v2029_v3 = vmul.f32 %v3963_v2, %v4915_v27  ;;  %v2156_v6 = vpop.xlane.xlu0 %2155 }
0x1300   :  { %3964 = vrcp.f32 %v2156_v6 }
0x1301   :  { %3724 = vmatmul.msk.f32.vlgmr.msra.gmra.mxu1 %vm262_vm1, %v2029_v3 }
0x1306   :  { %v3965_v7 = vpop.eup %3964 }
0x1307   :  { %v2162_v9 = vmul.f32 %v3965_v7, %v4919_v47 }
0x1309   :  { %3729 = vmatmul.msk.f32.vlgmr.msrb.gmra.mxu3 %vm262_vm1, %v2162_v9  ;;  %v2164_v21 = vadd.f32 %v2162_v9, %v2028_v0 }
0x130a   :  { %2455 = vmatpush.msrb.mxu3 %v2435_v24 }
0x130e   :  { %v2159_v12 = vpop.xlane.xlu0 %2158 }
0x130f   :  { %3966 = vrcp.f32 %v2159_v12  ;;  %v2193_v13 = vpop.permute.xlu1 %2192 }
0x1310   :  { %2213 = vmatpush.msrb.mxu1 %v2193_v13 }
0x1315   :  { %v3967_v42 = vpop.eup %3966 }
0x1316   :  { %v2163_v14 = vmul.f32 %v3967_v42, %v3951_v4  ;;  %v2290_v15 = vpop.xlane.xlu2 %2289 }
0x1317   :  { %3968 = vrcp.f32 %v2290_v15 }
0x1318   :  { %3730 = vmatmul.msk.f32.vlgmr.msrb.gmra.mxu1 %vm262_vm1, %v2163_v14  ;;  %v2165_v47 = vadd.f32 %v2163_v14, %v2029_v3 }
0x131d   :  { %v3969_v16 = vpop.eup %3968 }
0x131e   :  { %v2296_v17 = vmul.f32 %v3969_v16, %v3953_v51  ;;  %v2293_v18 = vpop.xlane.xlu2 %2292  ;;  %v2522_v51 = vld [vmem:[#allocation8 + $0x40] sm:$0xff] }
0x131f   :  { %3970 = vrcp.f32 %v2293_v18  ;;  %2552 = vmatpush.msra.mxu2 %v2522_v51  ;;  %v2623_v18 = vld [vmem:[#allocation11 + $0x50] sm:$0xff] }
0x1320   :  { %3735 = vmatmul.msk.f32.vlgmr.msra.gmra.mxu3 %vm262_vm1, %v2296_v17  ;;  %v2298_v25 = vadd.f32 %v2296_v17, %v2164_v21 }
0x1325   :  { %v3971_v20 = vpop.eup %3970 }
0x1326   :  { %v2424_v19 = vpop.xlane.xlu2 %2423  ;;  %v2297_v26 = vmul.f32 %v3971_v20, %v3955_v55  ;;  %v2621_v20 = vld [vmem:[#allocation11 + $0x40] sm:$0xff] }
0x1327   :  { %3972 = vrcp.f32 %v2424_v19  ;;  %v2622_v19 = vld [vmem:[#allocation11 + $0x48] sm:$0xff] }
0x1328   :  { %v2299_v34 = vadd.f32 %v2297_v26, %v2165_v47  ;;  %v3848_v47 = vld [vmem:[%s5166_s9 + $0x2] ss:$0 sm:$0xff] }
0x132d   :  { %v3973_v23 = vpop.eup %3972 }
0x132e   :  { %v2430_v28 = vmul.f32 %v3973_v23, %v3957_v57  ;;  %v2327_v30 = vpop.permute.xlu2 %2326 }
0x132f   :  { %2347 = vmatpush.msra.mxu1 %v2327_v30 }
0x1330   :  { %v2432_v27 = vadd.f32 %v2430_v28, %v2298_v25  ;;  %3736 = vmatmul.msk.f32.vlgmr.msra.gmra.mxu1 %vm262_vm1, %v2297_v26  ;;  %3741 = vmatmul.msk.f32.vlgmr.msrb.gmra.mxu3 %vm262_vm1, %v2430_v28 }
0x1332   :  { %v2486_v31 = vmul.f32 0.25, %v2432_v27 }
0x1334   :  { %2489 = vst.msk [vmem:[#allocation21 + $0x20] sm:$0xff] %vm262_vm1, %v2486_v31 }
0x1342   :  { %v2427_v32 = vpop.xlane.xlu0 %2426 }
0x1343   :  { %3974 = vrcp.f32 %v2427_v32 }
0x1349   :  { %v3975_v33 = vpop.eup %3974 }
0x134a   :  { %v2431_v35 = vmul.f32 %v3975_v33, %v3959_v61 }
0x134c   :  { %v2433_v37 = vadd.f32 %v2431_v35, %v2299_v34 }
0x134e   :  { %v2487_v38 = vmul.f32 0.25, %v2433_v37 }
0x1350   :  { %2490 = vst.msk [vmem:[#allocation21 + $0x28] sm:$0xff] %vm262_vm1, %v2487_v38 }
0x1355   :  { %v2461_v40 = vpop.permute.xlu0 %2460 }
0x1356   :  { %2481 = vmatpush.msrb.mxu1 %v2461_v40  ;;  %v2665_v40 = vld [vmem:[#allocation13 + $0x58] sm:$0xff] }
0x1357   :  { %3742 = vmatmul.msk.f32.vlgmr.msrb.gmra.mxu1 %vm262_vm1, %v2431_v35  ;;  %v3849_v35 = vld [vmem:[#allocation16 + $0x2] ss:$0 sm:$0xff]  ;;  %2689 = vmatpush.msra.mxu3 %v2665_v40 }
0x1364   :  { %v2055_v41 = vpop.f32.mrf.mxu3 }
0x137e   :  { %v2081_v44 = vpop.f32.mrf.mxu1 }
0x138c   :  { %v2189_v43 = vpop.f32.mrf.mxu3 }
0x138d   :  { %2493 = vrot.lane.b32.xlu1 %v2189_v43, %s4354_s22 }
0x1395   :  { %v2215_v45 = vpop.f32.mrf.mxu1 }
0x1396   :  { %2495 = vrot.lane.b32.xlu2 %v2215_v45, %s4354_s22 }
0x13a3   :  { %v2323_v8 = vpop.f32.mrf.mxu3 }
0x13a4   :  { %2501 = vrot.lane.b32.xlu1 %v2323_v8, %s4358_s19 }
0x13ad   :  { %v2349_v4 = vpop.f32.mrf.mxu1 }
0x13ae   :  { %2503 = vrot.lane.b32.xlu1 %v2349_v4, %s4358_s19 }
0x13b3   :  { %v2457_v10 = vpop.f32.mrf.mxu3 }
0x13b4   :  { %2509 = vrot.lane.b32.xlu0 %v2457_v10, %s4378_s8 }
0x13d4   :  { %v2483_v48 = vpop.f32.mrf.mxu1 }
0x13d5   :  { %2511 = vrot.lane.b32.xlu0 %v2483_v48, %s4378_s8 }
0x13f0   :  { %v2496_v58 = vpop.permute.xlu2 %2495 }
0x13f1   :  { %v2516_v60 = vsel %vm262_vm1, %v2081_v44, %v2496_v58 }
0x13ff   :  { %v2494_v52 = vpop.permute.xlu1 %2493 }
0x1400   :  { %v2515_v54 = vsel %vm262_vm1, %v2055_v41, %v2494_v52 }
0x1416   :  { %v2502_v53 = vpop.permute.xlu1 %2501 }
0x1417   :  { %v2517_v55 = vsel %vm824_vm2, %v2515_v54, %v2502_v53  ;;  %v2664_v53 = vld [vmem:[#allocation13 + $0x50] sm:$0xff]  ;;  %v2663_v54 = vld [vmem:[#allocation13 + $0x48] sm:$0xff] }
0x1418   :  { %2690 = vmatpush.msra.mxu3 %v2664_v53 }
0x141a   :  { %2691 = vmatpush.msra.mxu3 %v2663_v54 }
0x1420   :  { %v2504_v59 = vpop.permute.xlu1 %2503 }
0x1421   :  { %v2518_v39 = vsel %vm824_vm2, %v2516_v60, %v2504_v59 }
0x1426   :  { %v2510_v56 = vpop.permute.xlu0 %2509 }
0x1427   :  { %v2519_v57 = vsel %vm827_vm3, %v2517_v55, %v2510_v56  ;;  %v2662_v55 = vld [vmem:[#allocation13 + $0x40] sm:$0xff]  ;;  %v3850_v56 = vld [vmem:[%s5163_s6 + $0x2] ss:$0 sm:$0xff] }
0x1428   :  { %3743 = vmatmul.msk.f32.vlgmr.msra.gmra.mxu2 %vm229_vm0, %v2519_v57  ;;  %2692 = vmatpush.msra.mxu3 %v2662_v55 }
0x1447   :  { %v2512_v61 = vpop.permute.xlu0 %2511 }
0x1448   :  { %v2520_v29 = vsel %vm827_vm3, %v2518_v39, %v2512_v61 }
0x1449   :  { %3744 = vmatmul.msk.f32.gmra.mxu2 %vm229_vm0, %v2520_v29  ;;  %v3851_v29 = vld [vmem:[#allocation14 + $0x2] ss:$0 sm:$0xff] }
0x14ab   :  { %v2554_v62 = vpop.f32.mrf.mxu2 }
0x14ac   :  { %v2555_v63 = vadd.f32 %v3847_v11, %v2554_v62 }
0x14ae   :  { %v2560_v0 = vadd.f32 %v2555_v63, %v4835_v22 }
0x14b0   :  { %v2566_v24 = vsel %vm229_vm0, %v2560_v0, 0.0 }
0x14b1   :  { %2567 = vadd.xlane.f32.xlu2 %v2566_v24 }
0x14cc   :  { %v2557_v1 = vpop.f32.mrf.mxu2 }
0x14cd   :  { %v2558_v2 = vadd.f32 %v3847_v11, %v2557_v1 }
0x14cf   :  { %v2561_v3 = vadd.f32 %v2558_v2, %v4840_v36  ;;  %v2624_v36 = vld [vmem:[#allocation11 + $0x58] sm:$0xff] }
0x14d0   :  { %2648 = vmatpush.msrb.mxu0 %v2624_v36  ;;  %v2763_v36 = vld [vmem:[#allocation5 + $0x70] sm:$0xff] }
0x14d1   :  { %v2569_v6 = vsel %vm229_vm0, %v2561_v3, 0.0 }
0x14d2   :  { %2570 = vadd.xlane.f32.xlu1 %v2569_v6  ;;  %2649 = vmatpush.msrb.mxu0 %v2623_v18  ;;  %v2762_v18 = vld [vmem:[#allocation5 + $0x68] sm:$0xff] }
0x14d4   :  { %2650 = vmatpush.msrb.mxu0 %v2622_v19  ;;  %v2761_v19 = vld [vmem:[#allocation5 + $0x60] sm:$0xff] }
0x14d6   :  { %2651 = vmatpush.msrb.mxu0 %v2621_v20 }
0x1524   :  { %v2568_v7 = vpop.xlane.xlu2 %2567 }
0x1525   :  { %v2572_v9 = vmul.f32 %v2568_v7, %v4660_v46 }
0x1527   :  { %v2574_v12 = vsub.f32 %v2560_v0, %v2572_v9 }
0x1529   :  { %v2576_v13 = vmul.f32 %v2574_v12, %v2574_v12 }
0x152b   :  { %v2578_v42 = vsel %vm229_vm0, %v2576_v13, 0.0 }
0x152c   :  { %2579 = vadd.xlane.f32.xlu0 %v2578_v42 }
0x1545   :  { %v2571_v14 = vpop.xlane.xlu1 %2570 }
0x1546   :  { %v2573_v22 = vmul.f32 %v2571_v14, %v4660_v46 }
0x1548   :  { %v2575_v15 = vsub.f32 %v2561_v3, %v2573_v22 }
0x154a   :  { %v2577_v16 = vmul.f32 %v2575_v15, %v2575_v15 }
0x154c   :  { %v2581_v17 = vsel %vm229_vm0, %v2577_v16, 0.0 }
0x154d   :  { %2582 = vadd.xlane.f32.xlu2 %v2581_v17  ;;  %v2764_v17 = vld [vmem:[#allocation5 + $0x78] sm:$0xff] }
0x154e   :  { %2788 = vmatpush.msra.mxu1 %v2764_v17 }
0x1550   :  { %2789 = vmatpush.msra.mxu1 %v2763_v36 }
0x1552   :  { %2790 = vmatpush.msra.mxu1 %v2762_v18 }
0x1554   :  { %2791 = vmatpush.msra.mxu1 %v2761_v19 }
0x159f   :  { %v2580_v21 = vpop.xlane.xlu0 %2579 }
0x15a0   :  { %v2584_v23 = vmul.f32 %v2580_v21, %v4660_v46 }
0x15a2   :  { %v2586_v25 = vadd.f32 1e-05, %v2584_v23 }
0x15a4   :  { %3976 = vrsqrt.f32 %v2586_v25  ;;  %vm2594_vm6 = vweird.f32 %v2586_v25 }
0x15aa   :  { %v3977_v26 = vpop.eup %3976 }
0x15ab   :  { %v2589_v28 = vmul.f32 %v3977_v26, %v2586_v25  ;;  %vm2595_vm5 = vweird.f32 %v3977_v26 }
0x15ac   :  { %vm2596_vm7 = vmor %vm2594_vm6, %vm2595_vm5 }
0x15ad   :  { %v2590_v30 = vmul.f32 %v3977_v26, %v2589_v28 }
0x15af   :  { %v2591_v27 = vmul.f32 0.5, %v2590_v30 }
0x15b1   :  { %v2592_v31 = vsub.f32 1.5, %v2591_v27 }
0x15b3   :  { %v2593_v32 = vmul.f32 %v3977_v26, %v2592_v31 }
0x15b5   :  { %v2597_v33 = vsel %vm2596_vm7, %v3977_v26, %v2593_v32  ;;  %v3852_v32 = vld [vmem:[#allocation17 + $0x2] ss:$0 sm:$0xff] }
0x15b6   :  { %v2608_v34 = vmul.f32 %v2597_v33, %v2574_v12 }
0x15b8   :  { %v2613_v37 = vmul.f32 %v3848_v47, %v2608_v34  ;;  %v3853_v34 = vld [vmem:[#allocation19 + $0x2] ss:$0 sm:$0xff] }
0x15ba   :  { %v2618_v38 = vadd.f32 %v3849_v35, %v2613_v37 }
0x15bc   :  { %3747 = vmatmul.msk.f32.vlgmr.msrb.gmra.mxu0 %vm229_vm0, %v2618_v38 }
0x15c0   :  { %v2583_v41 = vpop.xlane.xlu2 %2582 }
0x15c1   :  { %v2585_v43 = vmul.f32 %v2583_v41, %v4660_v46 }
0x15c3   :  { %v2587_v44 = vadd.f32 1e-05, %v2585_v43 }
0x15c5   :  { %3978 = vrsqrt.f32 %v2587_v44  ;;  %vm2604_vm9 = vweird.f32 %v2587_v44 }
0x15cb   :  { %v3979_v45 = vpop.eup %3978 }
0x15cc   :  { %v2599_v8 = vmul.f32 %v3979_v45, %v2587_v44  ;;  %vm2605_vm8 = vweird.f32 %v3979_v45 }
0x15cd   :  { %vm2606_vm10 = vmor %vm2604_vm9, %vm2605_vm8 }
0x15ce   :  { %v2600_v4 = vmul.f32 %v3979_v45, %v2599_v8 }
0x15d0   :  { %v2601_v10 = vmul.f32 0.5, %v2600_v4 }
0x15d2   :  { %v2602_v48 = vsub.f32 1.5, %v2601_v10 }
0x15d4   :  { %v2603_v49 = vmul.f32 %v3979_v45, %v2602_v48 }
0x15d6   :  { %v2607_v5 = vsel %vm2606_vm10, %v3979_v45, %v2603_v49 }
0x15d7   :  { %v2609_v50 = vmul.f32 %v2607_v5, %v2575_v15 }
0x15d9   :  { %v2614_v51 = vmul.f32 %v3848_v47, %v2609_v50 }
0x15db   :  { %v2619_v52 = vadd.f32 %v3849_v35, %v2614_v51  ;;  %v3854_v51 = vld [vmem:[#allocation7 + $0x3] ss:$0 sm:$0xff] }
0x15dd   :  { %3748 = vmatmul.msk.f32.gmra.mxu0 %vm229_vm0, %v2619_v52 }
0x1639   :  { %v2653_v57 = vpop.f32.mrf.mxu0 }
0x163a   :  { %v2654_v58 = vadd.f32 %v3850_v56, %v2653_v57 }
0x163c   :  { %v2659_v59 = vmax.f32 %v2654_v58, 0.0 }
0x163e   :  { %3749 = vmatmul.msk.f32.vlgmr.msra.gmra.mxu3 %vm229_vm0, %v2659_v59 }
0x165a   :  { %v2656_v60 = vpop.f32.mrf.mxu0 }
0x165b   :  { %v2657_v39 = vadd.f32 %v3850_v56, %v2656_v60 }
0x165d   :  { %v2660_v61 = vmax.f32 %v2657_v39, 0.0 }
0x165f   :  { %3750 = vmatmul.msk.f32.gmra.mxu3 %vm229_vm0, %v2660_v61 }
0x16c1   :  { %v2694_v11 = vpop.f32.mrf.mxu3 }
0x16c2   :  { %v2695_v62 = vadd.f32 %v3851_v29, %v2694_v11 }
0x16c4   :  { %v2700_v63 = vadd.f32 %v2695_v62, %v2618_v38 }
0x16c6   :  { %v2706_v0 = vsel %vm229_vm0, %v2700_v63, 0.0 }
0x16c7   :  { %2707 = vadd.xlane.f32.xlu1 %v2706_v0 }
0x16e2   :  { %v2697_v24 = vpop.f32.mrf.mxu3 }
0x16e3   :  { %v2698_v1 = vadd.f32 %v3851_v29, %v2697_v24 }
0x16e5   :  { %v2701_v2 = vadd.f32 %v2698_v1, %v2619_v52 }
0x16e7   :  { %v2709_v3 = vsel %vm229_vm0, %v2701_v2, 0.0 }
0x16e8   :  { %2710 = vadd.xlane.f32.xlu0 %v2709_v3 }
0x173a   :  { %v2708_v6 = vpop.xlane.xlu1 %2707 }
0x173b   :  { %v2712_v7 = vmul.f32 %v2708_v6, %v4660_v46 }
0x173d   :  { %v2714_v9 = vsub.f32 %v2700_v63, %v2712_v7 }
0x173f   :  { %v2716_v12 = vmul.f32 %v2714_v9, %v2714_v9 }
0x1741   :  { %v2718_v13 = vsel %vm229_vm0, %v2716_v12, 0.0 }
0x1742   :  { %2719 = vadd.xlane.f32.xlu2 %v2718_v13 }
0x175b   :  { %v2711_v42 = vpop.xlane.xlu0 %2710 }
0x175c   :  { %v2713_v14 = vmul.f32 %v2711_v42, %v4660_v46 }
0x175e   :  { %v2715_v22 = vsub.f32 %v2701_v2, %v2713_v14 }
0x1760   :  { %v2717_v15 = vmul.f32 %v2715_v22, %v2715_v22 }
0x1762   :  { %v2721_v16 = vsel %vm229_vm0, %v2717_v15, 0.0 }
0x1763   :  { %2722 = vadd.xlane.f32.xlu1 %v2721_v16 }
0x17b5   :  { %v2720_v20 = vpop.xlane.xlu2 %2719 }
0x17b6   :  { %v2724_v21 = vmul.f32 %v2720_v20, %v4660_v46 }
0x17b8   :  { %v2726_v23 = vadd.f32 1e-05, %v2724_v21 }
0x17ba   :  { %3980 = vrsqrt.f32 %v2726_v23  ;;  %vm2734_vm12 = vweird.f32 %v2726_v23 }
0x17c0   :  { %v3981_v25 = vpop.eup %3980 }
0x17c1   :  { %v2729_v26 = vmul.f32 %v3981_v25, %v2726_v23  ;;  %vm2735_vm11 = vweird.f32 %v3981_v25 }
0x17c2   :  { %vm2736_vm13 = vmor %vm2734_vm12, %vm2735_vm11 }
0x17c3   :  { %v2730_v28 = vmul.f32 %v3981_v25, %v2729_v26 }
0x17c5   :  { %v2731_v30 = vmul.f32 0.5, %v2730_v28 }
0x17c7   :  { %v2732_v27 = vsub.f32 1.5, %v2731_v30 }
0x17c9   :  { %v2733_v31 = vmul.f32 %v3981_v25, %v2732_v27 }
0x17cb   :  { %v2737_v47 = vsel %vm2736_vm13, %v3981_v25, %v2733_v31 }
0x17cc   :  { %v2748_v33 = vmul.f32 %v2737_v47, %v2714_v9 }
0x17ce   :  { %v2753_v35 = vmul.f32 %v3852_v32, %v2748_v33 }
0x17d0   :  { %v4988_v37 = vadd.f32 %v3853_v34, %v2753_v35 }
0x17d2   :  { %3751 = vmatmul.msk.f32.vlgmr.msra.gmra.mxu1 %vm229_vm0, %v4988_v37 }
0x17d6   :  { %v2723_v38 = vpop.xlane.xlu1 %2722 }
0x17d7   :  { %v2725_v40 = vmul.f32 %v2723_v38, %v4660_v46 }
0x17d9   :  { %v2727_v41 = vadd.f32 1e-05, %v2725_v40 }
0x17db   :  { %3982 = vrsqrt.f32 %v2727_v41  ;;  %vm2744_vm15 = vweird.f32 %v2727_v41 }
0x17e1   :  { %v3983_v43 = vpop.eup %3982 }
0x17e2   :  { %v2739_v44 = vmul.f32 %v3983_v43, %v2727_v41  ;;  %vm2745_vm14 = vweird.f32 %v3983_v43 }
0x17e3   :  { %vm2746_vm4 = vmor %vm2744_vm15, %vm2745_vm14 }
0x17e4   :  { %v2740_v45 = vmul.f32 %v3983_v43, %v2739_v44 }
0x17e6   :  { %v2741_v8 = vmul.f32 0.5, %v2740_v45 }
0x17e8   :  { %v2742_v4 = vsub.f32 1.5, %v2741_v8 }
0x17ea   :  { %v2743_v10 = vmul.f32 %v3983_v43, %v2742_v4 }
0x17ec   :  { %v2747_v48 = vsel %vm2746_vm4, %v3983_v43, %v2743_v10 }
0x17ed   :  { %v2749_v49 = vmul.f32 %v2747_v48, %v2715_v22 }
0x17ef   :  { %v2754_v5 = vmul.f32 %v3852_v32, %v2749_v49 }
0x17f1   :  { %v4993_v50 = vadd.f32 %v3853_v34, %v2754_v5 }
0x17f3   :  { %3752 = vmatmul.msk.f32.gmra.mxu1 %vm229_vm0, %v4993_v50 }
0x184f   :  { %v2793_v52 = vpop.f32.mrf.mxu1 }
0x1850   :  { %v4997_v53 = vadd.f32 %v3854_v51, %v2793_v52 }
0x1852   :  { %2931 = vrot.lane.b32.xlu1 %v4997_v53, %s4370_s29  ;;  %2933 = vrot.lane.b32.xlu2 %v4997_v53, %s4369_s0 }
0x1853   :  { %2800 = vrot.lane.b32.xlu0 %v4997_v53, %s4368_s20 }
0x185a   :  { %3201 = vrot.lane.b32.xlu1 %v4997_v53, %s4374_s16  ;;  %3065 = vrot.lane.b32.xlu2 %v4997_v53, %s4372_s15 }
0x185b   :  { %3067 = vrot.lane.b32.xlu0 %v4997_v53, %s4371_s30 }
0x1862   :  { %3199 = vrot.lane.b32.xlu2 %v4997_v53, %s4373_s5 }
0x1870   :  { %v2796_v54 = vpop.f32.mrf.mxu1 }
0x1871   :  { %v5013_v55 = vadd.f32 %v3854_v51, %v2796_v54 }
0x1873   :  { %3095 = vrot.lane.b32.xlu2 %v5013_v55, %s4371_s30  ;;  %2959 = vrot.lane.b32.xlu1 %v5013_v55, %s4370_s29  ;;  %v3820_v28 = vpack.i.bf16 %v5013_v55, %v4997_v53 }
0x1874   :  { %2827 = vrot.lane.b32.xlu0 %v5013_v55, %s4368_s20 }
0x187b   :  { %3227 = vrot.lane.b32.xlu2 %v5013_v55, %s4373_s5  ;;  %3229 = vrot.lane.b32.xlu1 %v5013_v55, %s4374_s16 }
0x187c   :  { %2961 = vrot.lane.b32.xlu0 %v5013_v55, %s4369_s0 }
0x1884   :  { %3093 = vrot.lane.b32.xlu0 %v5013_v55, %s4372_s15  ;;  %s3628_s15 = sshll.u32 %s5171_s14, 4  ;;  %s4381_s14 = smov [#allocation20]   ;;  %s3629_s15 = int_to_ptr.hbm [resolvable:$true] %s3628_s15 }
0x1885   :  { %s3613_s5 = sshll.u32 %s4381_s14, 4  ;;  %s3614_s5 = int_to_ptr.vmem [resolvable:$true] %s3613_s5 }
0x18ac   :  { %v2934_v57 = vpop.permute.xlu2 %2933 }
0x18b4   :  { %v3066_v39 = vpop.permute.xlu2 %3065 }
0x18bc   :  { %v3200_v61 = vpop.permute.xlu2 %3199 }
0x18c4   :  { %v2932_v58 = vpop.permute.xlu1 %2931 }
0x18c5   :  { %v2801_v56 = vpop.permute.xlu0 %2800 }
0x18c6   :  { %3753 = vmatpush.xpose.msk.msrb.mxu2 %vm262_vm1, %v2801_v56 }
0x18c9   :  { %3754 = vmatmul.msk.f32.vlgmr.msrb.gmra.mxu2 %vm262_vm1, %v4997_v53 }
0x18ca   :  { %3759 = vmatpush.xpose.msk.msra.mxu2 %vm262_vm1, %v2934_v57 }
0x18cc   :  { %v3202_v60 = vpop.permute.xlu1 %3201 }
0x18cd   :  { %v3068_v59 = vpop.permute.xlu0 %3067  ;;  %v3096_v63 = vpop.permute.xlu2 %3095 }
0x18ce   :  { %3765 = vmatpush.xpose.msk.msrb.mxu2 %vm262_vm1, %v3068_v59 }
0x18d1   :  { %3760 = vmatmul.msk.f32.vlgmr.msra.gmra.mxu2 %vm262_vm1, %v2932_v58 }
0x18d2   :  { %3771 = vmatpush.xpose.msk.msra.mxu2 %vm262_vm1, %v3202_v60 }
0x18d5   :  { %v3228_v1 = vpop.permute.xlu2 %3227 }
0x18d9   :  { %3766 = vmatmul.msk.f32.vlgmr.msrb.gmra.mxu2 %vm262_vm1, %v3066_v39 }
0x18e1   :  { %3772 = vmatmul.msk.f32.vlgmr.msra.gmra.mxu2 %vm262_vm1, %v3200_v61 }
0x18e5   :  { %v2960_v11 = vpop.permute.xlu1 %2959 }
0x18e6   :  { %v2828_v29 = vpop.permute.xlu0 %2827 }
0x18e7   :  { %3755 = vmatpush.xpose.msk.msra.mxu0 %vm262_vm1, %v2828_v29 }
0x18ea   :  { %3756 = vmatmul.msk.f32.vlgmr.msra.gmra.mxu0 %vm262_vm1, %v5013_v55 }
0x18ed   :  { %v3230_v0 = vpop.permute.xlu1 %3229 }
0x18ee   :  { %v2962_v62 = vpop.permute.xlu0 %2961 }
0x18ef   :  { %3761 = vmatpush.xpose.msk.msrb.mxu0 %vm262_vm1, %v2962_v62 }
0x18f2   :  { %3762 = vmatmul.msk.f32.vlgmr.msrb.gmra.mxu0 %vm262_vm1, %v2960_v11 }
0x18f3   :  { %3767 = vmatpush.xpose.msk.msra.mxu0 %vm262_vm1, %v3096_v63 }
0x18f6   :  { %v3094_v24 = vpop.permute.xlu0 %3093 }
0x18f7   :  { %3773 = vmatpush.xpose.msk.msrb.mxu0 %vm262_vm1, %v3230_v0 }
0x18fa   :  { %3768 = vmatmul.msk.f32.vlgmr.msra.gmra.mxu0 %vm262_vm1, %v3094_v24 }
0x1902   :  { %3774 = vmatmul.msk.f32.vlgmr.msrb.gmra.mxu0 %vm262_vm1, %v3228_v1 }
0x194c   :  { %v2823_v2 = vpop.f32.mrf.mxu2 }
0x194d   :  { %v2853_v3 = vmul.f32 0.35355338, %v2823_v2 }
0x194f   :  { %v2855_v6 = vsel %vm262_vm1, %v2853_v3, -inf }
0x1950   :  { %2856 = vmax.xlane.f32.xlu0 %v2855_v6 }
0x1954   :  { %v2956_v7 = vpop.f32.mrf.mxu2 }
0x1955   :  { %v2987_v9 = vmul.f32 0.35355338, %v2956_v7 }
0x1957   :  { %v2989_v12 = vsel %vm262_vm1, %v2987_v9, -inf }
0x1958   :  { %2990 = vmax.xlane.f32.xlu1 %v2989_v12 }
0x195c   :  { %v3090_v13 = vpop.f32.mrf.mxu2 }
0x195d   :  { %v3121_v42 = vmul.f32 0.35355338, %v3090_v13 }
0x195f   :  { %v3123_v14 = vsel %vm262_vm1, %v3121_v42, -inf }
0x1960   :  { %3124 = vmax.xlane.f32.xlu0 %v3123_v14 }
0x1964   :  { %v3224_v17 = vpop.f32.mrf.mxu2 }
0x1965   :  { %v3255_v36 = vmul.f32 0.35355338, %v3224_v17 }
0x1967   :  { %v2850_v22 = vpop.f32.mrf.mxu0  ;;  %v3257_v20 = vsel %vm262_vm1, %v3255_v36, -inf }
0x1968   :  { %v2854_v15 = vmul.f32 0.35355338, %v2850_v22 }
0x196a   :  { %v2858_v16 = vsel %vm262_vm1, %v2854_v15, -inf }
0x196b   :  { %2859 = vmax.xlane.f32.xlu2 %v2858_v16 }
0x196f   :  { %v2984_v18 = vpop.f32.mrf.mxu0 }
0x1970   :  { %v2988_v19 = vmul.f32 0.35355338, %v2984_v18 }
0x1972   :  { %v2992_v21 = vsel %vm262_vm1, %v2988_v19, -inf }
0x1973   :  { %3258 = vmax.xlane.f32.xlu2 %v3257_v20  ;;  %2993 = vmax.xlane.f32.xlu1 %v2992_v21 }
0x1977   :  { %v3118_v23 = vpop.f32.mrf.mxu0 }
0x1978   :  { %v3122_v25 = vmul.f32 0.35355338, %v3118_v23 }
0x197a   :  { %v3126_v26 = vsel %vm262_vm1, %v3122_v25, -inf }
0x197b   :  { %3127 = vmax.xlane.f32.xlu0 %v3126_v26 }
0x197f   :  { %v3252_v30 = vpop.f32.mrf.mxu0 }
0x1980   :  { %v5057_v27 = vmul.f32 0.35355338, %v3252_v30 }
0x1982   :  { %v3260_v31 = vsel %vm262_vm1, %v5057_v27, -inf }
0x198c   :  { %3821 = vrot.lane.b32.xlu1 %v3820_v28, %s4367_s12 }
0x19b6   :  { %3261 = vmax.xlane.f32.xlu1 %v3260_v31 }
0x19c3   :  { %v2857_v32 = vpop.xlane.xlu0 %2856 }
0x19c4   :  { %v2861_v47 = vsub.f32 %v2853_v3, %v2857_v32 }
0x19c6   :  { %v2863_v33 = vmul.f32 1.442695, %v2861_v47 }
0x19c8   :  { %3984 = vpow2.f32 %v2863_v33 }
0x19cb   :  { %v2991_v34 = vpop.xlane.xlu1 %2990 }
0x19cc   :  { %v2995_v35 = vsub.f32 %v2987_v9, %v2991_v34 }
0x19ce   :  { %v5061_v38 = vpop.eup %3984  ;;  %v2997_v40 = vmul.f32 1.442695, %v2995_v35 }
0x19cf   :  { %3147 = vrot.lane.b32.xlu1 %v4997_v53, %s4376_s17  ;;  %v2867_v41 = vsel %vm262_vm1, %v5061_v38, 0.0 }
0x19d0   :  { %3986 = vpow2.f32 %v2997_v40  ;;  %2868 = vadd.xlane.f32.xlu2 %v2867_v41 }
0x19d3   :  { %v3125_v48 = vpop.xlane.xlu0 %3124 }
0x19d4   :  { %v3129_v52 = vsub.f32 %v3121_v42, %v3125_v48 }
0x19d6   :  { %v5067_v43 = vpop.eup %3986 }
0x19d7   :  { %3281 = vrot.lane.b32.xlu1 %v4997_v53, %s4377_s18  ;;  %v3001_v44 = vsel %vm262_vm1, %v5067_v43, 0.0  ;;  %v3131_v53 = vmul.f32 1.442695, %v3129_v52 }
0x19d8   :  { %3002 = vadd.xlane.f32.xlu0 %v3001_v44 }
0x19de   :  { %v2860_v45 = vpop.xlane.xlu2 %2859 }
0x19df   :  { %v2862_v8 = vsub.f32 %v2854_v15, %v2860_v45  ;;  %3307 = vrot.lane.b32.xlu1 %v5013_v55, %s4377_s18 }
0x19e1   :  { %v2865_v4 = vmul.f32 1.442695, %v2862_v8 }
0x19e3   :  { %3988 = vpow2.f32 %v2865_v4 }
0x19e6   :  { %v2994_v10 = vpop.xlane.xlu1 %2993  ;;  %v3259_v39 = vpop.xlane.xlu2 %3258 }
0x19e7   :  { %v2996_v49 = vsub.f32 %v2988_v19, %v2994_v10  ;;  %v3263_v29 = vsub.f32 %v3255_v36, %v3259_v39 }
0x19e9   :  { %v3989_v5 = vpop.eup %3988  ;;  %v2999_v51 = vmul.f32 1.442695, %v2996_v49  ;;  %v3265_v62 = vmul.f32 1.442695, %v3263_v29 }
0x19ea   :  { %v2870_v54 = vsel %vm262_vm1, %v3989_v5, 0.0 }
0x19eb   :  { %2871 = vadd.xlane.f32.xlu2 %v2870_v54  ;;  %3990 = vpow2.f32 %v2999_v51 }
0x19ec   :  { %3992 = vpow2.f32 %v3131_v53 }
0x19ee   :  { %v3128_v56 = vpop.xlane.xlu0 %3127 }
0x19ef   :  { %v3130_v58 = vsub.f32 %v3122_v25, %v3128_v56 }
0x19f1   :  { %v3991_v57 = vpop.eup %3990  ;;  %v3133_v60 = vmul.f32 1.442695, %v3130_v58 }
0x19f2   :  { %v3004_v59 = vsel %vm262_vm1, %v3991_v57, 0.0  ;;  %v3993_v61 = vpop.eup %3992 }
0x19f3   :  { %3005 = vadd.xlane.f32.xlu0 %v3004_v59  ;;  %3994 = vpow2.f32 %v3133_v60  ;;  %v3135_v11 = vsel %vm262_vm1, %v3993_v61, 0.0 }
0x19f4   :  { %3996 = vpow2.f32 %v3265_v62  ;;  %v3371_v62 = vld [vmem:[#allocation8 + $0x70] sm:$0xff] }
0x19f9   :  { %v5078_v1 = vpop.eup %3994 }
0x19fa   :  { %v3138_v2 = vsel %vm262_vm1, %v5078_v1, 0.0  ;;  %v3997_v3 = vpop.eup %3996 }
0x19fb   :  { %3136 = vadd.xlane.f32.xlu0 %v3135_v11  ;;  %v3269_v6 = vsel %vm262_vm1, %v3997_v3, 0.0  ;;  %v3372_v11 = vld [vmem:[#allocation8 + $0x78] sm:$0xff] }
0x19fc   :  { %3396 = vmatpush.msrb.mxu2 %v3372_v11 }
0x19fe   :  { %v3822_v63 = vpop.permute.xlu1 %3821  ;;  %3397 = vmatpush.msrb.mxu2 %v3371_v62 }
0x19ff   :  { %v3824_v0 = vunpack.i.h.bf16 %v3822_v63  ;;  %v3823_v24 = vunpack.i.l.bf16 %v3822_v63  ;;  %v3370_v63 = vld [vmem:[#allocation8 + $0x68] sm:$0xff] }
0x1a00   :  { %3398 = vmatpush.msrb.mxu2 %v3370_v63 }
0x1a01   :  { %2900 = vmatpush.msrb.mxu3 %v3823_v24  ;;  %2926 = vmatpush.msrb.mxu1 %v3824_v0  ;;  %v3369_v0 = vld [vmem:[#allocation8 + $0x60] sm:$0xff] }
0x1a02   :  { %3399 = vmatpush.msrb.mxu2 %v3369_v0 }
0x1a03   :  { %3826 = vrot.lane.b32.xlu2 %v3820_v28, %s4375_s2  ;;  %3139 = vadd.xlane.f32.xlu0 %v3138_v2 }
0x1a0b   :  { %3270 = vadd.xlane.f32.xlu0 %v3269_v6 }
0x1a1f   :  { %3173 = vrot.lane.b32.xlu0 %v5013_v55, %s4376_s17  ;;  %s3615_s17 = sshll.u32 %s5170_s13, 4  ;;  %s3616_s17 = int_to_ptr.hbm [resolvable:$true] %s3615_s17 }
0x1a29   :  { %v3262_v7 = vpop.xlane.xlu1 %3261 }
0x1a2a   :  { %v3264_v9 = vsub.f32 %v5057_v27, %v3262_v7 }
0x1a2c   :  { %v3267_v12 = vmul.f32 1.442695, %v3264_v9 }
0x1a2e   :  { %3998 = vpow2.f32 %v3267_v12 }
0x1a34   :  { %v3999_v13 = vpop.eup %3998 }
0x1a35   :  { %v3272_v42 = vsel %vm262_vm1, %v3999_v13, 0.0 }
0x1a36   :  { %3273 = vadd.xlane.f32.xlu2 %v3272_v42 }
0x1a41   :  { %v3148_v55 = vpop.permute.xlu1 %3147 }
0x1a43   :  { %v2869_v14 = vpop.xlane.xlu2 %2868 }
0x1a44   :  { %4000 = vrcp.f32 %v2869_v14 }
0x1a49   :  { %v3282_v28 = vpop.permute.xlu1 %3281 }
0x1a4a   :  { %v4001_v22 = vpop.eup %4000 }
0x1a4b   :  { %v2875_v15 = vmul.f32 %v4001_v22, %v5061_v38  ;;  %v3003_v16 = vpop.xlane.xlu0 %3002 }
0x1a4c   :  { %4002 = vrcp.f32 %v3003_v16 }
0x1a4d   :  { %3757 = vmatmul.msk.f32.vlgmr.msrb.gmra.mxu3 %vm262_vm1, %v2875_v15 }
0x1a51   :  { %v3308_v10 = vpop.permute.xlu1 %3307 }
0x1a52   :  { %v4003_v36 = vpop.eup %4002 }
0x1a53   :  { %v3009_v26 = vmul.f32 %v4003_v36, %v5067_v43 }
0x1a55   :  { %v3011_v35 = vadd.f32 %v3009_v26, %v2875_v15  ;;  %v3855_v15 = vld [vmem:[#allocation10 + $0x3] ss:$0 sm:$0xff] }
0x1a5e   :  { %v2872_v17 = vpop.xlane.xlu2 %2871 }
0x1a5f   :  { %4004 = vrcp.f32 %v2872_v17 }
0x1a65   :  { %v4005_v18 = vpop.eup %4004 }
0x1a66   :  { %v2876_v19 = vmul.f32 %v4005_v18, %v3989_v5  ;;  %v3827_v20 = vpop.permute.xlu2 %3826  ;;  %v3006_v25 = vpop.xlane.xlu0 %3005 }
0x1a67   :  { %v3829_v21 = vunpack.i.h.bf16 %v3827_v20  ;;  %v3828_v23 = vunpack.i.l.bf16 %v3827_v20  ;;  %4006 = vrcp.f32 %v3006_v25 }
0x1a68   :  { %3758 = vmatmul.msk.f32.vlgmr.msrb.gmra.mxu1 %vm262_vm1, %v2876_v19 }
0x1a69   :  { %3034 = vmatpush.msra.mxu3 %v3828_v23  ;;  %3060 = vmatpush.msra.mxu1 %v3829_v21 }
0x1a6a   :  { %3763 = vmatmul.msk.f32.vlgmr.msra.gmra.mxu3 %vm262_vm1, %v3009_v26 }
0x1a6b   :  { %3168 = vmatpush.msrb.mxu3 %v3148_v55 }
0x1a6d   :  { %3302 = vmatpush.msra.mxu3 %v3282_v28  ;;  %v4007_v30 = vpop.eup %4006 }
0x1a6e   :  { %v3010_v27 = vmul.f32 %v4007_v30, %v3991_v57  ;;  %v3137_v31 = vpop.xlane.xlu0 %3136 }
0x1a6f   :  { %4008 = vrcp.f32 %v3137_v31 }
0x1a70   :  { %3764 = vmatmul.msk.f32.vlgmr.msra.gmra.mxu1 %vm262_vm1, %v3010_v27  ;;  %v3012_v49 = vadd.f32 %v3010_v27, %v2876_v19 }
0x1a75   :  { %v4009_v32 = vpop.eup %4008 }
0x1a76   :  { %v3143_v47 = vmul.f32 %v4009_v32, %v3993_v61  ;;  %v3140_v33 = vpop.xlane.xlu0 %3139 }
0x1a78   :  { %3769 = vmatmul.msk.f32.vlgmr.msrb.gmra.mxu3 %vm262_vm1, %v3143_v47  ;;  %v3145_v40 = vadd.f32 %v3143_v47, %v3011_v35  ;;  %v3468_v35 = vld [vmem:[#allocation11 + $0x60] sm:$0xff] }
0x1a7e   :  { %v3271_v34 = vpop.xlane.xlu0 %3270 }
0x1a7f   :  { %4010 = vrcp.f32 %v3271_v34  ;;  %v3469_v34 = vld [vmem:[#allocation11 + $0x68] sm:$0xff] }
0x1a80   :  { %4012 = vrcp.f32 %v3140_v33  ;;  %v3470_v33 = vld [vmem:[#allocation11 + $0x70] sm:$0xff] }
0x1a85   :  { %v4011_v38 = vpop.eup %4010 }
0x1a86   :  { %v3277_v41 = vmul.f32 %v4011_v38, %v3997_v3  ;;  %v4013_v45 = vpop.eup %4012 }
0x1a87   :  { %v3144_v8 = vmul.f32 %v4013_v45, %v5078_v1 }
0x1a88   :  { %v3279_v43 = vadd.f32 %v3277_v41, %v3145_v40  ;;  %3775 = vmatmul.msk.f32.vlgmr.msra.gmra.mxu3 %vm262_vm1, %v3277_v41 }
0x1a89   :  { %v3146_v51 = vadd.f32 %v3144_v8, %v3012_v49 }
0x1a8a   :  { %v3333_v44 = vmul.f32 0.25, %v3279_v43 }
0x1a8c   :  { %3336 = vst.msk [vmem:[#allocation21 + $0x30] sm:$0xff] %vm262_vm1, %v3333_v44 }
0x1a91   :  { %v3174_v4 = vpop.permute.xlu0 %3173 }
0x1a92   :  { %3194 = vmatpush.msrb.mxu1 %v3174_v4 }
0x1a93   :  { %3770 = vmatmul.msk.f32.vlgmr.msrb.gmra.mxu1 %vm262_vm1, %v3144_v8 }
0x1a94   :  { %3328 = vmatpush.msra.mxu1 %v3308_v10 }
0x1aa9   :  { %v3274_v48 = vpop.xlane.xlu2 %3273 }
0x1aaa   :  { %4014 = vrcp.f32 %v3274_v48  ;;  %v3856_v48 = vld [vmem:[%s5166_s9 + $0x3] ss:$0 sm:$0xff] }
0x1ab0   :  { %v4015_v5 = vpop.eup %4014 }
0x1ab1   :  { %v3278_v52 = vmul.f32 %v4015_v5, %v3999_v13 }
0x1ab3   :  { %v3280_v54 = vadd.f32 %v3278_v52, %v3146_v51  ;;  %3776 = vmatmul.msk.f32.vlgmr.msra.gmra.mxu1 %vm262_vm1, %v3278_v52  ;;  %v3857_v51 = vld [vmem:[#allocation16 + $0x3] ss:$0 sm:$0xff] }
0x1ab5   :  { %v3334_v53 = vmul.f32 0.25, %v3280_v54 }
0x1ab7   :  { %3337 = vst.msk [vmem:[#allocation21 + $0x38] sm:$0xff] %vm262_vm1, %v3334_v53  ;;  %v3512_v53 = vld [vmem:[#allocation13 + $0x78] sm:$0xff] }
0x1ab8   :  { %3536 = vmatpush.msrb.mxu3 %v3512_v53 }
0x1ad0   :  { %v2902_v56 = vpop.f32.mrf.mxu3 }
0x1ae5   :  { %v2928_v58 = vpop.f32.mrf.mxu1 }
0x1aed   :  { %v3036_v57 = vpop.f32.mrf.mxu3  ;;  %v3062_v60 = vpop.f32.mrf.mxu1 }
0x1aee   :  { %3340 = vrot.lane.b32.xlu1 %v3036_v57, %s4354_s22 }
0x1afb   :  { %v3170_v59 = vpop.f32.mrf.mxu3 }
0x1afc   :  { %3348 = vrot.lane.b32.xlu1 %v3170_v59, %s4358_s19 }
0x1b04   :  { %3342 = vrot.lane.b32.xlu1 %v3062_v60, %s4354_s22 }
0x1b0b   :  { %v3304_v39 = vpop.f32.mrf.mxu3 }
0x1b0c   :  { %3356 = vrot.lane.b32.xlu0 %v3304_v39, %s4378_s8 }
0x1b10   :  { %v3196_v61 = vpop.f32.mrf.mxu1 }
0x1b14   :  { %3350 = vrot.lane.b32.xlu0 %v3196_v61, %s4358_s19 }
0x1b30   :  { %v3330_v29 = vpop.f32.mrf.mxu1 }
0x1b31   :  { %3358 = vrot.lane.b32.xlu1 %v3330_v29, %s4378_s8 }
0x1b60   :  { %v3341_v24 = vpop.permute.xlu1 %3340 }
0x1b61   :  { %v3362_v2 = vsel %vm262_vm1, %v2902_v56, %v3341_v24 }
0x1b6e   :  { %v3349_v1 = vpop.permute.xlu1 %3348 }
0x1b6f   :  { %v3364_v3 = vsel %vm824_vm2, %v3362_v2, %v3349_v1  ;;  %v3511_v1 = vld [vmem:[#allocation13 + $0x70] sm:$0xff]  ;;  %v3510_v2 = vld [vmem:[#allocation13 + $0x68] sm:$0xff] }
0x1b70   :  { %3537 = vmatpush.msrb.mxu3 %v3511_v1 }
0x1b72   :  { %3538 = vmatpush.msrb.mxu3 %v3510_v2 }
0x1b76   :  { %v3343_v9 = vpop.permute.xlu1 %3342 }
0x1b77   :  { %v3363_v13 = vsel %vm262_vm1, %v2928_v58, %v3343_v9 }
0x1b7e   :  { %v3357_v6 = vpop.permute.xlu0 %3356 }
0x1b7f   :  { %v3366_v7 = vsel %vm827_vm3, %v3364_v3, %v3357_v6  ;;  %v3509_v3 = vld [vmem:[#allocation13 + $0x60] sm:$0xff]  ;;  %v3858_v6 = vld [vmem:[%s5163_s6 + $0x3] ss:$0 sm:$0xff]  ;;  %s4380_s6 = smov [#allocation21]  }
0x1b80   :  { %3777 = vmatmul.msk.f32.vlgmr.msrb.gmra.mxu2 %vm229_vm0, %v3366_v7  ;;  %3539 = vmatpush.msrb.mxu3 %v3509_v3  ;;  %s3626_s0 = sshll.u32 %s4380_s6, 4  ;;  %s3627_s0 = int_to_ptr.vmem [resolvable:$true] %s3626_s0 }
0x1b81   :  { %3634 = dma.vmem_to_hbm [thread:$0]  %s3627_s0, 1024, %s3629_s15, [#allocation22], %s4353_s21, %s4353_s21, %s4354_s22  }
0x1b86   :  { %v3351_v12 = vpop.permute.xlu0 %3350 }
0x1b87   :  { %v3365_v42 = vsel %vm824_vm2, %v3363_v13, %v3351_v12 }
0x1ba3   :  { %v3359_v14 = vpop.permute.xlu1 %3358 }
0x1ba4   :  { %v3367_v22 = vsel %vm827_vm3, %v3365_v42, %v3359_v14 }
0x1ba5   :  { %3778 = vmatmul.msk.f32.gmra.mxu2 %vm229_vm0, %v3367_v22  ;;  %v3859_v22 = vld [vmem:[#allocation14 + $0x3] ss:$0 sm:$0xff] }
0x1c03   :  { %v3401_v16 = vpop.f32.mrf.mxu2 }
0x1c04   :  { %v3402_v17 = vadd.f32 %v3855_v15, %v3401_v16 }
0x1c06   :  { %v3407_v55 = vadd.f32 %v3402_v17, %v4988_v37 }
0x1c08   :  { %v3413_v36 = vsel %vm229_vm0, %v3407_v55, 0.0 }
0x1c09   :  { %3414 = vadd.xlane.f32.xlu0 %v3413_v36 }
0x1c28   :  { %v3404_v18 = vpop.f32.mrf.mxu2 }
0x1c29   :  { %v3405_v19 = vadd.f32 %v3855_v15, %v3404_v18 }
0x1c2b   :  { %v3408_v20 = vadd.f32 %v3405_v19, %v4993_v50  ;;  %v3471_v50 = vld [vmem:[#allocation11 + $0x78] sm:$0xff] }
0x1c2c   :  { %3495 = vmatpush.msra.mxu0 %v3471_v50 }
0x1c2d   :  { %v3416_v21 = vsel %vm229_vm0, %v3408_v20, 0.0 }
0x1c2e   :  { %3417 = vadd.xlane.f32.xlu2 %v3416_v21  ;;  %3496 = vmatpush.msra.mxu0 %v3470_v33 }
0x1c30   :  { %3497 = vmatpush.msra.mxu0 %v3469_v34 }
0x1c32   :  { %3498 = vmatpush.msra.mxu0 %v3468_v35 }
0x1c7c   :  { %v3415_v23 = vpop.xlane.xlu0 %3414 }
0x1c7d   :  { %v3419_v25 = vmul.f32 %v3415_v23, %v4660_v46 }
0x1c7f   :  { %v3421_v26 = vsub.f32 %v3407_v55, %v3419_v25 }
0x1c81   :  { %v3423_v28 = vmul.f32 %v3421_v26, %v3421_v26 }
0x1c83   :  { %v3425_v30 = vsel %vm229_vm0, %v3423_v28, 0.0 }
0x1c84   :  { %3426 = vadd.xlane.f32.xlu1 %v3425_v30 }
0x1ca1   :  { %v3418_v27 = vpop.xlane.xlu2 %3417 }
0x1ca2   :  { %v3420_v37 = vmul.f32 %v3418_v27, %v4660_v46 }
0x1ca4   :  { %v3422_v31 = vsub.f32 %v3408_v20, %v3420_v37 }
0x1ca6   :  { %v3424_v32 = vmul.f32 %v3422_v31, %v3422_v31 }
0x1ca8   :  { %v3428_v47 = vsel %vm229_vm0, %v3424_v32, 0.0 }
0x1ca9   :  { %3429 = vadd.xlane.f32.xlu2 %v3428_v47 }
0x1cf7   :  { %v3427_v38 = vpop.xlane.xlu1 %3426 }
0x1cf8   :  { %v3431_v40 = vmul.f32 %v3427_v38, %v4660_v46 }
0x1cfa   :  { %v3433_v41 = vadd.f32 1e-05, %v3431_v40 }
0x1cfc   :  { %4016 = vrsqrt.f32 %v3433_v41  ;;  %vm3441_vm2 = vweird.f32 %v3433_v41 }
0x1d02   :  { %v4017_v43 = vpop.eup %4016 }
0x1d03   :  { %v3436_v44 = vmul.f32 %v4017_v43, %v3433_v41  ;;  %vm3442_vm1 = vweird.f32 %v4017_v43 }
0x1d04   :  { %vm3443_vm3 = vmor %vm3441_vm2, %vm3442_vm1 }
0x1d05   :  { %v3437_v45 = vmul.f32 %v4017_v43, %v3436_v44  ;;  %v3860_v44 = vld [vmem:[#allocation17 + $0x3] ss:$0 sm:$0xff] }
0x1d07   :  { %v3438_v8 = vmul.f32 0.5, %v3437_v45 }
0x1d09   :  { %v3439_v4 = vsub.f32 1.5, %v3438_v8 }
0x1d0b   :  { %v3440_v10 = vmul.f32 %v4017_v43, %v3439_v4  ;;  %v3861_v4 = vld [vmem:[#allocation19 + $0x3] ss:$0 sm:$0xff] }
0x1d0d   :  { %v3444_v49 = vsel %vm3443_vm3, %v4017_v43, %v3440_v10 }
0x1d0e   :  { %v3455_v5 = vmul.f32 %v3444_v49, %v3421_v26 }
0x1d10   :  { %v3460_v52 = vmul.f32 %v3856_v48, %v3455_v5 }
0x1d12   :  { %v3465_v54 = vadd.f32 %v3857_v51, %v3460_v52 }
0x1d14   :  { %3781 = vmatmul.msk.f32.vlgmr.msra.gmra.mxu0 %vm229_vm0, %v3465_v54 }
0x1d1c   :  { %v3430_v56 = vpop.xlane.xlu2 %3429 }
0x1d1d   :  { %v3432_v57 = vmul.f32 %v3430_v56, %v4660_v46 }
0x1d1f   :  { %v3434_v58 = vadd.f32 1e-05, %v3432_v57 }
0x1d21   :  { %4018 = vrsqrt.f32 %v3434_v58  ;;  %vm3451_vm6 = vweird.f32 %v3434_v58 }
0x1d27   :  { %v4019_v59 = vpop.eup %4018 }
0x1d28   :  { %v3446_v60 = vmul.f32 %v4019_v59, %v3434_v58  ;;  %vm3452_vm5 = vweird.f32 %v4019_v59 }
0x1d29   :  { %vm3453_vm7 = vmor %vm3451_vm6, %vm3452_vm5 }
0x1d2a   :  { %v3447_v39 = vmul.f32 %v4019_v59, %v3446_v60 }
0x1d2c   :  { %v3448_v61 = vmul.f32 0.5, %v3447_v39 }
0x1d2e   :  { %v3449_v29 = vsub.f32 1.5, %v3448_v61 }
0x1d30   :  { %v3450_v11 = vmul.f32 %v4019_v59, %v3449_v29 }
0x1d32   :  { %v3454_v62 = vsel %vm3453_vm7, %v4019_v59, %v3450_v11 }
0x1d33   :  { %v3456_v63 = vmul.f32 %v3454_v62, %v3422_v31 }
0x1d35   :  { %v3461_v0 = vmul.f32 %v3856_v48, %v3456_v63 }
0x1d37   :  { %v3466_v24 = vadd.f32 %v3857_v51, %v3461_v0 }
0x1d39   :  { %3782 = vmatmul.msk.f32.gmra.mxu0 %vm229_vm0, %v3466_v24 }
0x1d91   :  { %v3500_v7 = vpop.f32.mrf.mxu0 }
0x1d92   :  { %v3501_v9 = vadd.f32 %v3858_v6, %v3500_v7 }
0x1d94   :  { %v3506_v12 = vmax.f32 %v3501_v9, 0.0 }
0x1d96   :  { %3783 = vmatmul.msk.f32.vlgmr.msrb.gmra.mxu3 %vm229_vm0, %v3506_v12 }
0x1db6   :  { %v3503_v13 = vpop.f32.mrf.mxu0 }
0x1db7   :  { %v3504_v42 = vadd.f32 %v3858_v6, %v3503_v13 }
0x1db9   :  { %v3507_v14 = vmax.f32 %v3504_v42, 0.0 }
0x1dbb   :  { %3784 = vmatmul.msk.f32.gmra.mxu3 %vm229_vm0, %v3507_v14 }
0x1e19   :  { %v3541_v15 = vpop.f32.mrf.mxu3 }
0x1e1a   :  { %v3542_v16 = vadd.f32 %v3859_v22, %v3541_v15 }
0x1e1c   :  { %v3547_v17 = vadd.f32 %v3542_v16, %v3465_v54 }
0x1e1e   :  { %v3553_v55 = vsel %vm229_vm0, %v3547_v17, 0.0 }
0x1e1f   :  { %3554 = vadd.xlane.f32.xlu2 %v3553_v55 }
0x1e3e   :  { %v3544_v36 = vpop.f32.mrf.mxu3 }
0x1e3f   :  { %v3545_v18 = vadd.f32 %v3859_v22, %v3544_v36 }
0x1e41   :  { %v3548_v19 = vadd.f32 %v3545_v18, %v3466_v24 }
0x1e43   :  { %v3556_v20 = vsel %vm229_vm0, %v3548_v19, 0.0 }
0x1e44   :  { %3557 = vadd.xlane.f32.xlu2 %v3556_v20 }
0x1e92   :  { %v3555_v21 = vpop.xlane.xlu2 %3554 }
0x1e93   :  { %v3559_v23 = vmul.f32 %v3555_v21, %v4660_v46 }
0x1e95   :  { %v3561_v25 = vsub.f32 %v3547_v17, %v3559_v23 }
0x1e97   :  { %v3563_v26 = vmul.f32 %v3561_v25, %v3561_v25 }
0x1e99   :  { %v3565_v28 = vsel %vm229_vm0, %v3563_v26, 0.0 }
0x1e9a   :  { %3566 = vadd.xlane.f32.xlu2 %v3565_v28 }
0x1eb7   :  { %v3558_v30 = vpop.xlane.xlu2 %3557 }
0x1eb8   :  { %v3560_v27 = vmul.f32 %v3558_v30, %v4660_v46 }
0x1eba   :  { %v3562_v37 = vsub.f32 %v3548_v19, %v3560_v27 }
0x1ebc   :  { %v3564_v31 = vmul.f32 %v3562_v37, %v3562_v37 }
0x1ebe   :  { %v3568_v32 = vsel %vm229_vm0, %v3564_v31, 0.0 }
0x1ebf   :  { %3569 = vadd.xlane.f32.xlu2 %v3568_v32 }
0x1f0d   :  { %v3567_v47 = vpop.xlane.xlu2 %3566 }
0x1f0e   :  { %v3571_v50 = vmul.f32 %v3567_v47, %v4660_v46 }
0x1f10   :  { %v3573_v33 = vadd.f32 1e-05, %v3571_v50 }
0x1f12   :  { %4020 = vrsqrt.f32 %v3573_v33  ;;  %vm3581_vm9 = vweird.f32 %v3573_v33 }
0x1f18   :  { %v4021_v34 = vpop.eup %4020 }
0x1f19   :  { %v3576_v35 = vmul.f32 %v4021_v34, %v3573_v33  ;;  %vm3582_vm8 = vweird.f32 %v4021_v34 }
0x1f1a   :  { %vm3583_vm10 = vmor %vm3581_vm9, %vm3582_vm8 }
0x1f1b   :  { %v3577_v38 = vmul.f32 %v4021_v34, %v3576_v35 }
0x1f1d   :  { %v3578_v40 = vmul.f32 0.5, %v3577_v38 }
0x1f1f   :  { %v3579_v41 = vsub.f32 1.5, %v3578_v40 }
0x1f21   :  { %v3580_v43 = vmul.f32 %v4021_v34, %v3579_v41 }
0x1f23   :  { %v3584_v45 = vsel %vm3583_vm10, %v4021_v34, %v3580_v43 }
0x1f24   :  { %v3595_v8 = vmul.f32 %v3584_v45, %v3561_v25 }
0x1f26   :  { %v3600_v10 = vmul.f32 %v3860_v44, %v3595_v8 }
0x1f28   :  { %v3605_v48 = vadd.f32 %v3861_v4, %v3600_v10 }
0x1f2a   :  { %3607 = vst.msk [vmem:[#allocation20] sm:$0xff] %vm229_vm0, %v3605_v48 }
0x1f32   :  { %v3570_v49 = vpop.xlane.xlu2 %3569 }
0x1f33   :  { %v3572_v5 = vmul.f32 %v3570_v49, %v4660_v46 }
0x1f35   :  { %v3574_v51 = vadd.f32 1e-05, %v3572_v5 }
0x1f37   :  { %4022 = vrsqrt.f32 %v3574_v51  ;;  %vm3591_vm12 = vweird.f32 %v3574_v51 }
0x1f3d   :  { %v4023_v52 = vpop.eup %4022 }
0x1f3e   :  { %v3586_v54 = vmul.f32 %v4023_v52, %v3574_v51  ;;  %vm3592_vm11 = vweird.f32 %v4023_v52 }
0x1f3f   :  { %vm3593_vm13 = vmor %vm3591_vm12, %vm3592_vm11 }
0x1f40   :  { %v3587_v53 = vmul.f32 %v4023_v52, %v3586_v54 }
0x1f42   :  { %v3588_v56 = vmul.f32 0.5, %v3587_v53 }
0x1f44   :  { %v3589_v57 = vsub.f32 1.5, %v3588_v56 }
0x1f46   :  { %v3590_v58 = vmul.f32 %v4023_v52, %v3589_v57 }
0x1f48   :  { %v3594_v59 = vsel %vm3593_vm13, %v4023_v52, %v3590_v58 }
0x1f49   :  { %v3596_v60 = vmul.f32 %v3594_v59, %v3562_v37 }
0x1f4b   :  { %v3601_v46 = vmul.f32 %v3860_v44, %v3596_v60 }
0x1f4d   :  { %v3606_v39 = vadd.f32 %v3861_v4, %v3601_v46 }
0x1f4f   :  { %3608 = vst.msk [vmem:[#allocation20 + $0x8] sm:$0xff] %vm229_vm0, %v3606_v39 }
0x1f50   :  { %3621 = dma.vmem_to_hbm [thread:$0]  %s3614_s5, 256, %s3616_s17, [#allocation4], %s4353_s21, %s4353_s21, %s4354_s22  }
0x1f51   :  { %4348 = dma.done.wait [#allocation4], 256  }
0x1f52   :  { %4349 = vsyncadd [#allocation4], 4294967040 }
0x1f53   :  { %4350 = dma.done.wait [#allocation22], 1024  }
0x1f54   :  { %4351 = vsyncadd [#allocation22], 4294966272 }
0x1f55   :  { %3643 = vsyncpa [#allocation3], 1 }
0x1f56   :  { %3644 = vsyncpa [#allocation6], 1 }
0x1f57   :  { %3645 = vsyncpa [#allocation9], 1 }
0x1f58   :  { %3646 = vsyncpa [#allocation12], 1 }
0x1f59   :  { %3647 = vsyncpa [#allocation15], 1 }
0x1f5a   :  { %3648 = vsyncpa [#allocation18], 1 }
0x1f5b   :  { %3649 = vsyncpa [#allocation4], 1 }
0x1f5c   :  { %3650 = vsyncpa [#allocation22], 1 }

</bundles_post_ra>
